<compile_context>
chip_gen: v7x
topology: tpu7x:2x2x1
jax: 0.10.0
libtpu: 0.0.40
codegen_flags: <defaults>
</compile_context>

<pallas_src>
import functools

import jax
import jax.numpy as jnp
from jax import lax
from jax.experimental import pallas as pl
from jax.experimental.pallas import tpu as pltpu


def _fused_kernel(x_ref, bw_ref, bb_ref, rw_ref, rb_ref, mask_ref, o_ref,
                  *, C, H, W, L, compute_dtype):
    """Whole MaskedResRecon forward for one batch element.

    x_ref   : (1, C, L)       zero-padded, flattened, lane-padded input (f32)
    bw_ref  : (4, 3, C, 3*C)  body conv weights, [conv, dy, o, dx*Cin + c]
    bb_ref  : (4, C, 1)       body conv biases (f32)
    rw_ref  : (3, CP, 3*C)    recon conv weights (Cout padded to CP)
    rb_ref  : (CP, 1)         recon conv bias (f32)
    mask_ref: (1, L)          1.0 at interior pixels, 0.0 at ring + tail pad
    o_ref   : (1, CP, L)      output in padded-flat layout
    """
    Wp = W + 2

    mask = mask_ref[...]                               # (1, L) f32
    mask_c = jnp.broadcast_to(mask, (C, L))            # hoisted, reused 4x

    def conv3x3(a, load_w, b):
        # a: (Cin, L) f32 with a zero padding ring + zero tail pad.
        # load_w(dy) -> (Cout, 3*Cin) in compute_dtype.  b: (Cout, 1) f32.
        # Returns (Cout, L) f32; ring/tail entries are garbage until the
        # caller multiplies by the mask (which also kills circular-wrap junk).
        def tap(dy, dx):
            s = (dy - 1) * Wp + (dx - 1)               # |s| <= Wp + 1 = 19
            t = a if s == 0 else pltpu.roll(a, (-s) % L, axis=1)
            return t.astype(compute_dtype)

        acc = None
        for dy in range(3):
            # Row group dy: 3 taps as XLU lane rotations, stacked along K=96.
            group = jnp.concatenate([tap(dy, dx) for dx in range(3)], axis=0)
            part = jnp.dot(load_w(dy), group,
                           preferred_element_type=jnp.float32)   # (Cout, L)
            acc = part if acc is None else acc + part
        return acc + b

    x = x_ref[0]                                       # (C, L) f32, zero ring

    # ---- body: residual block 1 ----
    r = jnp.maximum(conv3x3(x, lambda dy: bw_ref[0, dy], bb_ref[0]), 0.0) * mask_c
    h = x + conv3x3(r, lambda dy: bw_ref[1, dy], bb_ref[1]) * mask_c
    # ---- body: residual block 2 ----
    r = jnp.maximum(conv3x3(h, lambda dy: bw_ref[2, dy], bb_ref[2]), 0.0) * mask_c
    h = h + conv3x3(r, lambda dy: bw_ref[3, dy], bb_ref[3]) * mask_c
    # ---- outer residual + recon conv ----
    out = conv3x3(x + h, lambda dy: rw_ref[dy], rb_ref[...]) * mask    # (CP, L)

    o_ref[0] = out.astype(o_ref.dtype)


def _pack_w(w_hwio, cout_pad=None):
    """(3, 3, Cin, Cout) HWIO -> (3, Cout[_pad], 3*Cin), entry [dy, o, dx*Cin+c]."""
    kh, kw, cin, cout = w_hwio.shape
    w = jnp.transpose(w_hwio, (0, 3, 1, 2)).reshape(kh, cout, kw * cin)
    if cout_pad is not None and cout_pad > cout:
        w = jnp.pad(w, ((0, 0), (0, cout_pad - cout), (0, 0)))
    return w


def masked_res_recon(x_nchw, params, compute_dtype=jnp.bfloat16):
    """Forward pass matching the PyTorch module (NCHW in, NCHW out)."""
    N, C, H, W = x_nchw.shape
    Hp, Wp = H + 2, W + 2
    L0 = Hp * Wp
    L = -(-L0 // 128) * 128                    # lane-dense: 324 -> 384
    n_out = params["br"].shape[0]
    CP = -(-n_out // 8) * 8                    # pad recon Cout to sublane mult.

    # Weights packed per row-group and pre-cast to compute_dtype (halves the
    # per-step weight DMA; removes in-kernel weight casts).  Biases stay f32.
    body_w = jnp.stack([_pack_w(params[k]) for k in ("w1a", "w1b", "w2a", "w2b")]
                       ).astype(compute_dtype)                    # (4, 3, C, 3C)
    body_b = jnp.stack([params[k].reshape(C, 1)
                        for k in ("b1a", "b1b", "b2a", "b2b")])   # (4, C, 1)
    recon_w = _pack_w(params["wr"], cout_pad=CP).astype(compute_dtype)  # (3, CP, 3C)
    recon_b = jnp.pad(params["br"], (0, CP - n_out)).reshape(CP, 1)

    # One tiny pad+flatten of the network input; the SAME-padding ring (and
    # the 60-lane tail pad) live inside the kernel layout and are re-zeroed by
    # the in-kernel mask after every conv.
    x_flat = jnp.pad(x_nchw, ((0, 0), (0, 0), (1, 1), (1, 1))).reshape(N, C, L0)
    x_flat = jnp.pad(x_flat, ((0, 0), (0, 0), (0, L - L0)))
    mask = jnp.zeros((Hp, Wp), jnp.float32).at[1:H + 1, 1:W + 1].set(1.0)
    mask = jnp.pad(mask.reshape(1, L0), ((0, 0), (0, L - L0)))

    kernel = functools.partial(_fused_kernel, C=C, H=H, W=W, L=L,
                               compute_dtype=compute_dtype)

    # TODO(synk): at realistic shapes (H,W >= 256, C >= 64) add an H-row-tile
    # grid axis with a 1-row halo (and raise vmem_limit_bytes on v6e); the
    # whole-image-per-batch block below is sized for small shapes and fits the
    # default scoped VMEM on all of v5e/v6e/v7x.
    out_flat = pl.pallas_call(
        kernel,
        out_shape=jax.ShapeDtypeStruct((N, CP, L), jnp.float32),
        grid=(N,),
        in_specs=[
            pl.BlockSpec((1, C, L), lambda n: (n, 0, 0)),
            pl.BlockSpec((4, 3, C, 3 * C), lambda n: (0, 0, 0, 0)),
            pl.BlockSpec((4, C, 1), lambda n: (0, 0, 0)),
            pl.BlockSpec((3, CP, 3 * C), lambda n: (0, 0, 0)),
            pl.BlockSpec((CP, 1), lambda n: (0, 0)),
            pl.BlockSpec((1, L), lambda n: (0, 0)),
        ],
        out_specs=pl.BlockSpec((1, CP, L), lambda n: (n, 0, 0)),
        compiler_params=pltpu.CompilerParams(
            dimension_semantics=("parallel",)),
    )(x_flat, body_w, body_b, recon_w, recon_b, mask)

    # Padded-flat -> NCHW: drop tail pad, free reshape, tiny interior slice.
    return (out_flat[:, :n_out, :L0]
            .reshape(N, n_out, Hp, Wp)[:, :, 1:H + 1, 1:W + 1])


def init_params(key, n_feats, n_outputs):
    """Deterministic synthetic parameters (HWIO weight layout)."""
    ks = jax.random.split(key, 10)

    def w(k, cin, cout):
        return (jax.random.normal(k, (3, 3, cin, cout), jnp.float32)
                * (1.0 / (3.0 * jnp.sqrt(float(cin)))))

    def bias(k, cout):
        return jax.random.normal(k, (cout,), jnp.float32) * 0.01

    return {
        "w1a": w(ks[0], n_feats, n_feats), "b1a": bias(ks[1], n_feats),
        "w1b": w(ks[2], n_feats, n_feats), "b1b": bias(ks[3], n_feats),
        "w2a": w(ks[4], n_feats, n_feats), "b2a": bias(ks[5], n_feats),
        "w2b": w(ks[6], n_feats, n_feats), "b2b": bias(ks[7], n_feats),
        "wr": w(ks[8], n_feats, n_outputs), "br": bias(ks[9], n_outputs),
    }


# -------------------- pure-JAX reference for verification --------------------
def _conv_ref(x_nchw, w_hwio, b, compute_dtype):
    y = lax.conv_general_dilated(
        x_nchw.astype(compute_dtype), w_hwio.astype(compute_dtype),
        window_strides=(1, 1), padding="SAME",
        dimension_numbers=("NCHW", "HWIO", "NCHW"),
        preferred_element_type=jnp.float32,
        precision=lax.Precision.HIGHEST)
    return y + b.reshape(1, -1, 1, 1)


def _forward_ref(x, p, compute_dtype=jnp.float32):
    conv = lambda h, w, b: _conv_ref(h, w, b, compute_dtype)
    h = x
    h = h + conv(jnp.maximum(conv(h, p["w1a"], p["b1a"]), 0.0), p["w1b"], p["b1b"])
    h = h + conv(jnp.maximum(conv(h, p["w2a"], p["b2a"]), 0.0), p["w2b"], p["b2b"])
    return conv(x + h, p["wr"], p["br"])


if __name__ == "__main__":
    # Small shapes consistent with the module: batch=2, n_feats=32 channels,
    # 16x16 spatial, n_outputs=3.  NCHW, like PyTorch.
    N, C, H, W = 2, 32, 16, 16
    N_OUT = 3

    key = jax.random.PRNGKey(0)
    k_x, k_p = jax.random.split(key)
    x = jax.random.normal(k_x, (N, C, H, W), jnp.float32)
    params = init_params(k_p, n_feats=C, n_outputs=N_OUT)

    # Default path: bf16 MXU operands, f32 accumulation (MXU-native everywhere).
    fwd_bf16 = jax.jit(functools.partial(masked_res_recon,
                                         compute_dtype=jnp.bfloat16))
    y_bf16 = jax.block_until_ready(fwd_bf16(x, params))
    ref_bf16 = jax.block_until_ready(_forward_ref(x, params, jnp.bfloat16))
    assert y_bf16.shape == (N, N_OUT, H, W), y_bf16.shape
    assert jnp.allclose(y_bf16, ref_bf16, atol=1e-2, rtol=1e-2), \
        float(jnp.max(jnp.abs(y_bf16 - ref_bf16)))

    # f32-operand path: exact PyTorch float32 semantics (validation only).
    fwd_f32 = jax.jit(functools.partial(masked_res_recon,
                                        compute_dtype=jnp.float32))
    y_f32 = jax.block_until_ready(fwd_f32(x, params))
    ref_f32 = jax.block_until_ready(_forward_ref(x, params, jnp.float32))
    assert y_f32.shape == (N, N_OUT, H, W), y_f32.shape
    assert jnp.allclose(y_f32, ref_f32, atol=2e-3, rtol=2e-3), \
        float(jnp.max(jnp.abs(y_f32 - ref_f32)))

    print("KERNEL_OK")
</pallas_src>

<mosaic_0001>
module attributes {stable_mosaic.version = 11 : i64} {
  func.func @_fused_kernel(%arg0: i32, %arg1: memref<1x32x384xf32, #tpu.memory_space<vmem>>, %arg2: memref<4x3x32x96xbf16, #tpu.memory_space<vmem>>, %arg3: memref<4x32x1xf32, #tpu.memory_space<vmem>>, %arg4: memref<3x8x96xbf16, #tpu.memory_space<vmem>>, %arg5: memref<8x1xf32, #tpu.memory_space<vmem>>, %arg6: memref<1x384xf32, #tpu.memory_space<vmem>>, %arg7: memref<1x8x384xf32, #tpu.memory_space<vmem>>) attributes {dimension_semantics = [#tpu.dimension_semantics<parallel>], iteration_bounds = array<i64: 2>, scalar_prefetch = 0 : i64, scratch_operands = 0 : i64, tpu.core_type = #tpu.core_type<tc>, window_params = [{transform_indices = @transform_0, window_bounds = array<i64: 1, 32, 384>}, {pipeline_mode = #tpu.pipeline_mode<synchronous>, transform_indices = @transform_1, window_bounds = array<i64: 4, 3, 32, 96>}, {pipeline_mode = #tpu.pipeline_mode<synchronous>, transform_indices = @transform_2, window_bounds = array<i64: 4, 32, 1>}, {pipeline_mode = #tpu.pipeline_mode<synchronous>, transform_indices = @transform_3, window_bounds = array<i64: 3, 8, 96>}, {pipeline_mode = #tpu.pipeline_mode<synchronous>, transform_indices = @transform_4, window_bounds = array<i64: 8, 1>}, {pipeline_mode = #tpu.pipeline_mode<synchronous>, transform_indices = @transform_5, window_bounds = array<i64: 1, 384>}, {transform_indices = @transform_6, window_bounds = array<i64: 1, 8, 384>}]} {
    %c0 = arith.constant 0 : index
    %c0_0 = arith.constant 0 : index
    %0 = vector.load %arg6[%c0, %c0_0] : memref<1x384xf32, #tpu.memory_space<vmem>>, vector<1x384xf32>
    %1 = vector.shape_cast %0 : vector<1x384xf32> to vector<1x384xf32>
    %2 = vector.broadcast %1 : vector<1x384xf32> to vector<32x384xf32>
    %c0_1 = arith.constant 0 : index
    %c0_2 = arith.constant 0 : index
    %c0_3 = arith.constant 0 : index
    %3 = vector.load %arg1[%c0_1, %c0_2, %c0_3] : memref<1x32x384xf32, #tpu.memory_space<vmem>>, vector<1x32x384xf32>
    %4 = vector.shape_cast %3 : vector<1x32x384xf32> to vector<32x384xf32>
    %c0_4 = arith.constant 0 : index
    %c0_5 = arith.constant 0 : index
    %c0_6 = arith.constant 0 : index
    %5 = vector.load %arg3[%c0_4, %c0_5, %c0_6] : memref<4x32x1xf32, #tpu.memory_space<vmem>>, vector<1x32x1xf32>
    %6 = vector.shape_cast %5 : vector<1x32x1xf32> to vector<32x1xf32>
    %c19_i32 = arith.constant 19 : i32
    %7 = tpu.dynamic_rotate %4 by %c19_i32 dim 1 : vector<32x384xf32>, i32 -> vector<32x384xf32>
    %8 = arith.truncf %7 : vector<32x384xf32> to vector<32x384xbf16>
    %c18_i32 = arith.constant 18 : i32
    %9 = tpu.dynamic_rotate %4 by %c18_i32 dim 1 : vector<32x384xf32>, i32 -> vector<32x384xf32>
    %10 = arith.truncf %9 : vector<32x384xf32> to vector<32x384xbf16>
    %c17_i32 = arith.constant 17 : i32
    %11 = tpu.dynamic_rotate %4 by %c17_i32 dim 1 : vector<32x384xf32>, i32 -> vector<32x384xf32>
    %12 = arith.truncf %11 : vector<32x384xf32> to vector<32x384xbf16>
    %13 = tpu.concatenate %8, %10, %12 in 0 : vector<32x384xbf16>, vector<32x384xbf16>, vector<32x384xbf16> -> vector<96x384xbf16>
    %c0_7 = arith.constant 0 : index
    %c0_8 = arith.constant 0 : index
    %c0_9 = arith.constant 0 : index
    %c0_10 = arith.constant 0 : index
    %14 = vector.load %arg2[%c0_7, %c0_8, %c0_9, %c0_10] : memref<4x3x32x96xbf16, #tpu.memory_space<vmem>>, vector<1x1x32x96xbf16>
    %15 = vector.shape_cast %14 : vector<1x1x32x96xbf16> to vector<32x96xbf16>
    %cst = arith.constant dense<0.000000e+00> : vector<32x384xf32>
    %16 = tpu.matmul %15, %13, %cst {dimension_numbers = #tpu.dot_dimension_numbers<[1], [0], [0], [1], [0, 0, 1, 1], [], []>} : vector<32x96xbf16>, vector<96x384xbf16>, vector<32x384xf32> -> vector<32x384xf32>
    %c1_i32 = arith.constant 1 : i32
    %17 = tpu.dynamic_rotate %4 by %c1_i32 dim 1 : vector<32x384xf32>, i32 -> vector<32x384xf32>
    %18 = arith.truncf %17 : vector<32x384xf32> to vector<32x384xbf16>
    %19 = arith.truncf %4 : vector<32x384xf32> to vector<32x384xbf16>
    %c383_i32 = arith.constant 383 : i32
    %20 = tpu.dynamic_rotate %4 by %c383_i32 dim 1 : vector<32x384xf32>, i32 -> vector<32x384xf32>
    %21 = arith.truncf %20 : vector<32x384xf32> to vector<32x384xbf16>
    %22 = tpu.concatenate %18, %19, %21 in 0 : vector<32x384xbf16>, vector<32x384xbf16>, vector<32x384xbf16> -> vector<96x384xbf16>
    %c0_11 = arith.constant 0 : index
    %c1 = arith.constant 1 : index
    %c0_12 = arith.constant 0 : index
    %c0_13 = arith.constant 0 : index
    %23 = vector.load %arg2[%c0_11, %c1, %c0_12, %c0_13] : memref<4x3x32x96xbf16, #tpu.memory_space<vmem>>, vector<1x1x32x96xbf16>
    %24 = vector.shape_cast %23 : vector<1x1x32x96xbf16> to vector<32x96xbf16>
    %cst_14 = arith.constant dense<0.000000e+00> : vector<32x384xf32>
    %25 = tpu.matmul %24, %22, %cst_14 {dimension_numbers = #tpu.dot_dimension_numbers<[1], [0], [0], [1], [0, 0, 1, 1], [], []>} : vector<32x96xbf16>, vector<96x384xbf16>, vector<32x384xf32> -> vector<32x384xf32>
    %26 = arith.addf %16, %25 : vector<32x384xf32>
    %c367_i32 = arith.constant 367 : i32
    %27 = tpu.dynamic_rotate %4 by %c367_i32 dim 1 : vector<32x384xf32>, i32 -> vector<32x384xf32>
    %28 = arith.truncf %27 : vector<32x384xf32> to vector<32x384xbf16>
    %c366_i32 = arith.constant 366 : i32
    %29 = tpu.dynamic_rotate %4 by %c366_i32 dim 1 : vector<32x384xf32>, i32 -> vector<32x384xf32>
    %30 = arith.truncf %29 : vector<32x384xf32> to vector<32x384xbf16>
    %c365_i32 = arith.constant 365 : i32
    %31 = tpu.dynamic_rotate %4 by %c365_i32 dim 1 : vector<32x384xf32>, i32 -> vector<32x384xf32>
    %32 = arith.truncf %31 : vector<32x384xf32> to vector<32x384xbf16>
    %33 = tpu.concatenate %28, %30, %32 in 0 : vector<32x384xbf16>, vector<32x384xbf16>, vector<32x384xbf16> -> vector<96x384xbf16>
    %c0_15 = arith.constant 0 : index
    %c2 = arith.constant 2 : index
    %c0_16 = arith.constant 0 : index
    %c0_17 = arith.constant 0 : index
    %34 = vector.load %arg2[%c0_15, %c2, %c0_16, %c0_17] : memref<4x3x32x96xbf16, #tpu.memory_space<vmem>>, vector<1x1x32x96xbf16>
    %35 = vector.shape_cast %34 : vector<1x1x32x96xbf16> to vector<32x96xbf16>
    %cst_18 = arith.constant dense<0.000000e+00> : vector<32x384xf32>
    %36 = tpu.matmul %35, %33, %cst_18 {dimension_numbers = #tpu.dot_dimension_numbers<[1], [0], [0], [1], [0, 0, 1, 1], [], []>} : vector<32x96xbf16>, vector<96x384xbf16>, vector<32x384xf32> -> vector<32x384xf32>
    %37 = arith.addf %26, %36 : vector<32x384xf32>
    %38 = vector.broadcast %6 : vector<32x1xf32> to vector<32x384xf32>
    %39 = arith.addf %37, %38 : vector<32x384xf32>
    %cst_19 = arith.constant 0.000000e+00 : f32
    %40 = vector.broadcast %cst_19 : f32 to vector<32x384xf32>
    %41 = arith.maximumf %39, %40 : vector<32x384xf32>
    %42 = arith.mulf %41, %2 : vector<32x384xf32>
    %c1_20 = arith.constant 1 : index
    %c0_21 = arith.constant 0 : index
    %c0_22 = arith.constant 0 : index
    %43 = vector.load %arg3[%c1_20, %c0_21, %c0_22] : memref<4x32x1xf32, #tpu.memory_space<vmem>>, vector<1x32x1xf32>
    %44 = vector.shape_cast %43 : vector<1x32x1xf32> to vector<32x1xf32>
    %c19_i32_23 = arith.constant 19 : i32
    %45 = tpu.dynamic_rotate %42 by %c19_i32_23 dim 1 : vector<32x384xf32>, i32 -> vector<32x384xf32>
    %46 = arith.truncf %45 : vector<32x384xf32> to vector<32x384xbf16>
    %c18_i32_24 = arith.constant 18 : i32
    %47 = tpu.dynamic_rotate %42 by %c18_i32_24 dim 1 : vector<32x384xf32>, i32 -> vector<32x384xf32>
    %48 = arith.truncf %47 : vector<32x384xf32> to vector<32x384xbf16>
    %c17_i32_25 = arith.constant 17 : i32
    %49 = tpu.dynamic_rotate %42 by %c17_i32_25 dim 1 : vector<32x384xf32>, i32 -> vector<32x384xf32>
    %50 = arith.truncf %49 : vector<32x384xf32> to vector<32x384xbf16>
    %51 = tpu.concatenate %46, %48, %50 in 0 : vector<32x384xbf16>, vector<32x384xbf16>, vector<32x384xbf16> -> vector<96x384xbf16>
    %c1_26 = arith.constant 1 : index
    %c0_27 = arith.constant 0 : index
    %c0_28 = arith.constant 0 : index
    %c0_29 = arith.constant 0 : index
    %52 = vector.load %arg2[%c1_26, %c0_27, %c0_28, %c0_29] : memref<4x3x32x96xbf16, #tpu.memory_space<vmem>>, vector<1x1x32x96xbf16>
    %53 = vector.shape_cast %52 : vector<1x1x32x96xbf16> to vector<32x96xbf16>
    %cst_30 = arith.constant dense<0.000000e+00> : vector<32x384xf32>
    %54 = tpu.matmul %53, %51, %cst_30 {dimension_numbers = #tpu.dot_dimension_numbers<[1], [0], [0], [1], [0, 0, 1, 1], [], []>} : vector<32x96xbf16>, vector<96x384xbf16>, vector<32x384xf32> -> vector<32x384xf32>
    %c1_i32_31 = arith.constant 1 : i32
    %55 = tpu.dynamic_rotate %42 by %c1_i32_31 dim 1 : vector<32x384xf32>, i32 -> vector<32x384xf32>
    %56 = arith.truncf %55 : vector<32x384xf32> to vector<32x384xbf16>
    %57 = arith.truncf %42 : vector<32x384xf32> to vector<32x384xbf16>
    %c383_i32_32 = arith.constant 383 : i32
    %58 = tpu.dynamic_rotate %42 by %c383_i32_32 dim 1 : vector<32x384xf32>, i32 -> vector<32x384xf32>
    %59 = arith.truncf %58 : vector<32x384xf32> to vector<32x384xbf16>
    %60 = tpu.concatenate %56, %57, %59 in 0 : vector<32x384xbf16>, vector<32x384xbf16>, vector<32x384xbf16> -> vector<96x384xbf16>
    %c1_33 = arith.constant 1 : index
    %c1_34 = arith.constant 1 : index
    %c0_35 = arith.constant 0 : index
    %c0_36 = arith.constant 0 : index
    %61 = vector.load %arg2[%c1_33, %c1_34, %c0_35, %c0_36] : memref<4x3x32x96xbf16, #tpu.memory_space<vmem>>, vector<1x1x32x96xbf16>
    %62 = vector.shape_cast %61 : vector<1x1x32x96xbf16> to vector<32x96xbf16>
    %cst_37 = arith.constant dense<0.000000e+00> : vector<32x384xf32>
    %63 = tpu.matmul %62, %60, %cst_37 {dimension_numbers = #tpu.dot_dimension_numbers<[1], [0], [0], [1], [0, 0, 1, 1], [], []>} : vector<32x96xbf16>, vector<96x384xbf16>, vector<32x384xf32> -> vector<32x384xf32>
    %64 = arith.addf %54, %63 : vector<32x384xf32>
    %c367_i32_38 = arith.constant 367 : i32
    %65 = tpu.dynamic_rotate %42 by %c367_i32_38 dim 1 : vector<32x384xf32>, i32 -> vector<32x384xf32>
    %66 = arith.truncf %65 : vector<32x384xf32> to vector<32x384xbf16>
    %c366_i32_39 = arith.constant 366 : i32
    %67 = tpu.dynamic_rotate %42 by %c366_i32_39 dim 1 : vector<32x384xf32>, i32 -> vector<32x384xf32>
    %68 = arith.truncf %67 : vector<32x384xf32> to vector<32x384xbf16>
    %c365_i32_40 = arith.constant 365 : i32
    %69 = tpu.dynamic_rotate %42 by %c365_i32_40 dim 1 : vector<32x384xf32>, i32 -> vector<32x384xf32>
    %70 = arith.truncf %69 : vector<32x384xf32> to vector<32x384xbf16>
    %71 = tpu.concatenate %66, %68, %70 in 0 : vector<32x384xbf16>, vector<32x384xbf16>, vector<32x384xbf16> -> vector<96x384xbf16>
    %c1_41 = arith.constant 1 : index
    %c2_42 = arith.constant 2 : index
    %c0_43 = arith.constant 0 : index
    %c0_44 = arith.constant 0 : index
    %72 = vector.load %arg2[%c1_41, %c2_42, %c0_43, %c0_44] : memref<4x3x32x96xbf16, #tpu.memory_space<vmem>>, vector<1x1x32x96xbf16>
    %73 = vector.shape_cast %72 : vector<1x1x32x96xbf16> to vector<32x96xbf16>
    %cst_45 = arith.constant dense<0.000000e+00> : vector<32x384xf32>
    %74 = tpu.matmul %73, %71, %cst_45 {dimension_numbers = #tpu.dot_dimension_numbers<[1], [0], [0], [1], [0, 0, 1, 1], [], []>} : vector<32x96xbf16>, vector<96x384xbf16>, vector<32x384xf32> -> vector<32x384xf32>
    %75 = arith.addf %64, %74 : vector<32x384xf32>
    %76 = vector.broadcast %44 : vector<32x1xf32> to vector<32x384xf32>
    %77 = arith.addf %75, %76 : vector<32x384xf32>
    %78 = arith.mulf %77, %2 : vector<32x384xf32>
    %79 = arith.addf %4, %78 : vector<32x384xf32>
    %c2_46 = arith.constant 2 : index
    %c0_47 = arith.constant 0 : index
    %c0_48 = arith.constant 0 : index
    %80 = vector.load %arg3[%c2_46, %c0_47, %c0_48] : memref<4x32x1xf32, #tpu.memory_space<vmem>>, vector<1x32x1xf32>
    %81 = vector.shape_cast %80 : vector<1x32x1xf32> to vector<32x1xf32>
    %c19_i32_49 = arith.constant 19 : i32
    %82 = tpu.dynamic_rotate %79 by %c19_i32_49 dim 1 : vector<32x384xf32>, i32 -> vector<32x384xf32>
    %83 = arith.truncf %82 : vector<32x384xf32> to vector<32x384xbf16>
    %c18_i32_50 = arith.constant 18 : i32
    %84 = tpu.dynamic_rotate %79 by %c18_i32_50 dim 1 : vector<32x384xf32>, i32 -> vector<32x384xf32>
    %85 = arith.truncf %84 : vector<32x384xf32> to vector<32x384xbf16>
    %c17_i32_51 = arith.constant 17 : i32
    %86 = tpu.dynamic_rotate %79 by %c17_i32_51 dim 1 : vector<32x384xf32>, i32 -> vector<32x384xf32>
    %87 = arith.truncf %86 : vector<32x384xf32> to vector<32x384xbf16>
    %88 = tpu.concatenate %83, %85, %87 in 0 : vector<32x384xbf16>, vector<32x384xbf16>, vector<32x384xbf16> -> vector<96x384xbf16>
    %c2_52 = arith.constant 2 : index
    %c0_53 = arith.constant 0 : index
    %c0_54 = arith.constant 0 : index
    %c0_55 = arith.constant 0 : index
    %89 = vector.load %arg2[%c2_52, %c0_53, %c0_54, %c0_55] : memref<4x3x32x96xbf16, #tpu.memory_space<vmem>>, vector<1x1x32x96xbf16>
    %90 = vector.shape_cast %89 : vector<1x1x32x96xbf16> to vector<32x96xbf16>
    %cst_56 = arith.constant dense<0.000000e+00> : vector<32x384xf32>
    %91 = tpu.matmul %90, %88, %cst_56 {dimension_numbers = #tpu.dot_dimension_numbers<[1], [0], [0], [1], [0, 0, 1, 1], [], []>} : vector<32x96xbf16>, vector<96x384xbf16>, vector<32x384xf32> -> vector<32x384xf32>
    %c1_i32_57 = arith.constant 1 : i32
    %92 = tpu.dynamic_rotate %79 by %c1_i32_57 dim 1 : vector<32x384xf32>, i32 -> vector<32x384xf32>
    %93 = arith.truncf %92 : vector<32x384xf32> to vector<32x384xbf16>
    %94 = arith.truncf %79 : vector<32x384xf32> to vector<32x384xbf16>
    %c383_i32_58 = arith.constant 383 : i32
    %95 = tpu.dynamic_rotate %79 by %c383_i32_58 dim 1 : vector<32x384xf32>, i32 -> vector<32x384xf32>
    %96 = arith.truncf %95 : vector<32x384xf32> to vector<32x384xbf16>
    %97 = tpu.concatenate %93, %94, %96 in 0 : vector<32x384xbf16>, vector<32x384xbf16>, vector<32x384xbf16> -> vector<96x384xbf16>
    %c2_59 = arith.constant 2 : index
    %c1_60 = arith.constant 1 : index
    %c0_61 = arith.constant 0 : index
    %c0_62 = arith.constant 0 : index
    %98 = vector.load %arg2[%c2_59, %c1_60, %c0_61, %c0_62] : memref<4x3x32x96xbf16, #tpu.memory_space<vmem>>, vector<1x1x32x96xbf16>
    %99 = vector.shape_cast %98 : vector<1x1x32x96xbf16> to vector<32x96xbf16>
    %cst_63 = arith.constant dense<0.000000e+00> : vector<32x384xf32>
    %100 = tpu.matmul %99, %97, %cst_63 {dimension_numbers = #tpu.dot_dimension_numbers<[1], [0], [0], [1], [0, 0, 1, 1], [], []>} : vector<32x96xbf16>, vector<96x384xbf16>, vector<32x384xf32> -> vector<32x384xf32>
    %101 = arith.addf %91, %100 : vector<32x384xf32>
    %c367_i32_64 = arith.constant 367 : i32
    %102 = tpu.dynamic_rotate %79 by %c367_i32_64 dim 1 : vector<32x384xf32>, i32 -> vector<32x384xf32>
    %103 = arith.truncf %102 : vector<32x384xf32> to vector<32x384xbf16>
    %c366_i32_65 = arith.constant 366 : i32
    %104 = tpu.dynamic_rotate %79 by %c366_i32_65 dim 1 : vector<32x384xf32>, i32 -> vector<32x384xf32>
    %105 = arith.truncf %104 : vector<32x384xf32> to vector<32x384xbf16>
    %c365_i32_66 = arith.constant 365 : i32
    %106 = tpu.dynamic_rotate %79 by %c365_i32_66 dim 1 : vector<32x384xf32>, i32 -> vector<32x384xf32>
    %107 = arith.truncf %106 : vector<32x384xf32> to vector<32x384xbf16>
    %108 = tpu.concatenate %103, %105, %107 in 0 : vector<32x384xbf16>, vector<32x384xbf16>, vector<32x384xbf16> -> vector<96x384xbf16>
    %c2_67 = arith.constant 2 : index
    %c2_68 = arith.constant 2 : index
    %c0_69 = arith.constant 0 : index
    %c0_70 = arith.constant 0 : index
    %109 = vector.load %arg2[%c2_67, %c2_68, %c0_69, %c0_70] : memref<4x3x32x96xbf16, #tpu.memory_space<vmem>>, vector<1x1x32x96xbf16>
    %110 = vector.shape_cast %109 : vector<1x1x32x96xbf16> to vector<32x96xbf16>
    %cst_71 = arith.constant dense<0.000000e+00> : vector<32x384xf32>
    %111 = tpu.matmul %110, %108, %cst_71 {dimension_numbers = #tpu.dot_dimension_numbers<[1], [0], [0], [1], [0, 0, 1, 1], [], []>} : vector<32x96xbf16>, vector<96x384xbf16>, vector<32x384xf32> -> vector<32x384xf32>
    %112 = arith.addf %101, %111 : vector<32x384xf32>
    %113 = vector.broadcast %81 : vector<32x1xf32> to vector<32x384xf32>
    %114 = arith.addf %112, %113 : vector<32x384xf32>
    %cst_72 = arith.constant 0.000000e+00 : f32
    %115 = vector.broadcast %cst_72 : f32 to vector<32x384xf32>
    %116 = arith.maximumf %114, %115 : vector<32x384xf32>
    %117 = arith.mulf %116, %2 : vector<32x384xf32>
    %c3 = arith.constant 3 : index
    %c0_73 = arith.constant 0 : index
    %c0_74 = arith.constant 0 : index
    %118 = vector.load %arg3[%c3, %c0_73, %c0_74] : memref<4x32x1xf32, #tpu.memory_space<vmem>>, vector<1x32x1xf32>
    %119 = vector.shape_cast %118 : vector<1x32x1xf32> to vector<32x1xf32>
    %c19_i32_75 = arith.constant 19 : i32
    %120 = tpu.dynamic_rotate %117 by %c19_i32_75 dim 1 : vector<32x384xf32>, i32 -> vector<32x384xf32>
    %121 = arith.truncf %120 : vector<32x384xf32> to vector<32x384xbf16>
    %c18_i32_76 = arith.constant 18 : i32
    %122 = tpu.dynamic_rotate %117 by %c18_i32_76 dim 1 : vector<32x384xf32>, i32 -> vector<32x384xf32>
    %123 = arith.truncf %122 : vector<32x384xf32> to vector<32x384xbf16>
    %c17_i32_77 = arith.constant 17 : i32
    %124 = tpu.dynamic_rotate %117 by %c17_i32_77 dim 1 : vector<32x384xf32>, i32 -> vector<32x384xf32>
    %125 = arith.truncf %124 : vector<32x384xf32> to vector<32x384xbf16>
    %126 = tpu.concatenate %121, %123, %125 in 0 : vector<32x384xbf16>, vector<32x384xbf16>, vector<32x384xbf16> -> vector<96x384xbf16>
    %c3_78 = arith.constant 3 : index
    %c0_79 = arith.constant 0 : index
    %c0_80 = arith.constant 0 : index
    %c0_81 = arith.constant 0 : index
    %127 = vector.load %arg2[%c3_78, %c0_79, %c0_80, %c0_81] : memref<4x3x32x96xbf16, #tpu.memory_space<vmem>>, vector<1x1x32x96xbf16>
    %128 = vector.shape_cast %127 : vector<1x1x32x96xbf16> to vector<32x96xbf16>
    %cst_82 = arith.constant dense<0.000000e+00> : vector<32x384xf32>
    %129 = tpu.matmul %128, %126, %cst_82 {dimension_numbers = #tpu.dot_dimension_numbers<[1], [0], [0], [1], [0, 0, 1, 1], [], []>} : vector<32x96xbf16>, vector<96x384xbf16>, vector<32x384xf32> -> vector<32x384xf32>
    %c1_i32_83 = arith.constant 1 : i32
    %130 = tpu.dynamic_rotate %117 by %c1_i32_83 dim 1 : vector<32x384xf32>, i32 -> vector<32x384xf32>
    %131 = arith.truncf %130 : vector<32x384xf32> to vector<32x384xbf16>
    %132 = arith.truncf %117 : vector<32x384xf32> to vector<32x384xbf16>
    %c383_i32_84 = arith.constant 383 : i32
    %133 = tpu.dynamic_rotate %117 by %c383_i32_84 dim 1 : vector<32x384xf32>, i32 -> vector<32x384xf32>
    %134 = arith.truncf %133 : vector<32x384xf32> to vector<32x384xbf16>
    %135 = tpu.concatenate %131, %132, %134 in 0 : vector<32x384xbf16>, vector<32x384xbf16>, vector<32x384xbf16> -> vector<96x384xbf16>
    %c3_85 = arith.constant 3 : index
    %c1_86 = arith.constant 1 : index
    %c0_87 = arith.constant 0 : index
    %c0_88 = arith.constant 0 : index
    %136 = vector.load %arg2[%c3_85, %c1_86, %c0_87, %c0_88] : memref<4x3x32x96xbf16, #tpu.memory_space<vmem>>, vector<1x1x32x96xbf16>
    %137 = vector.shape_cast %136 : vector<1x1x32x96xbf16> to vector<32x96xbf16>
    %cst_89 = arith.constant dense<0.000000e+00> : vector<32x384xf32>
    %138 = tpu.matmul %137, %135, %cst_89 {dimension_numbers = #tpu.dot_dimension_numbers<[1], [0], [0], [1], [0, 0, 1, 1], [], []>} : vector<32x96xbf16>, vector<96x384xbf16>, vector<32x384xf32> -> vector<32x384xf32>
    %139 = arith.addf %129, %138 : vector<32x384xf32>
    %c367_i32_90 = arith.constant 367 : i32
    %140 = tpu.dynamic_rotate %117 by %c367_i32_90 dim 1 : vector<32x384xf32>, i32 -> vector<32x384xf32>
    %141 = arith.truncf %140 : vector<32x384xf32> to vector<32x384xbf16>
    %c366_i32_91 = arith.constant 366 : i32
    %142 = tpu.dynamic_rotate %117 by %c366_i32_91 dim 1 : vector<32x384xf32>, i32 -> vector<32x384xf32>
    %143 = arith.truncf %142 : vector<32x384xf32> to vector<32x384xbf16>
    %c365_i32_92 = arith.constant 365 : i32
    %144 = tpu.dynamic_rotate %117 by %c365_i32_92 dim 1 : vector<32x384xf32>, i32 -> vector<32x384xf32>
    %145 = arith.truncf %144 : vector<32x384xf32> to vector<32x384xbf16>
    %146 = tpu.concatenate %141, %143, %145 in 0 : vector<32x384xbf16>, vector<32x384xbf16>, vector<32x384xbf16> -> vector<96x384xbf16>
    %c3_93 = arith.constant 3 : index
    %c2_94 = arith.constant 2 : index
    %c0_95 = arith.constant 0 : index
    %c0_96 = arith.constant 0 : index
    %147 = vector.load %arg2[%c3_93, %c2_94, %c0_95, %c0_96] : memref<4x3x32x96xbf16, #tpu.memory_space<vmem>>, vector<1x1x32x96xbf16>
    %148 = vector.shape_cast %147 : vector<1x1x32x96xbf16> to vector<32x96xbf16>
    %cst_97 = arith.constant dense<0.000000e+00> : vector<32x384xf32>
    %149 = tpu.matmul %148, %146, %cst_97 {dimension_numbers = #tpu.dot_dimension_numbers<[1], [0], [0], [1], [0, 0, 1, 1], [], []>} : vector<32x96xbf16>, vector<96x384xbf16>, vector<32x384xf32> -> vector<32x384xf32>
    %150 = arith.addf %139, %149 : vector<32x384xf32>
    %151 = vector.broadcast %119 : vector<32x1xf32> to vector<32x384xf32>
    %152 = arith.addf %150, %151 : vector<32x384xf32>
    %153 = arith.mulf %152, %2 : vector<32x384xf32>
    %154 = arith.addf %79, %153 : vector<32x384xf32>
    %155 = arith.addf %4, %154 : vector<32x384xf32>
    %c0_98 = arith.constant 0 : index
    %c0_99 = arith.constant 0 : index
    %156 = vector.load %arg5[%c0_98, %c0_99] : memref<8x1xf32, #tpu.memory_space<vmem>>, vector<8x1xf32>
    %c19_i32_100 = arith.constant 19 : i32
    %157 = tpu.dynamic_rotate %155 by %c19_i32_100 dim 1 : vector<32x384xf32>, i32 -> vector<32x384xf32>
    %158 = arith.truncf %157 : vector<32x384xf32> to vector<32x384xbf16>
    %c18_i32_101 = arith.constant 18 : i32
    %159 = tpu.dynamic_rotate %155 by %c18_i32_101 dim 1 : vector<32x384xf32>, i32 -> vector<32x384xf32>
    %160 = arith.truncf %159 : vector<32x384xf32> to vector<32x384xbf16>
    %c17_i32_102 = arith.constant 17 : i32
    %161 = tpu.dynamic_rotate %155 by %c17_i32_102 dim 1 : vector<32x384xf32>, i32 -> vector<32x384xf32>
    %162 = arith.truncf %161 : vector<32x384xf32> to vector<32x384xbf16>
    %163 = tpu.concatenate %158, %160, %162 in 0 : vector<32x384xbf16>, vector<32x384xbf16>, vector<32x384xbf16> -> vector<96x384xbf16>
    %c0_103 = arith.constant 0 : index
    %c0_104 = arith.constant 0 : index
    %c0_105 = arith.constant 0 : index
    %164 = vector.load %arg4[%c0_103, %c0_104, %c0_105] : memref<3x8x96xbf16, #tpu.memory_space<vmem>>, vector<1x8x96xbf16>
    %165 = vector.shape_cast %164 : vector<1x8x96xbf16> to vector<8x96xbf16>
    %cst_106 = arith.constant dense<0.000000e+00> : vector<8x384xf32>
    %166 = tpu.matmul %165, %163, %cst_106 {dimension_numbers = #tpu.dot_dimension_numbers<[1], [0], [0], [1], [0, 0, 1, 1], [], []>} : vector<8x96xbf16>, vector<96x384xbf16>, vector<8x384xf32> -> vector<8x384xf32>
    %c1_i32_107 = arith.constant 1 : i32
    %167 = tpu.dynamic_rotate %155 by %c1_i32_107 dim 1 : vector<32x384xf32>, i32 -> vector<32x384xf32>
    %168 = arith.truncf %167 : vector<32x384xf32> to vector<32x384xbf16>
    %169 = arith.truncf %155 : vector<32x384xf32> to vector<32x384xbf16>
    %c383_i32_108 = arith.constant 383 : i32
    %170 = tpu.dynamic_rotate %155 by %c383_i32_108 dim 1 : vector<32x384xf32>, i32 -> vector<32x384xf32>
    %171 = arith.truncf %170 : vector<32x384xf32> to vector<32x384xbf16>
    %172 = tpu.concatenate %168, %169, %171 in 0 : vector<32x384xbf16>, vector<32x384xbf16>, vector<32x384xbf16> -> vector<96x384xbf16>
    %c1_109 = arith.constant 1 : index
    %c0_110 = arith.constant 0 : index
    %c0_111 = arith.constant 0 : index
    %173 = vector.load %arg4[%c1_109, %c0_110, %c0_111] : memref<3x8x96xbf16, #tpu.memory_space<vmem>>, vector<1x8x96xbf16>
    %174 = vector.shape_cast %173 : vector<1x8x96xbf16> to vector<8x96xbf16>
    %cst_112 = arith.constant dense<0.000000e+00> : vector<8x384xf32>
    %175 = tpu.matmul %174, %172, %cst_112 {dimension_numbers = #tpu.dot_dimension_numbers<[1], [0], [0], [1], [0, 0, 1, 1], [], []>} : vector<8x96xbf16>, vector<96x384xbf16>, vector<8x384xf32> -> vector<8x384xf32>
    %176 = arith.addf %166, %175 : vector<8x384xf32>
    %c367_i32_113 = arith.constant 367 : i32
    %177 = tpu.dynamic_rotate %155 by %c367_i32_113 dim 1 : vector<32x384xf32>, i32 -> vector<32x384xf32>
    %178 = arith.truncf %177 : vector<32x384xf32> to vector<32x384xbf16>
    %c366_i32_114 = arith.constant 366 : i32
    %179 = tpu.dynamic_rotate %155 by %c366_i32_114 dim 1 : vector<32x384xf32>, i32 -> vector<32x384xf32>
    %180 = arith.truncf %179 : vector<32x384xf32> to vector<32x384xbf16>
    %c365_i32_115 = arith.constant 365 : i32
    %181 = tpu.dynamic_rotate %155 by %c365_i32_115 dim 1 : vector<32x384xf32>, i32 -> vector<32x384xf32>
    %182 = arith.truncf %181 : vector<32x384xf32> to vector<32x384xbf16>
    %183 = tpu.concatenate %178, %180, %182 in 0 : vector<32x384xbf16>, vector<32x384xbf16>, vector<32x384xbf16> -> vector<96x384xbf16>
    %c2_116 = arith.constant 2 : index
    %c0_117 = arith.constant 0 : index
    %c0_118 = arith.constant 0 : index
    %184 = vector.load %arg4[%c2_116, %c0_117, %c0_118] : memref<3x8x96xbf16, #tpu.memory_space<vmem>>, vector<1x8x96xbf16>
    %185 = vector.shape_cast %184 : vector<1x8x96xbf16> to vector<8x96xbf16>
    %cst_119 = arith.constant dense<0.000000e+00> : vector<8x384xf32>
    %186 = tpu.matmul %185, %183, %cst_119 {dimension_numbers = #tpu.dot_dimension_numbers<[1], [0], [0], [1], [0, 0, 1, 1], [], []>} : vector<8x96xbf16>, vector<96x384xbf16>, vector<8x384xf32> -> vector<8x384xf32>
    %187 = arith.addf %176, %186 : vector<8x384xf32>
    %188 = vector.broadcast %156 : vector<8x1xf32> to vector<8x384xf32>
    %189 = arith.addf %187, %188 : vector<8x384xf32>
    %190 = vector.broadcast %0 : vector<1x384xf32> to vector<8x384xf32>
    %191 = arith.mulf %189, %190 : vector<8x384xf32>
    %c0_120 = arith.constant 0 : index
    %c0_121 = arith.constant 0 : index
    %c0_122 = arith.constant 0 : index
    %192 = vector.load %arg7[%c0_120, %c0_121, %c0_122] : memref<1x8x384xf32, #tpu.memory_space<vmem>>, vector<1x8x384xf32>
    %193 = vector.shape_cast %192 : vector<1x8x384xf32> to vector<8x384xf32>
    %194 = vector.shape_cast %191 : vector<8x384xf32> to vector<1x8x384xf32>
    tpu.vector_store %arg7[%c0_120, %c0_121, %c0_122], %194 {strides = array<i32>} : memref<1x8x384xf32, #tpu.memory_space<vmem>>, vector<1x8x384xf32>,
    return
  }
  func.func @transform_0(%arg0: i32) -> (i32, i32, i32) {
    %c0_i32 = arith.constant 0 : i32
    %c0_i32_0 = arith.constant 0 : i32
    %c0_i32_1 = arith.constant 0 : i32
    return %arg0, %c0_i32, %c0_i32_0 : i32, i32, i32
  }
  func.func @transform_1(%arg0: i32) -> (i32, i32, i32, i32) {
    %c0_i32 = arith.constant 0 : i32
    %c0_i32_0 = arith.constant 0 : i32
    %c0_i32_1 = arith.constant 0 : i32
    %c0_i32_2 = arith.constant 0 : i32
    %c0_i32_3 = arith.constant 0 : i32
    return %c0_i32, %c0_i32_0, %c0_i32_1, %c0_i32_2 : i32, i32, i32, i32
  }
  func.func @transform_2(%arg0: i32) -> (i32, i32, i32) {
    %c0_i32 = arith.constant 0 : i32
    %c0_i32_0 = arith.constant 0 : i32
    %c0_i32_1 = arith.constant 0 : i32
    %c0_i32_2 = arith.constant 0 : i32
    return %c0_i32, %c0_i32_0, %c0_i32_1 : i32, i32, i32
  }
  func.func @transform_3(%arg0: i32) -> (i32, i32, i32) {
    %c0_i32 = arith.constant 0 : i32
    %c0_i32_0 = arith.constant 0 : i32
    %c0_i32_1 = arith.constant 0 : i32
    %c0_i32_2 = arith.constant 0 : i32
    return %c0_i32, %c0_i32_0, %c0_i32_1 : i32, i32, i32
  }
  func.func @transform_4(%arg0: i32) -> (i32, i32) {
    %c0_i32 = arith.constant 0 : i32
    %c0_i32_0 = arith.constant 0 : i32
    %c0_i32_1 = arith.constant 0 : i32
    return %c0_i32, %c0_i32_0 : i32, i32
  }
  func.func @transform_5(%arg0: i32) -> (i32, i32) {
    %c0_i32 = arith.constant 0 : i32
    %c0_i32_0 = arith.constant 0 : i32
    %c0_i32_1 = arith.constant 0 : i32
    return %c0_i32, %c0_i32_0 : i32, i32
  }
  func.func @transform_6(%arg0: i32) -> (i32, i32, i32) {
    %c0_i32 = arith.constant 0 : i32
    %c0_i32_0 = arith.constant 0 : i32
    %c0_i32_1 = arith.constant 0 : i32
    return %arg0, %c0_i32, %c0_i32_0 : i32, i32, i32
  }
}

</mosaic_0001>

<bundles_post_ra>
// kernel: masked_res_recon.1
= control target key start
LH: loop header
LB: loop body
LE: loop exit
PB: predicated region body
PF: predicated region fallthrough
CT: control target
= control target key end

     0   :  { %s6034_s21 = smov 0   ;;  %s8507_s0 = inlined_call_operand.vmem [shape: f32[2,32,384], index: 0, kind: input, shape index: {}]   ;;  %s8508_s1 = inlined_call_operand.vmem [shape: bf16[4,3,32,96], index: 1, kind: input, shape index: {}]   ;;  %s8509_s2 = inlined_call_operand.vmem [shape: f32[4,32,1], index: 2, kind: input, shape index: {}]   ;;  %s8510_s3 = inlined_call_operand.vmem [shape: bf16[3,8,96], index: 3, kind: input, shape index: {}]   ;;  %s8511_s4 = inlined_call_operand.vmem [shape: f32[8,1], index: 4, kind: input, shape index: {}]   ;;  %s8512_s5 = inlined_call_operand.vmem [shape: f32[1,384], index: 5, kind: input, shape index: {}]   ;;  %s8513_s6 = inlined_call_operand.vmem [shape: f32[2,8,384], index: 6, kind: output, shape index: {}]  }
   0x1 LB: > { %s4111_s22 = sadd.s32 4294967295, %s5986_s21   ;;  %p4115_p0 = scmp.ge.s32.totalorder %s5986_s21, 1  ;;  %s5986_s21 = sphi %s6034_s21, %s16_s21  }
   0x2   : > { %p212_p1 = scmp.lt.s32.totalorder %s5986_s21, 3 }
   0x4   : > { %p213_p2 = pnand %p4115_p0, %p212_p1 }
   0x5   : > { %p242_p3 = scmp.lt.s32.totalorder (!%p213_p2), %s4111_s22, 1  ;;  %s5988_s27 = smov (!%p213_p2), 1   ;;  %v6124_v18 = vld [vmem:[%s8508_s1 + $0x10] sm:$0xff] (!%p213_p2)   ;;  %vm528_vm0 = vcmask (!%p213_p2), 785408   ;;  %v5990_v19 = vmov (!%p213_p2), 0   ;;  %v283_v20 = vld [vmem:[%s8509_s2 + $0x8] sm:$0xff] (!%p213_p2)  ;;  %v255_v24 = vlaneseq (!%p213_p2) }
   0x6   : > { %216 = sbr.rel (%p213_p2) target bundleno = 2213 (0x8a5), region = 44  ;;  %s5989_s28 = smov (!%p213_p2), 127   ;;  %567 = vmatprep.mubr.bf16.mxu0 (!%p213_p2), %v5990_v19  ;;  %4385 = vmatprep.mubr.msk.bf16.mxu1 (!%p213_p2), %vm528_vm0, %v6124_v18  ;;  %v282_v21 = vld [vmem:[%s8509_s2] sm:$0xff] (!%p213_p2)  ;;  %v284_v22 = vld [vmem:[%s8509_s2 + $0x10] sm:$0xff] (!%p213_p2)  ;;  %v285_v23 = vld [vmem:[%s8509_s2 + $0x18] sm:$0xff] (!%p213_p2)  ;;  %vm5998_vm9 = vmmov (!%p213_p2), 0  }
   0x7   : > { %4971 = vset.pattern.permute.xlu1 (!%p213_p2), %v5990_v19  ;;  %4970 = vset.pattern.permute.xlu0 (!%p213_p2), %v5990_v19  ;;  %s5991_s7 = smov (!%p213_p2), 19   ;;  %s5992_s8 = smov (!%p213_p2), 18   ;;  %v6199_v26 = vand.u32 (!%p213_p2), 127, %v255_v24 }
   0x8   : > { %s5993_s9 = smov (!%p213_p2), 17   ;;  %s5994_s10 = smov (!%p213_p2), 111  }
   0x9   : > { %s5995_s11 = smov (!%p213_p2), 110   ;;  %s5996_s12 = smov (!%p213_p2), 109   ;;  %vm445_vm1 = vcmp.lt.s32.totalorder (!%p213_p2), %v6199_v26, 1  ;;  %vm494_vm2 = vcmp.lt.s32.totalorder (!%p213_p2), %v6199_v26, 127  ;;  %vm312_vm3 = vcmp.lt.s32.totalorder (!%p213_p2), %v6199_v26, 19  ;;  %vm355_vm4 = vcmp.lt.s32.totalorder (!%p213_p2), %v6199_v26, 18 }
   0xa   : > { %vm398_vm5 = vcmp.lt.s32.totalorder (!%p213_p2), %v6199_v26, 17  ;;  %vm779_vm6 = vcmp.lt.s32.totalorder (!%p213_p2), %v6199_v26, 111  ;;  %vm822_vm7 = vcmp.lt.s32.totalorder (!%p213_p2), %v6199_v26, 110  ;;  %vm865_vm8 = vcmp.lt.s32.totalorder (!%p213_p2), %v6199_v26, 109 }
   0xd   : > { %s8515_s22 = smov (!%p242_p3, %s4111_s22), 1 }
   0xe   : > { %s4709_s23 = smul.u32 96, %s8515_s22 }
  0x10   : > { %s6048_s26 = scalar_lea.vmem %s8507_s0, %s4709_s23 }
  0x11   : > { %v6051_v0 = vld [vmem:[%s6048_s26 + $0x10] sm:$0xff]  ;;  %v6054_v1 = vld [vmem:[%s6048_s26 + $0x28] sm:$0xff]  ;;  %v6057_v2 = vld [vmem:[%s6048_s26] sm:$0xff] }
  0x12   : > { %v6061_v3 = vpack.i.bf16 %v6054_v1, %v6051_v0  ;;  %v6064_v4 = vld [vmem:[%s6048_s26 + $0x18] sm:$0xff]  ;;  %v6067_v5 = vld [vmem:[%s6048_s26 + $0x30] sm:$0xff]  ;;  %v6070_v6 = vld [vmem:[%s6048_s26 + $0x48] sm:$0xff] }
  0x13   : > { %v6074_v7 = vpack.i.bf16 %v6064_v4, %v6057_v2  ;;  %v6077_v8 = vld [vmem:[%s6048_s26 + $0x8] sm:$0xff]  ;;  %v6080_v9 = vld [vmem:[%s6048_s26 + $0x20] sm:$0xff]  ;;  %v6089_v11 = vpack.i.bf16 %v6070_v6, %v6067_v5  ;;  %v6092_v12 = vld [vmem:[%s6048_s26 + $0x58] sm:$0xff] }
  0x14   : > { %v6083_v10 = vld [vmem:[%s6048_s26 + $0x40] sm:$0xff]  ;;  %4741 = vrot.lane.b32.xlu1 %v6061_v3, %s5988_s27  ;;  %v6095_v13 = vld [vmem:[%s6048_s26 + $0x38] sm:$0xff]  ;;  %v6098_v14 = vld [vmem:[%s6048_s26 + $0x50] sm:$0xff]  ;;  %v4735_v15 = vpack.i.bf16 %v6080_v9, %v6077_v8  ;;  %v465_v62 = vpack.c.bf16 %v6080_v9, %v6077_v8  ;;  %v467_v9 = vpack.c.bf16 %v6070_v6, %v6067_v5 }
  0x15   : > { %4731 = vrot.lane.b32.xlu0 %v6074_v7, %s5988_s27  ;;  %v4755_v16 = vpack.i.bf16 %v6092_v12, %v6083_v10  ;;  %v4750_v17 = vpack.i.bf16 %v6098_v14, %v6095_v13  ;;  %v468_v8 = vpack.c.bf16 %v6098_v14, %v6095_v13 }
  0x18   : > { %4746 = vrot.lane.b32.xlu1 %v6089_v11, %s5988_s27 }
  0x19   : > { %4736 = vrot.lane.b32.xlu0 %v4735_v15, %s5988_s27 }
  0x1c   : > { %4756 = vrot.lane.b32.xlu1 %v4755_v16, %s5988_s27 }
  0x1d   : > { %4751 = vrot.lane.b32.xlu0 %v4750_v17, %s5988_s27 }
  0x20   : > { %4766 = vrot.lane.b32.xlu1 %v6061_v3, %s5989_s28 }
  0x21   : > { %4761 = vrot.lane.b32.xlu0 %v4735_v15, %s5989_s28 }
  0x24   : > { %4776 = vrot.lane.b32.xlu1 %v4750_v17, %s5989_s28 }
  0x25   : > { %4771 = vrot.lane.b32.xlu0 %v6074_v7, %s5989_s28 }
  0x28   : > { %4786 = vrot.lane.b32.xlu1 %v6089_v11, %s5989_s28 }
  0x29   : > { %4781 = vrot.lane.b32.xlu0 %v4755_v16, %s5989_s28 }
  0x2c   : > { %4796 = vrot.lane.b32.xlu1 %v4735_v15, %s5991_s7 }
  0x2d   : > { %4791 = vrot.lane.b32.xlu0 %v6074_v7, %s5991_s7 }
  0x30   : > { %4806 = vrot.lane.b32.xlu1 %v6089_v11, %s5991_s7 }
  0x31   : > { %4801 = vrot.lane.b32.xlu0 %v6061_v3, %s5991_s7 }
  0x34   : > { %4816 = vrot.lane.b32.xlu1 %v4755_v16, %s5991_s7 }
  0x35   : > { %4811 = vrot.lane.b32.xlu0 %v4750_v17, %s5991_s7 }
  0x38   : > { %4826 = vrot.lane.b32.xlu1 %v4735_v15, %s5992_s8 }
  0x39   : > { %4821 = vrot.lane.b32.xlu0 %v6074_v7, %s5992_s8 }
  0x3c   : > { %4836 = vrot.lane.b32.xlu1 %v6089_v11, %s5992_s8 }
  0x3d   : > { %4831 = vrot.lane.b32.xlu0 %v6061_v3, %s5992_s8 }
  0x40   : > { %4846 = vrot.lane.b32.xlu1 %v4755_v16, %s5992_s8 }
  0x41   : > { %4841 = vrot.lane.b32.xlu0 %v4750_v17, %s5992_s8 }
  0x44   : > { %4856 = vrot.lane.b32.xlu1 %v4735_v15, %s5993_s9 }
  0x45   : > { %4851 = vrot.lane.b32.xlu0 %v6074_v7, %s5993_s9 }
  0x48   : > { %4866 = vrot.lane.b32.xlu1 %v6089_v11, %s5993_s9 }
  0x49   : > { %4861 = vrot.lane.b32.xlu0 %v6061_v3, %s5993_s9 }
  0x4c   : > { %4876 = vrot.lane.b32.xlu1 %v4755_v16, %s5993_s9 }
  0x4d   : > { %4871 = vrot.lane.b32.xlu0 %v4750_v17, %s5993_s9 }
  0x50   : > { %4886 = vrot.lane.b32.xlu1 %v6061_v3, %s5994_s10 }
  0x51   : > { %4881 = vrot.lane.b32.xlu0 %v4735_v15, %s5994_s10 }
  0x54   : > { %4896 = vrot.lane.b32.xlu1 %v4750_v17, %s5994_s10 }
  0x55   : > { %4891 = vrot.lane.b32.xlu0 %v6074_v7, %s5994_s10 }
  0x58   : > { %4906 = vrot.lane.b32.xlu1 %v6089_v11, %s5994_s10 }
  0x59   : > { %4901 = vrot.lane.b32.xlu0 %v4755_v16, %s5994_s10 }
  0x5c   : > { %4916 = vrot.lane.b32.xlu1 %v6061_v3, %s5995_s11 }
  0x5d   : > { %4911 = vrot.lane.b32.xlu0 %v4735_v15, %s5995_s11 }
  0x60   : > { %4926 = vrot.lane.b32.xlu1 %v4750_v17, %s5995_s11 }
  0x61   : > { %4921 = vrot.lane.b32.xlu0 %v6074_v7, %s5995_s11 }
  0x64   : > { %4936 = vrot.lane.b32.xlu1 %v6089_v11, %s5995_s11 }
  0x65   : > { %4931 = vrot.lane.b32.xlu0 %v4755_v16, %s5995_s11 }
  0x68   : > { %4946 = vrot.lane.b32.xlu1 %v6061_v3, %s5996_s12 }
  0x69   : > { %4941 = vrot.lane.b32.xlu0 %v4735_v15, %s5996_s12 }
  0x6c   : > { %4956 = vrot.lane.b32.xlu1 %v4750_v17, %s5996_s12 }
  0x6d   : > { %4951 = vrot.lane.b32.xlu0 %v6074_v7, %s5996_s12  ;;  %v466_v7 = vpack.c.bf16 %v6054_v1, %v6051_v0 }
  0x70   : > { %4966 = vrot.lane.b32.xlu1 %v6089_v11, %s5996_s12  ;;  %v464_v11 = vpack.c.bf16 %v6064_v4, %v6057_v2  ;;  %v469_v2 = vpack.c.bf16 %v6092_v12, %v6083_v10 }
  0x71   : > { %4961 = vrot.lane.b32.xlu0 %v4755_v16, %s5996_s12 }
  0x74   : > { %1026 = vperm.xlu1 %4971, %v283_v20  }
  0x75   : > { %1021 = vperm.xlu0 %4970, %v282_v21  }
  0x78   : > { %1031 = vperm.xlu1 %4971, %v284_v22  }
  0x79   : > { %1036 = vperm.xlu0 %4970, %v285_v23  }
  0x86   : > { %v4742_v25 = vpop.permute.xlu1 %4741 }
  0x87   : > { %v4732_v27 = vpop.permute.xlu0 %4731  ;;  %v4744_v28 = vunpack.i.h.bf16 %v4742_v25  ;;  %v4743_v29 = vunpack.i.l.bf16 %v4742_v25 }
  0x88   : > { %v4734_v30 = vunpack.i.h.bf16 %v4732_v27  ;;  %v4733_v31 = vunpack.i.l.bf16 %v4732_v27 }
  0x8a   : > { %v4747_v32 = vpop.permute.xlu1 %4746  ;;  %v454_v38 = vsel %vm445_vm1, %v4743_v29, %v4733_v31  ;;  %v455_v39 = vsel %vm445_vm1, %v4744_v28, %v4734_v30 }
  0x8b   : > { %v4737_v33 = vpop.permute.xlu0 %4736  ;;  %v4749_v36 = vunpack.i.h.bf16 %v4747_v32  ;;  %v4748_v37 = vunpack.i.l.bf16 %v4747_v32  ;;  %v458_v52 = vpack.c.bf16 %v455_v39, %v454_v38 }
  0x8c   : > { %v4739_v34 = vunpack.i.h.bf16 %v4737_v33  ;;  %v4738_v35 = vunpack.i.l.bf16 %v4737_v33 }
  0x8e   : > { %v4757_v40 = vpop.permute.xlu1 %4756  ;;  %v450_v41 = vsel %vm445_vm1, %v4733_v31, %v4738_v35  ;;  %v451_v42 = vsel %vm445_vm1, %v4734_v30, %v4739_v34  ;;  %v446_v43 = vsel %vm445_vm1, %v4738_v35, %v4743_v29  ;;  %v447_v44 = vsel %vm445_vm1, %v4739_v34, %v4744_v28 }
  0x8f   : > { %v4759_v45 = vunpack.i.h.bf16 %v4757_v40  ;;  %v4758_v46 = vunpack.i.l.bf16 %v4757_v40  ;;  %v4752_v47 = vpop.permute.xlu0 %4751  ;;  %v459_v48 = vpack.c.bf16 %v451_v42, %v450_v41  ;;  %v460_v49 = vpack.c.bf16 %v447_v44, %v446_v43 }
  0x90   : > { %v4754_v50 = vunpack.i.h.bf16 %v4752_v47  ;;  %v4753_v51 = vunpack.i.l.bf16 %v4752_v47 }
  0x91   : > { %535 = vmatprep.subr.bf16.mxu0 %v459_v48  ;;  %4373 = vmatprep.subr.bf16.mxu1 %v460_v49  ;;  %v456_v53 = vsel %vm445_vm1, %v4758_v46, %v4748_v37  ;;  %v457_v54 = vsel %vm445_vm1, %v4759_v45, %v4749_v36 }
  0x92   : > { %536 = vmatpush1.bf16.msra.mxu0 %v458_v52  ;;  %4374 = vmatpush3.bf16.msra.mxu1 %v460_v49  ;;  %v4767_v55 = vpop.permute.xlu1 %4766  ;;  %v452_v56 = vsel %vm445_vm1, %v4748_v37, %v4753_v51  ;;  %v453_v57 = vsel %vm445_vm1, %v4749_v36, %v4754_v50  ;;  %v448_v58 = vsel %vm445_vm1, %v4753_v51, %v4758_v46 }
  0x93   : > { %v4762_v59 = vpop.permute.xlu0 %4761  ;;  %v462_v60 = vpack.c.bf16 %v453_v57, %v452_v56  ;;  %v449_v61 = vsel %vm445_vm1, %v4754_v50, %v4759_v45  ;;  %v461_v3 = vpack.c.bf16 %v457_v54, %v456_v53  ;;  %v4769_v15 = vunpack.i.h.bf16 %v4767_v55 }
  0x94   : > { %v463_v63 = vpack.c.bf16 %v449_v61, %v448_v58  ;;  %v4768_v16 = vunpack.i.l.bf16 %v4767_v55  ;;  %v4764_v17 = vunpack.i.h.bf16 %v4762_v59  ;;  %v4763_v20 = vunpack.i.l.bf16 %v4762_v59 }
  0x95   : > { %537 = vmatprep.subr.bf16.mxu0 %v462_v60 }
  0x96   : > { %4375 = vmatprep.subr.bf16.mxu1 %v463_v63  ;;  %538 = vmatpush1.bf16.msra.mxu0 %v461_v3  ;;  %v4777_v21 = vpop.permute.xlu1 %4776  ;;  %v495_v23 = vsel %vm494_vm2, %v4763_v20, %v4768_v16  ;;  %v496_v25 = vsel %vm494_vm2, %v4764_v17, %v4769_v15  ;;  %v5933_v3 = vld [vmem:[%s8508_s1 + $0x18] sm:$0xff]  }
  0x97   : > { %4376 = vmatpush3.bf16.msra.mxu1 %v463_v63  ;;  %v4772_v22 = vpop.permute.xlu0 %4771  ;;  %539 = vmatprep.subr.bf16.mxu0 %v465_v62  ;;  %v4779_v12 = vunpack.i.h.bf16 %v4777_v21  ;;  %v4778_v29 = vunpack.i.l.bf16 %v4777_v21  ;;  %v508_v30 = vpack.c.bf16 %v496_v25, %v495_v23 }
  0x98   : > { %v4774_v0 = vunpack.i.h.bf16 %v4772_v22  ;;  %v4773_v1 = vunpack.i.l.bf16 %v4772_v22  ;;  %4377 = vmatprep.subr.bf16.mxu1 %v466_v7  ;;  %v6282_v22 = vld [vmem:[%s8508_s1] sm:$0xff]  }
  0x9a   : > { %540 = vmatpush1.bf16.msra.mxu0 %v464_v11  ;;  %v4787_v4 = vpop.permute.xlu1 %4786  ;;  %v503_v28 = vsel %vm494_vm2, %v4768_v16, %v4773_v1  ;;  %v504_v10 = vsel %vm494_vm2, %v4769_v15, %v4774_v0  ;;  %v499_v31 = vsel %vm494_vm2, %v4773_v1, %v4763_v20  ;;  %v500_v32 = vsel %vm494_vm2, %v4774_v0, %v4764_v17 }
  0x9b   : > { %4378 = vmatpush3.bf16.msra.mxu1 %v466_v7  ;;  %v4789_v13 = vunpack.i.h.bf16 %v4787_v4  ;;  %v4788_v14 = vunpack.i.l.bf16 %v4787_v4  ;;  %v4782_v27 = vpop.permute.xlu0 %4781  ;;  %541 = vmatprep.subr.bf16.mxu0 %v468_v8  ;;  %v509_v34 = vpack.c.bf16 %v504_v10, %v503_v28  ;;  %v507_v44 = vpack.c.bf16 %v500_v32, %v499_v31 }
  0x9c   : > { %v4784_v5 = vunpack.i.h.bf16 %v4782_v27  ;;  %v4783_v6 = vunpack.i.l.bf16 %v4782_v27  ;;  %4379 = vmatprep.subr.bf16.mxu1 %v469_v2 }
  0x9d   : > { %v501_v46 = vsel %vm494_vm2, %v4788_v14, %v4778_v29  ;;  %v502_v47 = vsel %vm494_vm2, %v4789_v13, %v4779_v12 }
  0x9e   : > { %542 = vmatpush1.bf16.msra.mxu0 %v467_v9  ;;  %v4797_v33 = vpop.permute.xlu1 %4796  ;;  %v497_v35 = vsel %vm494_vm2, %v4778_v29, %v4783_v6  ;;  %v498_v36 = vsel %vm494_vm2, %v4779_v12, %v4784_v5  ;;  %v505_v40 = vsel %vm494_vm2, %v4783_v6, %v4788_v14  ;;  %v506_v41 = vsel %vm494_vm2, %v4784_v5, %v4789_v13 }
  0x9f   : > { %4380 = vmatpush3.bf16.msra.mxu1 %v469_v2  ;;  %v4799_v37 = vunpack.i.h.bf16 %v4797_v33  ;;  %v4798_v38 = vunpack.i.l.bf16 %v4797_v33  ;;  %v4792_v39 = vpop.permute.xlu0 %4791  ;;  %543 = vmatprep.subr.bf16.mxu0 %v508_v30  ;;  %v511_v45 = vpack.c.bf16 %v498_v36, %v497_v35  ;;  %v512_v49 = vpack.c.bf16 %v506_v41, %v505_v40 }
  0xa0   : > { %v4794_v42 = vunpack.i.h.bf16 %v4792_v39  ;;  %v4793_v43 = vunpack.i.l.bf16 %v4792_v39  ;;  %4381 = vmatprep.subr.bf16.mxu1 %v509_v34  ;;  %v510_v55 = vpack.c.bf16 %v502_v47, %v501_v46 }
  0xa2   : > { %544 = vmatpush1.bf16.msra.mxu0 %v507_v44  ;;  %v4807_v48 = vpop.permute.xlu1 %4806  ;;  %v317_v50 = vsel %vm312_vm3, %v4793_v43, %v4798_v38  ;;  %v318_v51 = vsel %vm312_vm3, %v4794_v42, %v4799_v37 }
  0xa3   : > { %4382 = vmatpush3.bf16.msra.mxu1 %v509_v34  ;;  %v4802_v52 = vpop.permute.xlu0 %4801  ;;  %545 = vmatprep.subr.bf16.mxu0 %v511_v45  ;;  %v4809_v56 = vunpack.i.h.bf16 %v4807_v48  ;;  %v4808_v57 = vunpack.i.l.bf16 %v4807_v48  ;;  %v326_v58 = vpack.c.bf16 %v318_v51, %v317_v50 }
  0xa4   : > { %v4804_v53 = vunpack.i.h.bf16 %v4802_v52  ;;  %v4803_v54 = vunpack.i.l.bf16 %v4802_v52  ;;  %4383 = vmatprep.subr.bf16.mxu1 %v512_v49 }
  0xa6   : > { %v321_v59 = vsel %vm312_vm3, %v4803_v54, %v4793_v43  ;;  %v322_v60 = vsel %vm312_vm3, %v4804_v53, %v4794_v42  ;;  %546 = vmatpush1.bf16.msra.mxu0 %v510_v55  ;;  %v4817_v61 = vpop.permute.xlu1 %4816  ;;  %v313_v62 = vsel %vm312_vm3, %v4798_v38, %v4803_v54  ;;  %v314_v63 = vsel %vm312_vm3, %v4799_v37, %v4804_v53 }
  0xa7   : > { %4384 = vmatpush3.bf16.msra.mxu1 %v512_v49  ;;  %v4819_v7 = vunpack.i.h.bf16 %v4817_v61  ;;  %v4818_v11 = vunpack.i.l.bf16 %v4817_v61  ;;  %v4812_v15 = vpop.permute.xlu0 %4811  ;;  %653 = vmatprep.subr.bf16.mxu0 %v326_v58  ;;  %v327_v16 = vpack.c.bf16 %v314_v63, %v313_v62  ;;  %v325_v17 = vpack.c.bf16 %v322_v60, %v321_v59 }
  0xa8   : > { %v4814_v20 = vunpack.i.h.bf16 %v4812_v15  ;;  %v4813_v21 = vunpack.i.l.bf16 %v4812_v15 }
  0xa9   : > { %v323_v8 = vsel %vm312_vm3, %v4818_v11, %v4808_v57  ;;  %v324_v0 = vsel %vm312_vm3, %v4819_v7, %v4809_v56  ;;  %4389 = vmatprep.subr.bf16.mxu1 %v327_v16  ;;  %4124 = vmatmul.mubr.msk.bf16.vlgmr.msra.gmra.mrb[0].mxu0 %vm528_vm0, %v6124_v18 }
  0xaa   : > { %4386 = vmatmul.mubr.msk.bf16.vlgmr.msra.gmra.mrb[0].mxu1 %vm528_vm0, %v5933_v3  ;;  %654 = vmatpush1.bf16.msra.mxu0 %v325_v17  ;;  %v4827_v1 = vpop.permute.xlu1 %4826  ;;  %v319_v2 = vsel %vm312_vm3, %v4808_v57, %v4813_v21  ;;  %v320_v4 = vsel %vm312_vm3, %v4809_v56, %v4814_v20  ;;  %v315_v9 = vsel %vm312_vm3, %v4813_v21, %v4818_v11 }
  0xab   : > { %4390 = vmatpush3.bf16.msra.mxu1 %v327_v16  ;;  %v4829_v23 = vunpack.i.h.bf16 %v4827_v1  ;;  %v4828_v25 = vunpack.i.l.bf16 %v4827_v1  ;;  %v4822_v13 = vpop.permute.xlu0 %4821  ;;  %v329_v18 = vpack.c.bf16 %v320_v4, %v319_v2  ;;  %v316_v14 = vsel %vm312_vm3, %v4814_v20, %v4819_v7  ;;  %577 = vmatprep.mubr.bf16.mxu0 %v5990_v19 }
  0xac   : > { %v4824_v27 = vunpack.i.h.bf16 %v4822_v13  ;;  %v4823_v28 = vunpack.i.l.bf16 %v4822_v13  ;;  %v330_v10 = vpack.c.bf16 %v316_v14, %v315_v9  ;;  %v328_v12 = vpack.c.bf16 %v324_v0, %v323_v8  ;;  %4401 = vmatprep.mubr.msk.bf16.mxu1 %vm528_vm0, %v6282_v22 }
  0xad   : > { %655 = vmatprep.subr.bf16.mxu0 %v329_v18 }
  0xae   : > { %4391 = vmatprep.subr.bf16.mxu1 %v330_v10  ;;  %656 = vmatpush1.bf16.msra.mxu0 %v328_v12  ;;  %v4837_v29 = vpop.permute.xlu1 %4836  ;;  %v360_v5 = vsel %vm355_vm4, %v4823_v28, %v4828_v25  ;;  %v361_v6 = vsel %vm355_vm4, %v4824_v27, %v4829_v23 }
  0xaf   : > { %4392 = vmatpush3.bf16.msra.mxu1 %v330_v10  ;;  %v4832_v30 = vpop.permute.xlu0 %4831  ;;  %v369_v31 = vpack.c.bf16 %v361_v6, %v360_v5  ;;  %v4839_v34 = vunpack.i.h.bf16 %v4837_v29  ;;  %v4838_v35 = vunpack.i.l.bf16 %v4837_v29 }
  0xb0   : > { %v4834_v32 = vunpack.i.h.bf16 %v4832_v30  ;;  %v4833_v33 = vunpack.i.l.bf16 %v4832_v30 }
  0xb1   : > { %657 = vmatprep.subr.bf16.mxu0 %v369_v31  ;;  %4125 = vmatmul.mubr.msk.bf16.gmra.mrb[4].mxu0 %vm528_vm0, %v5933_v3 }
  0xb2   : > { %v364_v36 = vsel %vm355_vm4, %v4833_v33, %v4823_v28  ;;  %v365_v37 = vsel %vm355_vm4, %v4834_v32, %v4824_v27  ;;  %v4847_v38 = vpop.permute.xlu1 %4846  ;;  %v356_v39 = vsel %vm355_vm4, %v4828_v25, %v4833_v33  ;;  %v357_v40 = vsel %vm355_vm4, %v4829_v23, %v4834_v32  ;;  %685 = vmatprep.mubr.bf16.mxu0 %v5990_v19 }
  0xb3   : > { %v4849_v41 = vunpack.i.h.bf16 %v4847_v38  ;;  %v4848_v42 = vunpack.i.l.bf16 %v4847_v38  ;;  %v4842_v43 = vpop.permute.xlu0 %4841  ;;  %v368_v44 = vpack.c.bf16 %v365_v37, %v364_v36  ;;  %v370_v45 = vpack.c.bf16 %v357_v40, %v356_v39 }
  0xb4   : > { %v4844_v46 = vunpack.i.h.bf16 %v4842_v43  ;;  %v4843_v47 = vunpack.i.l.bf16 %v4842_v43 }
  0xb5   : > { %v366_v48 = vsel %vm355_vm4, %v4848_v42, %v4838_v35  ;;  %v367_v49 = vsel %vm355_vm4, %v4849_v41, %v4839_v34  ;;  %658 = vmatpush1.bf16.msra.mxu0 %v368_v44  ;;  %4393 = vmatprep.subr.bf16.mxu1 %v370_v45 }
  0xb6   : > { %4394 = vmatpush3.bf16.msra.mxu1 %v370_v45  ;;  %v4857_v50 = vpop.permute.xlu1 %4856  ;;  %v362_v51 = vsel %vm355_vm4, %v4838_v35, %v4843_v47  ;;  %v363_v52 = vsel %vm355_vm4, %v4839_v34, %v4844_v46  ;;  %v358_v53 = vsel %vm355_vm4, %v4843_v47, %v4848_v42  ;;  %v359_v54 = vsel %vm355_vm4, %v4844_v46, %v4849_v41  ;;  %v5935_v42 = vld [vmem:[%s8508_s1 + $0x8] sm:$0xff]   ;;  %v6365_v45 = vld [vmem:[%s8508_s1 + $0x20] sm:$0xff]  }
  0xb7   : > { %v4859_v55 = vunpack.i.h.bf16 %v4857_v50  ;;  %v4858_v56 = vunpack.i.l.bf16 %v4857_v50  ;;  %v4852_v57 = vpop.permute.xlu0 %4851  ;;  %v372_v58 = vpack.c.bf16 %v363_v52, %v362_v51  ;;  %v373_v59 = vpack.c.bf16 %v359_v54, %v358_v53 }
  0xb8   : > { %v4854_v60 = vunpack.i.h.bf16 %v4852_v57  ;;  %v4853_v61 = vunpack.i.l.bf16 %v4852_v57  ;;  %v371_v62 = vpack.c.bf16 %v367_v49, %v366_v48 }
  0xb9   : > { %659 = vmatprep.subr.bf16.mxu0 %v372_v58  ;;  %4395 = vmatprep.subr.bf16.mxu1 %v373_v59 }
  0xba   : > { %660 = vmatpush1.bf16.msra.mxu0 %v371_v62  ;;  %4396 = vmatpush3.bf16.msra.mxu1 %v373_v59  ;;  %v4867_v63 = vpop.permute.xlu1 %4866  ;;  %v403_v3 = vsel %vm398_vm5, %v4853_v61, %v4858_v56  ;;  %v404_v7 = vsel %vm398_vm5, %v4854_v60, %v4859_v55 }
  0xbb   : > { %v4862_v11 = vpop.permute.xlu0 %4861  ;;  %v412_v15 = vpack.c.bf16 %v404_v7, %v403_v3  ;;  %v4869_v20 = vunpack.i.h.bf16 %v4867_v63  ;;  %v4868_v21 = vunpack.i.l.bf16 %v4867_v63 }
  0xbc   : > { %v4864_v16 = vunpack.i.h.bf16 %v4862_v11  ;;  %v4863_v17 = vunpack.i.l.bf16 %v4862_v11 }
  0xbd   : > { %661 = vmatprep.subr.bf16.mxu0 %v412_v15 }
  0xbe   : > { %v407_v8 = vsel %vm398_vm5, %v4863_v17, %v4853_v61  ;;  %v408_v0 = vsel %vm398_vm5, %v4864_v16, %v4854_v60  ;;  %v4877_v1 = vpop.permute.xlu1 %4876  ;;  %v399_v2 = vsel %vm398_vm5, %v4858_v56, %v4863_v17  ;;  %v400_v4 = vsel %vm398_vm5, %v4859_v55, %v4864_v16 }
  0xbf   : > { %v4879_v9 = vunpack.i.h.bf16 %v4877_v1  ;;  %v4878_v23 = vunpack.i.l.bf16 %v4877_v1  ;;  %v4872_v25 = vpop.permute.xlu0 %4871  ;;  %v411_v13 = vpack.c.bf16 %v408_v0, %v407_v8  ;;  %v413_v18 = vpack.c.bf16 %v400_v4, %v399_v2 }
  0xc0   : > { %v4874_v14 = vunpack.i.h.bf16 %v4872_v25  ;;  %v4873_v27 = vunpack.i.l.bf16 %v4872_v25 }
  0xc1   : > { %v409_v28 = vsel %vm398_vm5, %v4878_v23, %v4868_v21  ;;  %v410_v10 = vsel %vm398_vm5, %v4879_v9, %v4869_v20  ;;  %662 = vmatpush1.bf16.msra.mxu0 %v411_v13  ;;  %4397 = vmatprep.subr.bf16.mxu1 %v413_v18 }
  0xc2   : > { %4398 = vmatpush3.bf16.msra.mxu1 %v413_v18  ;;  %v4887_v12 = vpop.permute.xlu1 %4886  ;;  %v405_v29 = vsel %vm398_vm5, %v4868_v21, %v4873_v27  ;;  %v406_v5 = vsel %vm398_vm5, %v4869_v20, %v4874_v14  ;;  %v401_v6 = vsel %vm398_vm5, %v4873_v27, %v4878_v23  ;;  %v402_v30 = vsel %vm398_vm5, %v4874_v14, %v4879_v9 }
  0xc3   : > { %v4889_v31 = vunpack.i.h.bf16 %v4887_v12  ;;  %v4888_v32 = vunpack.i.l.bf16 %v4887_v12  ;;  %v4882_v33 = vpop.permute.xlu0 %4881  ;;  %v415_v34 = vpack.c.bf16 %v406_v5, %v405_v29  ;;  %v416_v35 = vpack.c.bf16 %v402_v30, %v401_v6 }
  0xc4   : > { %v4884_v36 = vunpack.i.h.bf16 %v4882_v33  ;;  %v4883_v37 = vunpack.i.l.bf16 %v4882_v33  ;;  %v414_v38 = vpack.c.bf16 %v410_v10, %v409_v28 }
  0xc5   : > { %663 = vmatprep.subr.bf16.mxu0 %v415_v34  ;;  %4399 = vmatprep.subr.bf16.mxu1 %v416_v35 }
  0xc6   : > { %664 = vmatpush1.bf16.msra.mxu0 %v414_v38  ;;  %4400 = vmatpush3.bf16.msra.mxu1 %v416_v35  ;;  %v4897_v39 = vpop.permute.xlu1 %4896  ;;  %v780_v40 = vsel %vm779_vm6, %v4883_v37, %v4888_v32  ;;  %v781_v41 = vsel %vm779_vm6, %v4884_v36, %v4889_v31 }
  0xc7   : > { %v4892_v43 = vpop.permute.xlu0 %4891  ;;  %v793_v44 = vpack.c.bf16 %v781_v41, %v780_v40  ;;  %v4899_v48 = vunpack.i.h.bf16 %v4897_v39  ;;  %v4898_v49 = vunpack.i.l.bf16 %v4897_v39 }
  0xc8   : > { %v4894_v46 = vunpack.i.h.bf16 %v4892_v43  ;;  %v4893_v47 = vunpack.i.l.bf16 %v4892_v43 }
  0xc9   : > { %905 = vmatprep.subr.bf16.mxu0 %v793_v44  ;;  %4130 = vmatmul.mubr.msk.bf16.vlgmr.msra.gmra.mrb[0].mxu0 %vm528_vm0, %v6282_v22 }
  0xca   : > { %v784_v50 = vsel %vm779_vm6, %v4893_v47, %v4883_v37  ;;  %v785_v51 = vsel %vm779_vm6, %v4894_v46, %v4884_v36  ;;  %v4907_v52 = vpop.permute.xlu1 %4906  ;;  %v788_v53 = vsel %vm779_vm6, %v4888_v32, %v4893_v47  ;;  %v789_v54 = vsel %vm779_vm6, %v4889_v31, %v4894_v46  ;;  %4402 = vmatmul.mubr.msk.bf16.vlgmr.msra.gmra.mrb[0].mxu1 %vm528_vm0, %v5935_v42 }
  0xcb   : > { %v4909_v55 = vunpack.i.h.bf16 %v4907_v52  ;;  %v4908_v56 = vunpack.i.l.bf16 %v4907_v52  ;;  %v4902_v57 = vpop.permute.xlu0 %4901  ;;  %v792_v58 = vpack.c.bf16 %v785_v51, %v784_v50  ;;  %v794_v22 = vpack.c.bf16 %v789_v54, %v788_v53  ;;  %695 = vmatprep.mubr.bf16.mxu0 %v5990_v19  ;;  %4417 = vmatprep.mubr.msk.bf16.mxu1 %vm528_vm0, %v6365_v45 }
  0xcc   : > { %v4904_v59 = vunpack.i.h.bf16 %v4902_v57  ;;  %v4903_v60 = vunpack.i.l.bf16 %v4902_v57 }
  0xcd   : > { %v786_v61 = vsel %vm779_vm6, %v4908_v56, %v4898_v49  ;;  %v787_v62 = vsel %vm779_vm6, %v4909_v55, %v4899_v48  ;;  %906 = vmatpush1.bf16.msra.mxu0 %v792_v58  ;;  %4405 = vmatprep.subr.bf16.mxu1 %v794_v22 }
  0xce   : > { %4406 = vmatpush3.bf16.msra.mxu1 %v794_v22  ;;  %v4917_v63 = vpop.permute.xlu1 %4916  ;;  %v782_v3 = vsel %vm779_vm6, %v4898_v49, %v4903_v60  ;;  %v783_v7 = vsel %vm779_vm6, %v4899_v48, %v4904_v59  ;;  %v790_v11 = vsel %vm779_vm6, %v4903_v60, %v4908_v56  ;;  %v791_v15 = vsel %vm779_vm6, %v4904_v59, %v4909_v55 }
  0xcf   : > { %v4919_v16 = vunpack.i.h.bf16 %v4917_v63  ;;  %v4918_v17 = vunpack.i.l.bf16 %v4917_v63  ;;  %v4912_v20 = vpop.permute.xlu0 %4911  ;;  %v796_v21 = vpack.c.bf16 %v783_v7, %v782_v3  ;;  %v797_v8 = vpack.c.bf16 %v791_v15, %v790_v11 }
  0xd0   : > { %v4914_v0 = vunpack.i.h.bf16 %v4912_v20  ;;  %v4913_v1 = vunpack.i.l.bf16 %v4912_v20  ;;  %v795_v2 = vpack.c.bf16 %v787_v62, %v786_v61 }
  0xd1   : > { %907 = vmatprep.subr.bf16.mxu0 %v796_v21  ;;  %4407 = vmatprep.subr.bf16.mxu1 %v797_v8 }
  0xd2   : > { %908 = vmatpush1.bf16.msra.mxu0 %v795_v2  ;;  %4408 = vmatpush3.bf16.msra.mxu1 %v797_v8  ;;  %v4927_v4 = vpop.permute.xlu1 %4926  ;;  %v823_v9 = vsel %vm822_vm7, %v4913_v1, %v4918_v17  ;;  %v824_v23 = vsel %vm822_vm7, %v4914_v0, %v4919_v16 }
  0xd3   : > { %v4922_v25 = vpop.permute.xlu0 %4921  ;;  %v836_v13 = vpack.c.bf16 %v824_v23, %v823_v9  ;;  %4131 = vmatmul.mubr.msk.bf16.gmra.mrb[4].mxu0 %vm528_vm0, %v5935_v42  ;;  %v4929_v27 = vunpack.i.h.bf16 %v4927_v4  ;;  %v4928_v28 = vunpack.i.l.bf16 %v4927_v4 }
  0xd4   : > { %v4924_v18 = vunpack.i.h.bf16 %v4922_v25  ;;  %v4923_v14 = vunpack.i.l.bf16 %v4922_v25  ;;  %937 = vmatprep.mubr.bf16.mxu0 %v5990_v19 }
  0xd5   : > { %909 = vmatprep.subr.bf16.mxu0 %v836_v13 }
  0xd6   : > { %v827_v10 = vsel %vm822_vm7, %v4923_v14, %v4913_v1  ;;  %v828_v12 = vsel %vm822_vm7, %v4924_v18, %v4914_v0  ;;  %v4937_v29 = vpop.permute.xlu1 %4936  ;;  %v831_v5 = vsel %vm822_vm7, %v4918_v17, %v4923_v14  ;;  %v832_v6 = vsel %vm822_vm7, %v4919_v16, %v4924_v18  ;;  %v5937_v14 = vld [vmem:[%s8508_s1 + $0x28] sm:$0xff]  }
  0xd7   : > { %v4939_v30 = vunpack.i.h.bf16 %v4937_v29  ;;  %v4938_v31 = vunpack.i.l.bf16 %v4937_v29  ;;  %v4932_v32 = vpop.permute.xlu0 %4931  ;;  %v835_v33 = vpack.c.bf16 %v828_v12, %v827_v10  ;;  %v837_v34 = vpack.c.bf16 %v832_v6, %v831_v5  ;;  %v253_v5 = vld [vmem:[%s8512_s5] sm:$0x7] }
  0xd8   : > { %v4934_v35 = vunpack.i.h.bf16 %v4932_v32  ;;  %v4933_v36 = vunpack.i.l.bf16 %v4932_v32  ;;  %v256_v10 = vshrl.u32 %v255_v24, 7 }
  0xd9   : > { %v829_v37 = vsel %vm822_vm7, %v4938_v31, %v4928_v28  ;;  %v830_v38 = vsel %vm822_vm7, %v4939_v30, %v4929_v27  ;;  %910 = vmatpush1.bf16.msra.mxu0 %v835_v33  ;;  %4409 = vmatprep.subr.bf16.mxu1 %v837_v34 }
  0xda   : > { %4410 = vmatpush3.bf16.msra.mxu1 %v837_v34  ;;  %v4947_v39 = vpop.permute.xlu1 %4946  ;;  %v825_v40 = vsel %vm822_vm7, %v4928_v28, %v4933_v36  ;;  %v826_v41 = vsel %vm822_vm7, %v4929_v27, %v4934_v35  ;;  %v833_v42 = vsel %vm822_vm7, %v4933_v36, %v4938_v31  ;;  %v834_v43 = vsel %vm822_vm7, %v4934_v35, %v4939_v30 }
  0xdb   : > { %v4949_v44 = vunpack.i.h.bf16 %v4947_v39  ;;  %v4948_v46 = vunpack.i.l.bf16 %v4947_v39  ;;  %v4942_v47 = vpop.permute.xlu0 %4941  ;;  %v839_v48 = vpack.c.bf16 %v826_v41, %v825_v40  ;;  %v840_v49 = vpack.c.bf16 %v834_v43, %v833_v42 }
  0xdc   : > { %v4944_v50 = vunpack.i.h.bf16 %v4942_v47  ;;  %v4943_v51 = vunpack.i.l.bf16 %v4942_v47  ;;  %v838_v52 = vpack.c.bf16 %v830_v38, %v829_v37  ;;  %v257_v12 = vsub.s32 0, %v256_v10 }
  0xdd   : > { %911 = vmatprep.subr.bf16.mxu0 %v839_v48  ;;  %4411 = vmatprep.subr.bf16.mxu1 %v840_v49  ;;  %v265_v6 = vsub.s32 2, %v256_v10 }
  0xde   : > { %912 = vmatpush1.bf16.msra.mxu0 %v838_v52  ;;  %4412 = vmatpush3.bf16.msra.mxu1 %v840_v49  ;;  %v4957_v53 = vpop.permute.xlu1 %4956  ;;  %v866_v54 = vsel %vm865_vm8, %v4943_v51, %v4948_v46  ;;  %v867_v55 = vsel %vm865_vm8, %v4944_v50, %v4949_v44  ;;  %v6458_v33 = vrot.slane %v253_v5, %v257_v12 }
  0xdf   : > { %v4952_v56 = vpop.permute.xlu0 %4951  ;;  %v879_v57 = vpack.c.bf16 %v867_v55, %v866_v54  ;;  %v4959_v59 = vunpack.i.h.bf16 %v4957_v53  ;;  %v4958_v60 = vunpack.i.l.bf16 %v4957_v53  ;;  %v6460_v38 = vrot.slane %v253_v5, %v265_v6 }
  0xe0   : > { %v4954_v58 = vunpack.i.h.bf16 %v4952_v56  ;;  %v4953_v22 = vunpack.i.l.bf16 %v4952_v56 }
  0xe1   : > { %913 = vmatprep.subr.bf16.mxu0 %v879_v57 }
  0xe2   : > { %v870_v61 = vsel %vm865_vm8, %v4953_v22, %v4943_v51  ;;  %v871_v62 = vsel %vm865_vm8, %v4954_v58, %v4944_v50  ;;  %v4967_v63 = vpop.permute.xlu1 %4966  ;;  %v874_v3 = vsel %vm865_vm8, %v4948_v46, %v4953_v22  ;;  %v875_v7 = vsel %vm865_vm8, %v4949_v44, %v4954_v58 }
  0xe3   : > { %v4969_v11 = vunpack.i.h.bf16 %v4967_v63  ;;  %v4968_v15 = vunpack.i.l.bf16 %v4967_v63  ;;  %v4962_v16 = vpop.permute.xlu0 %4961  ;;  %v878_v17 = vpack.c.bf16 %v871_v62, %v870_v61  ;;  %v880_v20 = vpack.c.bf16 %v875_v7, %v874_v3 }
  0xe4   : > { %v4964_v21 = vunpack.i.h.bf16 %v4962_v16  ;;  %v4963_v8 = vunpack.i.l.bf16 %v4962_v16 }
  0xe5   : > { %v872_v0 = vsel %vm865_vm8, %v4968_v15, %v4958_v60  ;;  %v873_v1 = vsel %vm865_vm8, %v4969_v11, %v4959_v59  ;;  %914 = vmatpush1.bf16.msra.mxu0 %v878_v17  ;;  %4413 = vmatprep.subr.bf16.mxu1 %v880_v20 }
  0xe6   : > { %4414 = vmatpush3.bf16.msra.mxu1 %v880_v20  ;;  %v868_v2 = vsel %vm865_vm8, %v4958_v60, %v4963_v8  ;;  %v869_v4 = vsel %vm865_vm8, %v4959_v59, %v4964_v21  ;;  %v876_v9 = vsel %vm865_vm8, %v4963_v8, %v4968_v15  ;;  %v877_v23 = vsel %vm865_vm8, %v4964_v21, %v4969_v11 }
  0xe7   : > { %v882_v25 = vpack.c.bf16 %v869_v4, %v868_v2  ;;  %v883_v13 = vpack.c.bf16 %v877_v23, %v876_v9  ;;  %v881_v18 = vpack.c.bf16 %v873_v1, %v872_v0 }
  0xe9   : > { %915 = vmatprep.subr.bf16.mxu0 %v882_v25  ;;  %4415 = vmatprep.subr.bf16.mxu1 %v883_v13 }
  0xea   : > { %916 = vmatpush1.bf16.msra.mxu0 %v881_v18  ;;  %4416 = vmatpush3.bf16.msra.mxu1 %v883_v13 }
  0xed   : > { %4140 = vmatmul.mubr.msk.bf16.vlgmr.msra.gmra.mrb[0].mxu0 %vm528_vm0, %v6365_v45  ;;  %4418 = vmatmul.mubr.msk.bf16.vlgmr.msra.gmra.mrb[0].mxu1 %vm528_vm0, %v5937_v14  ;;  %v261_v45 = vsub.s32 1, %v256_v10 }
  0xee   : > { %947 = vmatprep.mubr.bf16.mxu0 %v5990_v19 }
  0xef   : > { %v6462_v24 = vrot.slane %v253_v5, %v261_v45 }
  0xf3   : > { %v1027_v27 = vpop.permute.xlu1 %1026 }
  0xf4   : > { %v1022_v28 = vpop.permute.xlu0 %1021 }
  0xf5   : > { %4141 = vmatmul.mubr.msk.bf16.gmra.mrb[4].mxu0 %vm528_vm0, %v5937_v14 }
  0xf6   : > { %1354 = vmatprep.mubr.bf16.mxu0 %v5990_v19 }
  0xf7   : > { %v1032_v29 = vpop.permute.xlu1 %1031 }
  0xf8   : > { %v1037_v30 = vpop.permute.xlu0 %1036 }
 0x1c0   : > { %v939_v31 = vpop.f32.mrb[0].mxu0  ;;  %v4419_v32 = vpop.f32.mrb[0].mxu1 }
 0x1c1   : > { %v1039_v34 = vadd.f32 %v1022_v28, %v939_v31  ;;  %v1047_v35 = vadd.f32 %v4419_v32, %v1032_v29  ;;  %v941_v36 = vpop.f32.mrb[1].mxu0  ;;  %v992_v37 = vpop.f32.mrb[1].mxu1  ;;  %v6555_v32 = vld [vmem:[%s8508_s1 + $0x40] sm:$0xff]  }
 0x1c2   : > { %v1040_v39 = vadd.f32 %v1022_v28, %v941_v36  ;;  %v1041_v40 = vadd.f32 %v1022_v28, %v992_v37  ;;  %v943_v41 = vpop.f32.mrb[2].mxu0  ;;  %v4420_v42 = vpop.f32.mrb[2].mxu1  ;;  %4433 = vmatprep.mubr.msk.bf16.mxu1 %vm528_vm0, %v6555_v32  ;;  %v4147_v36 = vld [vmem:[%s8509_s2 + $0x38] sm:$0xff]  ;;  %v4146_v37 = vld [vmem:[%s8509_s2 + $0x30] sm:$0xff] }
 0x1c3   : > { %v1051_v43 = vmax.f32 %v1039_v34, 0.0  ;;  %v1059_v44 = vmax.f32 %v1047_v35, 0.0  ;;  %v1042_v46 = vadd.f32 %v1027_v27, %v943_v41  ;;  %v1050_v47 = vadd.f32 %v4420_v42, %v1037_v30  ;;  %v945_v48 = vpop.f32.mrb[3].mxu0  ;;  %v995_v49 = vpop.f32.mrb[3].mxu1  ;;  %v4145_v34 = vld [vmem:[%s8509_s2 + $0x28] sm:$0xff]  ;;  %v4144_v35 = vld [vmem:[%s8509_s2 + $0x20] sm:$0xff] }
 0x1c4   : > { %v1052_v50 = vmax.f32 %v1040_v39, 0.0  ;;  %v1053_v51 = vmax.f32 %v1041_v40, 0.0  ;;  %v1043_v52 = vadd.f32 %v1027_v27, %v945_v48  ;;  %v1044_v53 = vadd.f32 %v1027_v27, %v995_v49 }
 0x1c5   : > { %v1054_v54 = vmax.f32 %v1042_v46, 0.0  ;;  %v1062_v55 = vmax.f32 %v1050_v47, 0.0  ;;  %v6465_v58 = vmul.f32 %v1051_v43, %v6458_v33  ;;  %v1071_v22 = vmul.f32 %v1059_v44, %v6460_v38 }
 0x1c6   : > { %v1055_v56 = vmax.f32 %v1043_v52, 0.0  ;;  %v1056_v57 = vmax.f32 %v1044_v53, 0.0  ;;  %v6473_v61 = vmul.f32 %v1052_v50, %v6462_v24  ;;  %v1065_v62 = vmul.f32 %v1053_v51, %v6460_v38 }
 0x1c7   : > { %v6469_v59 = vmul.f32 %v1054_v54, %v6458_v33  ;;  %v1074_v60 = vmul.f32 %v1062_v55, %v6460_v38 }
 0x1c8   : > { %v6477_v63 = vmul.f32 %v1055_v56, %v6462_v24  ;;  %v1068_v3 = vmul.f32 %v1056_v57, %v6460_v38  ;;  %v949_v7 = vpop.f32.mrb[4].mxu0 }
 0x1c9   : > { %v1045_v11 = vadd.f32 %v1032_v29, %v949_v7  ;;  %v951_v15 = vpop.f32.mrb[5].mxu0  ;;  %v6480_v16 = vpack.i.bf16 %v1074_v60, %v1071_v22  ;;  %v6484_v17 = vpack.i.bf16 %v6469_v59, %v6465_v58  ;;  %v1253_v6 = vpack.c.bf16 %v6469_v59, %v6465_v58 }
 0x1ca   : > { %v1046_v20 = vadd.f32 %v1032_v29, %v951_v15  ;;  %v953_v21 = vpop.f32.mrb[6].mxu0  ;;  %v6488_v8 = vpack.i.bf16 %v6477_v63, %v6473_v61  ;;  %v5017_v4 = vpack.i.bf16 %v1068_v3, %v1065_v62  ;;  %v1254_v29 = vpack.c.bf16 %v6477_v63, %v6473_v61 }
 0x1cb   : > { %v1057_v0 = vmax.f32 %v1045_v11, 0.0  ;;  %v1048_v1 = vadd.f32 %v1037_v30, %v953_v21  ;;  %4978 = vrot.lane.b32.xlu0 %v6480_v16, %s5988_s27  ;;  %4973 = vrot.lane.b32.xlu1 %v6484_v17, %s5988_s27  ;;  %v955_v2 = vpop.f32.mrb[7].mxu0  ;;  %v6523_v5 = vpack.c.bf16 %v1068_v3, %v1065_v62 }
 0x1cc   : > { %v1058_v9 = vmax.f32 %v1046_v20, 0.0  ;;  %v1049_v23 = vadd.f32 %v1037_v30, %v955_v2  ;;  %v6529_v30 = vpack.c.bf16 %v1074_v60, %v1071_v22 }
 0x1cd   : > { %v6495_v25 = vmul.f32 %v1057_v0, %v6458_v33  ;;  %v1060_v13 = vmax.f32 %v1048_v1, 0.0 }
 0x1ce   : > { %v6498_v18 = vmul.f32 %v1058_v9, %v6462_v24  ;;  %v1061_v14 = vmax.f32 %v1049_v23, 0.0 }
 0x1cf   : > { %v6501_v27 = vmul.f32 %v1060_v13, %v6458_v33  ;;  %4998 = vrot.lane.b32.xlu0 %v6480_v16, %s5991_s7  ;;  %4983 = vrot.lane.b32.xlu1 %v6484_v17, %s5989_s28 }
 0x1d0   : > { %v6508_v28 = vmul.f32 %v1061_v14, %v6462_v24 }
 0x1d1   : > { %v5032_v10 = vpack.i.bf16 %v6501_v27, %v6495_v25  ;;  %v1256_v31 = vpack.c.bf16 %v6501_v27, %v6495_v25 }
 0x1d2   : > { %v5047_v12 = vpack.i.bf16 %v6508_v28, %v6498_v18  ;;  %v1257_v45 = vpack.c.bf16 %v6508_v28, %v6498_v18 }
 0x1d3   : > { %4988 = vrot.lane.b32.xlu1 %v6480_v16, %s5989_s28  ;;  %5003 = vrot.lane.b32.xlu0 %v6488_v8, %s5988_s27 }
 0x1d7   : > { %4993 = vrot.lane.b32.xlu1 %v6484_v17, %s5991_s7  ;;  %5018 = vrot.lane.b32.xlu0 %v5017_v4, %s5989_s28 }
 0x1db   : > { %5008 = vrot.lane.b32.xlu1 %v5017_v4, %s5988_s27  ;;  %5023 = vrot.lane.b32.xlu0 %v6488_v8, %s5991_s7 }
 0x1df   : > { %5013 = vrot.lane.b32.xlu1 %v6488_v8, %s5989_s28  ;;  %5033 = vrot.lane.b32.xlu0 %v5032_v10, %s5988_s27 }
 0x1e3   : > { %5028 = vrot.lane.b32.xlu1 %v5017_v4, %s5991_s7  ;;  %5038 = vrot.lane.b32.xlu0 %v5032_v10, %s5989_s28 }
 0x1e7   : > { %5043 = vrot.lane.b32.xlu0 %v5032_v10, %s5991_s7  ;;  %5048 = vrot.lane.b32.xlu1 %v5047_v12, %s5988_s27 }
 0x1eb   : > { %5058 = vrot.lane.b32.xlu0 %v6488_v8, %s5992_s8  ;;  %5053 = vrot.lane.b32.xlu1 %v6484_v17, %s5992_s8 }
 0x1ef   : > { %5068 = vrot.lane.b32.xlu0 %v5032_v10, %s5992_s8  ;;  %5063 = vrot.lane.b32.xlu1 %v5017_v4, %s5992_s8 }
 0x1f3   : > { %5073 = vrot.lane.b32.xlu0 %v5047_v12, %s5989_s28  ;;  %5083 = vrot.lane.b32.xlu1 %v6484_v17, %s5993_s9 }
 0x1f7   : > { %5078 = vrot.lane.b32.xlu0 %v6480_v16, %s5992_s8  ;;  %5093 = vrot.lane.b32.xlu1 %v5017_v4, %s5993_s9 }
 0x1fb   : > { %5088 = vrot.lane.b32.xlu0 %v6488_v8, %s5993_s9  ;;  %5108 = vrot.lane.b32.xlu1 %v6488_v8, %s5994_s10 }
 0x1ff   : > { %5098 = vrot.lane.b32.xlu0 %v5032_v10, %s5993_s9  ;;  %5118 = vrot.lane.b32.xlu1 %v5047_v12, %s5991_s7 }
 0x203   : > { %5103 = vrot.lane.b32.xlu0 %v6480_v16, %s5993_s9  ;;  %5123 = vrot.lane.b32.xlu1 %v6484_v17, %s5994_s10 }
 0x207   : > { %5113 = vrot.lane.b32.xlu0 %v5017_v4, %s5994_s10  ;;  %5128 = vrot.lane.b32.xlu1 %v5047_v12, %s5992_s8 }
 0x20b   : > { %5138 = vrot.lane.b32.xlu0 %v5032_v10, %s5994_s10  ;;  %5133 = vrot.lane.b32.xlu1 %v6480_v16, %s5994_s10 }
 0x20f   : > { %5153 = vrot.lane.b32.xlu0 %v5017_v4, %s5995_s11  ;;  %5143 = vrot.lane.b32.xlu1 %v5047_v12, %s5993_s9 }
 0x213   : > { %5168 = vrot.lane.b32.xlu0 %v5047_v12, %s5994_s10  ;;  %5148 = vrot.lane.b32.xlu1 %v6488_v8, %s5995_s11 }
 0x217   : > { %5173 = vrot.lane.b32.xlu0 %v5032_v10, %s5995_s11  ;;  %5158 = vrot.lane.b32.xlu1 %v6484_v17, %s5995_s11 }
 0x21b   : > { %5183 = vrot.lane.b32.xlu0 %v5047_v12, %s5995_s11  ;;  %5163 = vrot.lane.b32.xlu1 %v6480_v16, %s5995_s11 }
 0x21f   : > { %5188 = vrot.lane.b32.xlu0 %v5017_v4, %s5996_s12  ;;  %5178 = vrot.lane.b32.xlu1 %v6488_v8, %s5996_s12 }
 0x223   : > { %5203 = vrot.lane.b32.xlu0 %v5047_v12, %s5996_s12  ;;  %5193 = vrot.lane.b32.xlu1 %v6484_v17, %s5996_s12 }
 0x227   : > { %5208 = vrot.lane.b32.xlu0 %v5032_v10, %s5996_s12  ;;  %5198 = vrot.lane.b32.xlu1 %v6480_v16, %s5996_s12 }
 0x22b   : > { %1810 = vperm.xlu0 %4970, %v4145_v34   ;;  %1805 = vperm.xlu1 %4971, %v4144_v35  }
 0x22f   : > { %1820 = vperm.xlu0 %4970, %v4147_v36   ;;  %1815 = vperm.xlu1 %4971, %v4146_v37  }
 0x23d   : > { %v4979_v39 = vpop.permute.xlu0 %4978  ;;  %v4974_v40 = vpop.permute.xlu1 %4973 }
 0x23e   : > { %v4976_v46 = vunpack.i.h.bf16 %v4974_v40  ;;  %v4975_v47 = vunpack.i.l.bf16 %v4974_v40  ;;  %v4981_v1 = vunpack.i.h.bf16 %v4979_v39  ;;  %v4980_v2 = vunpack.i.l.bf16 %v4979_v39 }
 0x241   : > { %v6609_v41 = vpop.permute.xlu0 %4998  ;;  %v6611_v42 = vpop.permute.xlu1 %4983 }
 0x245   : > { %v6613_v43 = vpop.permute.xlu1 %4988  ;;  %v5004_v44 = vpop.permute.xlu0 %5003 }
 0x246   : > { %v5006_v48 = vunpack.i.h.bf16 %v5004_v44  ;;  %v5005_v49 = vunpack.i.l.bf16 %v5004_v44 }
 0x248   : > { %v1239_v50 = vsel %vm445_vm1, %v4975_v47, %v5005_v49  ;;  %v1240_v51 = vsel %vm445_vm1, %v4976_v46, %v5006_v48 }
 0x249   : > { %v6619_v52 = vpop.permute.xlu1 %4993  ;;  %v5019_v53 = vpop.permute.xlu0 %5018  ;;  %v1248_v54 = vpack.c.bf16 %v1240_v51, %v1239_v50 }
 0x24b   : > { %1322 = vmatprep.subr.bf16.mxu0 %v1248_v54 }
 0x24d   : > { %v5009_v55 = vpop.permute.xlu1 %5008  ;;  %v6621_v56 = vpop.permute.xlu0 %5023 }
 0x24e   : > { %v5011_v57 = vunpack.i.h.bf16 %v5009_v55  ;;  %v5010_v22 = vunpack.i.l.bf16 %v5009_v55  ;;  %v4986_v55 = vunpack.i.h.bf16 %v6611_v42 }
 0x250   : > { %v1243_v60 = vsel %vm445_vm1, %v5010_v22, %v4975_v47  ;;  %v1244_v62 = vsel %vm445_vm1, %v5011_v57, %v4976_v46  ;;  %v1235_v3 = vsel %vm445_vm1, %v5005_v49, %v5010_v22  ;;  %v1236_v7 = vsel %vm445_vm1, %v5006_v48, %v5011_v57 }
 0x251   : > { %v5014_v11 = vpop.permute.xlu1 %5013  ;;  %v5034_v15 = vpop.permute.xlu0 %5033  ;;  %v1247_v16 = vpack.c.bf16 %v1244_v62, %v1243_v60  ;;  %v1249_v17 = vpack.c.bf16 %v1236_v7, %v1235_v3  ;;  %v5021_v47 = vunpack.i.h.bf16 %v5019_v53  ;;  %v5020_v48 = vunpack.i.l.bf16 %v5019_v53 }
 0x252   : > { %v5036_v8 = vunpack.i.h.bf16 %v5034_v15  ;;  %v5035_v0 = vunpack.i.l.bf16 %v5034_v15  ;;  %v5016_v49 = vunpack.i.h.bf16 %v5014_v11  ;;  %v5015_v50 = vunpack.i.l.bf16 %v5014_v11 }
 0x253   : > { %1323 = vmatpush1.bf16.msra.mxu0 %v1247_v16  ;;  %4421 = vmatprep.subr.bf16.mxu1 %v1249_v17  ;;  %v4985_v57 = vunpack.i.l.bf16 %v6611_v42  ;;  %v4991_v22 = vunpack.i.h.bf16 %v6613_v43  ;;  %v4990_v53 = vunpack.i.l.bf16 %v6613_v43  ;;  %v5026_v42 = vunpack.i.h.bf16 %v6621_v56 }
 0x254   : > { %4422 = vmatpush3.bf16.msra.mxu1 %v1249_v17  ;;  %v1246_v14 = vsel %vm445_vm1, %v4981_v1, %v5036_v8  ;;  %v1245_v10 = vsel %vm445_vm1, %v4980_v2, %v5035_v0  ;;  %v1283_v60 = vsel %vm494_vm2, %v5015_v50, %v5020_v48  ;;  %v1284_v61 = vsel %vm494_vm2, %v5016_v49, %v5021_v47 }
 0x255   : > { %v6631_v20 = vpop.permute.xlu1 %5028  ;;  %v6633_v21 = vpop.permute.xlu0 %5038  ;;  %v1250_v44 = vpack.c.bf16 %v1246_v14, %v1245_v10  ;;  %v1291_v63 = vsel %vm494_vm2, %v5020_v48, %v4985_v57  ;;  %v5025_v43 = vunpack.i.l.bf16 %v6621_v56  ;;  %v1288_v58 = vsel %vm494_vm2, %v4986_v55, %v5016_v49 }
 0x256   : > { %v1287_v59 = vsel %vm494_vm2, %v4985_v57, %v5015_v50  ;;  %v5041_v3 = vunpack.i.h.bf16 %v6633_v21  ;;  %v5040_v7 = vunpack.i.l.bf16 %v6633_v21  ;;  %v4996_v15 = vunpack.i.h.bf16 %v6619_v52 }
 0x257   : > { %v4995_v16 = vunpack.i.l.bf16 %v6619_v52  ;;  %v1296_v17 = vpack.c.bf16 %v1284_v61, %v1283_v60  ;;  %v5030_v27 = vunpack.i.l.bf16 %v6631_v20 }
 0x258   : > { %v1109_v25 = vsel %vm312_vm3, %v4996_v15, %v5026_v42 }
 0x259   : > { %v6635_v4 = vpop.permute.xlu0 %5043  ;;  %v5049_v9 = vpop.permute.xlu1 %5048 }
 0x25a   : > { %v5051_v23 = vunpack.i.h.bf16 %v5049_v9  ;;  %v5050_v13 = vunpack.i.l.bf16 %v5049_v9  ;;  %v1294_v9 = vsel %vm494_vm2, %v4991_v22, %v5041_v3 }
 0x25c   : > { %v1241_v12 = vsel %vm445_vm1, %v5035_v0, %v5050_v13  ;;  %v1242_v34 = vsel %vm445_vm1, %v5036_v8, %v5051_v23  ;;  %v1237_v39 = vsel %vm445_vm1, %v5050_v13, %v4980_v2  ;;  %v1238_v40 = vsel %vm445_vm1, %v5051_v23, %v4981_v1 }
 0x25d   : > { %v6645_v35 = vpop.permute.xlu0 %5058  ;;  %v6647_v36 = vpop.permute.xlu1 %5053  ;;  %v1251_v37 = vpack.c.bf16 %v1242_v34, %v1241_v12  ;;  %v1252_v46 = vpack.c.bf16 %v1238_v40, %v1237_v39  ;;  %v5001_v8 = vunpack.i.h.bf16 %v6609_v41  ;;  %v1295_v0 = vpack.c.bf16 %v1288_v58, %v1287_v59  ;;  %v6759_v59 = vld [vmem:[%s8508_s1 + $0x30] sm:$0xff]  }
 0x25e   : > { %v1108_v1 = vsel %vm312_vm3, %v4995_v16, %v5025_v43  ;;  %v1293_v2 = vsel %vm494_vm2, %v4990_v53, %v5040_v7  ;;  %v5045_v23 = vunpack.i.l.bf16 %v6635_v4  ;;  %v5061_v10 = vunpack.i.h.bf16 %v6645_v35 }
 0x25f   : > { %1324 = vmatprep.subr.bf16.mxu0 %v1251_v37  ;;  %4423 = vmatprep.subr.bf16.mxu1 %v1252_v46  ;;  %v5056_v12 = vunpack.i.h.bf16 %v6647_v36  ;;  %v5055_v34 = vunpack.i.l.bf16 %v6647_v36  ;;  %v5000_v37 = vunpack.i.l.bf16 %v6609_v41  ;;  %v1104_v36 = vsel %vm312_vm3, %v5025_v43, %v5030_v27 }
 0x260   : > { %1325 = vmatpush1.bf16.msra.mxu0 %v1250_v44  ;;  %4424 = vmatpush3.bf16.msra.mxu1 %v1252_v46  ;;  %v1300_v44 = vpack.c.bf16 %v1294_v9, %v1293_v2  ;;  %v1117_v46 = vpack.c.bf16 %v1109_v25, %v1108_v1 }
 0x261   : > { %v6653_v51 = vpop.permute.xlu0 %5068  ;;  %v6655_v54 = vpop.permute.xlu1 %5063  ;;  %1326 = vmatprep.subr.bf16.mxu0 %v1254_v29  ;;  %4425 = vmatprep.subr.bf16.mxu1 %v6523_v5  ;;  %v1292_v29 = vsel %vm494_vm2, %v5021_v47, %v4986_v55  ;;  %v1114_v50 = vsel %vm312_vm3, %v5000_v37, %v5045_v23 }
 0x262   : > { %v1297_v18 = vpack.c.bf16 %v1292_v29, %v1291_v63  ;;  %v5066_v55 = vunpack.i.h.bf16 %v6655_v54  ;;  %v5065_v57 = vunpack.i.l.bf16 %v6655_v54  ;;  %v5939_v29 = vld [vmem:[%s8508_s1 + $0x48] sm:$0xff]   ;;  %v5071_v25 = vunpack.i.h.bf16 %v6653_v51 }
 0x264   : > { %1327 = vmatpush1.bf16.msra.mxu0 %v1253_v6  ;;  %4426 = vmatpush3.bf16.msra.mxu1 %v6523_v5  ;;  %v1154_v41 = vsel %vm355_vm4, %v5065_v57, %v5055_v34 }
 0x265   : > { %v5074_v6 = vpop.permute.xlu0 %5073  ;;  %v6682_v62 = vpop.permute.xlu1 %5083  ;;  %1328 = vmatprep.subr.bf16.mxu0 %v1257_v45  ;;  %4427 = vmatprep.subr.bf16.mxu1 %v6529_v30  ;;  %v5031_v45 = vunpack.i.h.bf16 %v6631_v20 }
 0x266   : > { %v5076_v56 = vunpack.i.h.bf16 %v5074_v6  ;;  %v5075_v11 = vunpack.i.l.bf16 %v5074_v6  ;;  %v5086_v9 = vunpack.i.h.bf16 %v6682_v62 }
 0x267   : > { %v1105_v48 = vsel %vm312_vm3, %v5026_v42, %v5031_v45 }
 0x268   : > { %1329 = vmatpush1.bf16.msra.mxu0 %v1256_v31  ;;  %v1285_v28 = vsel %vm494_vm2, %v5075_v11, %v4990_v53  ;;  %v1286_v5 = vsel %vm494_vm2, %v5076_v56, %v4991_v22  ;;  %v5046_v31 = vunpack.i.h.bf16 %v6635_v4  ;;  %4428 = vmatpush3.bf16.msra.mxu1 %v6529_v30  ;;  %v1290_v13 = vsel %vm494_vm2, %v5041_v3, %v5076_v56 }
 0x269   : > { %v6702_v21 = vpop.permute.xlu0 %5078  ;;  %v6704_v52 = vpop.permute.xlu1 %5093  ;;  %1330 = vmatprep.subr.bf16.mxu0 %v1296_v17  ;;  %v1289_v14 = vsel %vm494_vm2, %v5040_v7, %v5075_v11  ;;  %4429 = vmatprep.subr.bf16.mxu1 %v1297_v18  ;;  %v1299_v20 = vpack.c.bf16 %v1286_v5, %v1285_v28  ;;  %v5060_v30 = vunpack.i.l.bf16 %v6645_v35  ;;  %v1113_v4 = vsel %vm312_vm3, %v5031_v45, %v4996_v15 }
 0x26a   : > { %v1112_v35 = vsel %vm312_vm3, %v5030_v27, %v4995_v16  ;;  %v1298_v47 = vpack.c.bf16 %v1290_v13, %v1289_v14  ;;  %v1115_v49 = vsel %vm312_vm3, %v5001_v8, %v5046_v31  ;;  %v1151_v53 = vsel %vm355_vm4, %v5056_v12, %v5061_v10 }
 0x26b   : > { %v1150_v22 = vsel %vm355_vm4, %v5055_v34, %v5060_v30  ;;  %v1118_v63 = vpack.c.bf16 %v1105_v48, %v1104_v36  ;;  %v1116_v43 = vpack.c.bf16 %v1113_v4, %v1112_v35  ;;  %v1119_v58 = vpack.c.bf16 %v1115_v49, %v1114_v50 }
 0x26c   : > { %1331 = vmatpush1.bf16.msra.mxu0 %v1295_v0  ;;  %4430 = vmatpush3.bf16.msra.mxu1 %v1297_v18  ;;  %v5081_v6 = vunpack.i.h.bf16 %v6702_v21  ;;  %v1159_v3 = vpack.c.bf16 %v1151_v53, %v1150_v22  ;;  %v1146_v7 = vsel %vm355_vm4, %v5060_v30, %v5065_v57  ;;  %v1147_v56 = vsel %vm355_vm4, %v5061_v10, %v5066_v55 }
 0x26d   : > { %v6729_v39 = vpop.permute.xlu0 %5088  ;;  %v6731_v40 = vpop.permute.xlu1 %5108  ;;  %1332 = vmatprep.subr.bf16.mxu0 %v1299_v20  ;;  %4431 = vmatprep.subr.bf16.mxu1 %v1300_v44  ;;  %v5080_v17 = vunpack.i.l.bf16 %v6702_v21  ;;  %v5095_v18 = vunpack.i.l.bf16 %v6704_v52  ;;  %v5096_v21 = vunpack.i.h.bf16 %v6704_v52  ;;  %v5070_v27 = vunpack.i.l.bf16 %v6653_v51 }
 0x26e   : > { %v5090_v1 = vunpack.i.l.bf16 %v6729_v39  ;;  %v5091_v2 = vunpack.i.h.bf16 %v6729_v39  ;;  %v1160_v52 = vpack.c.bf16 %v1147_v56, %v1146_v7 }
 0x26f   : > { %v1156_v13 = vsel %vm355_vm4, %v5080_v17, %v5070_v27  ;;  %v1197_v30 = vsel %vm398_vm5, %v5096_v21, %v5086_v9 }
 0x270   : > { %1333 = vmatpush1.bf16.msra.mxu0 %v1298_v47  ;;  %4432 = vmatpush3.bf16.msra.mxu1 %v1300_v44  ;;  %v1193_v4 = vsel %vm398_vm5, %v5086_v9, %v5091_v2  ;;  %v1188_v39 = vsel %vm398_vm5, %v5090_v1, %v5095_v18  ;;  %v1189_v44 = vsel %vm398_vm5, %v5091_v2, %v5096_v21 }
 0x271   : > { %v6751_v60 = vpop.permute.xlu0 %5098  ;;  %v5119_v61 = vpop.permute.xlu1 %5118  ;;  %1440 = vmatprep.subr.bf16.mxu0 %v1117_v46  ;;  %4437 = vmatprep.subr.bf16.mxu1 %v1118_v63 }
 0x272   : > { %v5121_v42 = vunpack.i.h.bf16 %v5119_v61  ;;  %v5120_v54 = vunpack.i.l.bf16 %v5119_v61 }
 0x273   : > { %4158 = vmatmul.mubr.msk.bf16.vlgmr.msra.gmra.mrb[8].mxu0 %vm528_vm0, %v6555_v32  ;;  %4434 = vmatmul.mubr.msk.bf16.vlgmr.msra.gmra.mrb[4].mxu1 %vm528_vm0, %v5939_v29 }
 0x274   : > { %1441 = vmatpush1.bf16.msra.mxu0 %v1116_v43  ;;  %v1110_v11 = vsel %vm312_vm3, %v5045_v23, %v5120_v54  ;;  %v1111_v15 = vsel %vm312_vm3, %v5046_v31, %v5121_v42  ;;  %v1106_v16 = vsel %vm312_vm3, %v5120_v54, %v5000_v37  ;;  %v1107_v32 = vsel %vm312_vm3, %v5121_v42, %v5001_v8 }
 0x275   : > { %v6781_v28 = vpop.permute.xlu0 %5103  ;;  %v6783_v5 = vpop.permute.xlu1 %5123  ;;  %v1120_v45 = vpack.c.bf16 %v1111_v15, %v1110_v11  ;;  %v1121_v0 = vpack.c.bf16 %v1107_v32, %v1106_v16  ;;  %1364 = vmatprep.mubr.bf16.mxu0 %v5990_v19  ;;  %v1155_v8 = vsel %vm355_vm4, %v5066_v55, %v5056_v12  ;;  %4438 = vmatpush3.bf16.msra.mxu1 %v1118_v63  ;;  %v5085_v31 = vunpack.i.l.bf16 %v6682_v62 }
 0x276   : > { %4449 = vmatprep.mubr.msk.bf16.mxu1 %vm528_vm0, %v6759_v59  ;;  %v1157_v23 = vsel %vm355_vm4, %v5081_v6, %v5071_v25  ;;  %v1158_v10 = vpack.c.bf16 %v1155_v8, %v1154_v41  ;;  %v5106_v37 = vunpack.i.h.bf16 %v6781_v28  ;;  %v5105_v48 = vunpack.i.l.bf16 %v6781_v28 }
 0x277   : > { %1442 = vmatprep.subr.bf16.mxu0 %v1120_v45  ;;  %4439 = vmatprep.subr.bf16.mxu1 %v1121_v0  ;;  %v1196_v14 = vsel %vm398_vm5, %v5095_v18, %v5085_v31  ;;  %v1192_v34 = vsel %vm398_vm5, %v5085_v31, %v5090_v1  ;;  %v5125_v49 = vunpack.i.l.bf16 %v6783_v5  ;;  %v1161_v63 = vpack.c.bf16 %v1157_v23, %v1156_v13 }
 0x278   : > { %1443 = vmatpush1.bf16.msra.mxu0 %v1119_v58  ;;  %v5101_v42 = vunpack.i.h.bf16 %v6751_v60  ;;  %v5100_v54 = vunpack.i.l.bf16 %v6751_v60  ;;  %v1201_v43 = vpack.c.bf16 %v1193_v4, %v1192_v34  ;;  %v5111_v58 = vunpack.i.h.bf16 %v6731_v40 }
 0x279   : > { %v6805_v51 = vpop.permute.xlu0 %5113  ;;  %v5129_v20 = vpop.permute.xlu1 %5128  ;;  %1444 = vmatprep.subr.bf16.mxu0 %v1159_v3  ;;  %4440 = vmatpush3.bf16.msra.mxu1 %v1121_v0  ;;  %v1200_v3 = vpack.c.bf16 %v1197_v30, %v1196_v14  ;;  %v5126_v11 = vunpack.i.h.bf16 %v6783_v5 }
 0x27a   : > { %v5131_v62 = vunpack.i.h.bf16 %v5129_v20  ;;  %v5130_v12 = vunpack.i.l.bf16 %v5129_v20  ;;  %4441 = vmatprep.subr.bf16.mxu1 %v1160_v52  ;;  %v5116_v53 = vunpack.i.h.bf16 %v6805_v51  ;;  %v5115_v61 = vunpack.i.l.bf16 %v6805_v51 }
 0x27b   : > { %4159 = vmatmul.mubr.msk.bf16.gmra.mrb[12].mxu0 %vm528_vm0, %v5939_v29  ;;  %v5110_v29 = vunpack.i.l.bf16 %v6731_v40  ;;  %v1198_v7 = vsel %vm398_vm5, %v5105_v48, %v5100_v54  ;;  %v1199_v56 = vsel %vm398_vm5, %v5106_v37, %v5101_v42 }
 0x27c   : > { %1445 = vmatpush1.bf16.msra.mxu0 %v1158_v10  ;;  %v1152_v46 = vsel %vm355_vm4, %v5070_v27, %v5130_v12  ;;  %v1153_v35 = vsel %vm355_vm4, %v5071_v25, %v5131_v62  ;;  %v1148_v47 = vsel %vm355_vm4, %v5130_v12, %v5080_v17  ;;  %v1149_v36 = vsel %vm355_vm4, %v5131_v62, %v5081_v6 }
 0x27d   : > { %v6829_v50 = vpop.permute.xlu0 %5138  ;;  %v5134_v55 = vpop.permute.xlu1 %5133  ;;  %v1162_v57 = vpack.c.bf16 %v1153_v35, %v1152_v46  ;;  %v1163_v22 = vpack.c.bf16 %v1149_v36, %v1148_v47  ;;  %1472 = vmatprep.mubr.bf16.mxu0 %v5990_v19  ;;  %4442 = vmatpush3.bf16.msra.mxu1 %v1160_v52  ;;  %v1202_v6 = vpack.c.bf16 %v1189_v44, %v1188_v39  ;;  %v5941_v47 = vld [vmem:[%s8508_s1 + $0x38] sm:$0xff]  }
 0x27e   : > { %v1570_v15 = vsel %vm779_vm6, %v5125_v49, %v5110_v29  ;;  %v1566_v17 = vsel %vm779_vm6, %v5110_v29, %v5115_v61  ;;  %v1567_v18 = vsel %vm779_vm6, %v5111_v58, %v5116_v53  ;;  %v5141_v28 = vunpack.i.h.bf16 %v6829_v50 }
 0x27f   : > { %1446 = vmatprep.subr.bf16.mxu0 %v1162_v57  ;;  %4443 = vmatprep.subr.bf16.mxu1 %v1163_v22  ;;  %v5140_v5 = vunpack.i.l.bf16 %v6829_v50  ;;  %v5136_v45 = vunpack.i.h.bf16 %v5134_v55  ;;  %v5135_v0 = vunpack.i.l.bf16 %v5134_v55  ;;  %v1571_v25 = vsel %vm779_vm6, %v5126_v11, %v5111_v58 }
 0x280   : > { %1447 = vmatpush1.bf16.msra.mxu0 %v1161_v63  ;;  %v1203_v52 = vpack.c.bf16 %v1199_v56, %v1198_v7  ;;  %v1574_v14 = vsel %vm779_vm6, %v5115_v61, %v5125_v49  ;;  %v1575_v51 = vsel %vm779_vm6, %v5116_v53, %v5126_v11  ;;  %v1579_v20 = vpack.c.bf16 %v1567_v18, %v1566_v17  ;;  %v6889_v53 = vld [vmem:[%s8508_s1 + $0x50] sm:$0xff]  }
 0x281   : > { %v6845_v60 = vpop.permute.xlu0 %5153  ;;  %v5144_v16 = vpop.permute.xlu1 %5143  ;;  %1448 = vmatprep.subr.bf16.mxu0 %v1201_v43  ;;  %4444 = vmatpush3.bf16.msra.mxu1 %v1163_v22  ;;  %v1576_v10 = vsel %vm779_vm6, %v5135_v0, %v5140_v5  ;;  %v1577_v30 = vsel %vm779_vm6, %v5136_v45, %v5141_v28  ;;  %v1580_v35 = vpack.c.bf16 %v1575_v51, %v1574_v14 }
 0x282   : > { %v5146_v40 = vunpack.i.h.bf16 %v5144_v16  ;;  %v5145_v32 = vunpack.i.l.bf16 %v5144_v16  ;;  %4445 = vmatprep.subr.bf16.mxu1 %v1202_v6  ;;  %v1578_v36 = vpack.c.bf16 %v1571_v25, %v1570_v15  ;;  %v5155_v49 = vunpack.i.l.bf16 %v6845_v60 }
 0x283   : > { %v1583_v22 = vpack.c.bf16 %v1577_v30, %v1576_v10 }
 0x284   : > { %1449 = vmatpush1.bf16.msra.mxu0 %v1200_v3  ;;  %v1194_v41 = vsel %vm398_vm5, %v5100_v54, %v5145_v32  ;;  %v1195_v8 = vsel %vm398_vm5, %v5101_v42, %v5146_v40  ;;  %v1190_v21 = vsel %vm398_vm5, %v5145_v32, %v5105_v48  ;;  %v1191_v1 = vsel %vm398_vm5, %v5146_v40, %v5106_v37 }
 0x285   : > { %v5169_v27 = vpop.permute.xlu0 %5168  ;;  %v5149_v31 = vpop.permute.xlu1 %5148  ;;  %v1204_v2 = vpack.c.bf16 %v1195_v8, %v1194_v41  ;;  %v1205_v9 = vpack.c.bf16 %v1191_v1, %v1190_v21  ;;  %4446 = vmatpush3.bf16.msra.mxu1 %v1202_v6  ;;  %v5156_v48 = vunpack.i.h.bf16 %v6845_v60 }
 0x286   : > { %v5171_v23 = vunpack.i.h.bf16 %v5169_v27  ;;  %v5170_v13 = vunpack.i.l.bf16 %v5169_v27  ;;  %v5151_v62 = vunpack.i.h.bf16 %v5149_v31  ;;  %v5150_v12 = vunpack.i.l.bf16 %v5149_v31 }
 0x287   : > { %1450 = vmatprep.subr.bf16.mxu0 %v1204_v2  ;;  %4447 = vmatprep.subr.bf16.mxu1 %v1205_v9 }
 0x288   : > { %1451 = vmatpush1.bf16.msra.mxu0 %v1203_v52  ;;  %v1568_v34 = vsel %vm779_vm6, %v5170_v13, %v5135_v0  ;;  %v1569_v37 = vsel %vm779_vm6, %v5171_v23, %v5136_v45  ;;  %v1572_v4 = vsel %vm779_vm6, %v5140_v5, %v5170_v13  ;;  %v1573_v39 = vsel %vm779_vm6, %v5141_v28, %v5171_v23 }
 0x289   : > { %v5174_v44 = vpop.permute.xlu0 %5173  ;;  %v5159_v46 = vpop.permute.xlu1 %5158  ;;  %1689 = vmatprep.subr.bf16.mxu0 %v1579_v20  ;;  %4448 = vmatpush3.bf16.msra.mxu1 %v1205_v9  ;;  %v1582_v57 = vpack.c.bf16 %v1569_v37, %v1568_v34  ;;  %v1581_v63 = vpack.c.bf16 %v1573_v39, %v1572_v4  ;;  %v1608_v29 = vsel %vm822_vm7, %v5150_v12, %v5155_v49 }
 0x28a   : > { %v5161_v50 = vunpack.i.h.bf16 %v5159_v46  ;;  %v5160_v55 = vunpack.i.l.bf16 %v5159_v46  ;;  %4453 = vmatprep.subr.bf16.mxu1 %v1580_v35  ;;  %v1609_v42 = vsel %vm822_vm7, %v5151_v62, %v5156_v48  ;;  %v5176_v15 = vunpack.i.h.bf16 %v5174_v44 }
 0x28b   : > { %4164 = vmatmul.mubr.msk.bf16.vlgmr.msra.gmra.mrb[8].mxu0 %vm528_vm0, %v6759_v59  ;;  %v5175_v60 = vunpack.i.l.bf16 %v5174_v44  ;;  %v1621_v16 = vpack.c.bf16 %v1609_v42, %v1608_v29 }
 0x28c   : > { %v1612_v61 = vsel %vm822_vm7, %v5160_v55, %v5150_v12  ;;  %1690 = vmatpush1.bf16.msra.mxu0 %v1578_v36  ;;  %v1613_v59 = vsel %vm822_vm7, %v5161_v50, %v5151_v62  ;;  %4450 = vmatmul.mubr.msk.bf16.vlgmr.msra.gmra.mrb[4].mxu1 %vm528_vm0, %v5941_v47  ;;  %v1616_v58 = vsel %vm822_vm7, %v5155_v49, %v5160_v55 }
 0x28d   : > { %v5184_v54 = vpop.permute.xlu0 %5183  ;;  %v5164_v43 = vpop.permute.xlu1 %5163  ;;  %1691 = vmatprep.subr.bf16.mxu0 %v1582_v57  ;;  %v1617_v6 = vsel %vm822_vm7, %v5156_v48, %v5161_v50  ;;  %4454 = vmatpush3.bf16.msra.mxu1 %v1580_v35  ;;  %v1620_v5 = vpack.c.bf16 %v1613_v59, %v1612_v61 }
 0x28e   : > { %v5186_v3 = vunpack.i.h.bf16 %v5184_v54  ;;  %v5185_v7 = vunpack.i.l.bf16 %v5184_v54  ;;  %v5166_v56 = vunpack.i.h.bf16 %v5164_v43  ;;  %v5165_v11 = vunpack.i.l.bf16 %v5164_v43  ;;  %1482 = vmatprep.mubr.bf16.mxu0 %v5990_v19  ;;  %4455 = vmatprep.subr.bf16.mxu1 %v1583_v22  ;;  %v5943_v54 = vld [vmem:[%s8508_s1 + $0x58] sm:$0xff]  }
 0x28f   : > { %4465 = vmatprep.mubr.msk.bf16.mxu1 %vm528_vm0, %v6889_v53  ;;  %v1622_v28 = vpack.c.bf16 %v1617_v6, %v1616_v58 }
 0x290   : > { %1692 = vmatpush1.bf16.msra.mxu0 %v1581_v63  ;;  %v1610_v40 = vsel %vm822_vm7, %v5185_v7, %v5165_v11  ;;  %v1611_v32 = vsel %vm822_vm7, %v5186_v3, %v5166_v56  ;;  %v1618_v45 = vsel %vm822_vm7, %v5165_v11, %v5175_v60  ;;  %v1619_v0 = vsel %vm822_vm7, %v5166_v56, %v5176_v15 }
 0x291   : > { %v5189_v17 = vpop.permute.xlu0 %5188  ;;  %v5179_v18 = vpop.permute.xlu1 %5178  ;;  %1693 = vmatprep.subr.bf16.mxu0 %v1621_v16  ;;  %4456 = vmatpush3.bf16.msra.mxu1 %v1583_v22  ;;  %v1614_v25 = vsel %vm822_vm7, %v5175_v60, %v5185_v7  ;;  %v1615_v27 = vsel %vm822_vm7, %v5176_v15, %v5186_v3  ;;  %v1624_v31 = vpack.c.bf16 %v1611_v32, %v1610_v40 }
 0x292   : > { %v5191_v41 = vunpack.i.h.bf16 %v5189_v17  ;;  %v5190_v8 = vunpack.i.l.bf16 %v5189_v17  ;;  %v5181_v21 = vunpack.i.h.bf16 %v5179_v18  ;;  %v5180_v1 = vunpack.i.l.bf16 %v5179_v18  ;;  %4457 = vmatprep.subr.bf16.mxu1 %v1622_v28 }
 0x293   : > { %4165 = vmatmul.mubr.msk.bf16.gmra.mrb[12].mxu0 %vm528_vm0, %v5941_v47  ;;  %v1625_v13 = vpack.c.bf16 %v1619_v0, %v1618_v45  ;;  %v1623_v20 = vpack.c.bf16 %v1615_v27, %v1614_v25 }
 0x294   : > { %1694 = vmatpush1.bf16.msra.mxu0 %v1620_v5  ;;  %v1650_v2 = vsel %vm865_vm8, %v5180_v1, %v5190_v8  ;;  %v1651_v9 = vsel %vm865_vm8, %v5181_v21, %v5191_v41  ;;  %1721 = vmatprep.mubr.bf16.mxu0 %v5990_v19 }
 0x295   : > { %v5204_v52 = vpop.permute.xlu0 %5203  ;;  %v5194_v23 = vpop.permute.xlu1 %5193  ;;  %1695 = vmatprep.subr.bf16.mxu0 %v1624_v31  ;;  %4458 = vmatpush3.bf16.msra.mxu1 %v1622_v28  ;;  %v1663_v10 = vpack.c.bf16 %v1651_v9, %v1650_v2  ;;  %v5958_v2 = vld [vmem:[%s6048_s26 + $0x40] sm:$0xff] }
 0x296   : > { %v5196_v14 = vunpack.i.h.bf16 %v5194_v23  ;;  %v5195_v51 = vunpack.i.l.bf16 %v5194_v23  ;;  %4459 = vmatprep.subr.bf16.mxu1 %v1625_v13  ;;  %v5206_v37 = vunpack.i.h.bf16 %v5204_v52  ;;  %v5205_v4 = vunpack.i.l.bf16 %v5204_v52  ;;  %v5959_v23 = vld [vmem:[%s6048_s26 + $0x58] sm:$0xff] }
 0x298   : > { %v1654_v30 = vsel %vm865_vm8, %v5195_v51, %v5180_v1  ;;  %v1655_v62 = vsel %vm865_vm8, %v5196_v14, %v5181_v21  ;;  %1696 = vmatpush1.bf16.msra.mxu0 %v1623_v20  ;;  %v1658_v12 = vsel %vm865_vm8, %v5190_v8, %v5195_v51  ;;  %v1659_v34 = vsel %vm865_vm8, %v5191_v41, %v5196_v14  ;;  %v5956_v41 = vld [vmem:[%s6048_s26] sm:$0xff]  ;;  %v5957_v21 = vld [vmem:[%s6048_s26 + $0x18] sm:$0xff] }
 0x299   : > { %v5209_v39 = vpop.permute.xlu0 %5208  ;;  %v5199_v44 = vpop.permute.xlu1 %5198  ;;  %1697 = vmatprep.subr.bf16.mxu0 %v1663_v10  ;;  %v1664_v46 = vpack.c.bf16 %v1659_v34, %v1658_v12  ;;  %v1662_v35 = vpack.c.bf16 %v1655_v62, %v1654_v30  ;;  %4460 = vmatpush3.bf16.msra.mxu1 %v1625_v13 }
 0x29a   : > { %v5211_v47 = vunpack.i.h.bf16 %v5209_v39  ;;  %v5210_v36 = vunpack.i.l.bf16 %v5209_v39  ;;  %v5201_v48 = vunpack.i.h.bf16 %v5199_v44  ;;  %v5200_v49 = vunpack.i.l.bf16 %v5199_v44 }
 0x29b   : > { %4461 = vmatprep.subr.bf16.mxu1 %v1664_v46 }
 0x29c   : > { %v1656_v50 = vsel %vm865_vm8, %v5210_v36, %v5205_v4  ;;  %v1657_v55 = vsel %vm865_vm8, %v5211_v47, %v5206_v37  ;;  %1698 = vmatpush1.bf16.msra.mxu0 %v1662_v35  ;;  %v1652_v57 = vsel %vm865_vm8, %v5205_v4, %v5200_v49  ;;  %v1653_v22 = vsel %vm865_vm8, %v5206_v37, %v5201_v48  ;;  %v5960_v4 = vld [vmem:[%s6048_s26 + $0x20] sm:$0xff] }
 0x29d   : > { %v1666_v61 = vpack.c.bf16 %v1653_v22, %v1652_v57  ;;  %v1660_v63 = vsel %vm865_vm8, %v5200_v49, %v5210_v36  ;;  %v1661_v29 = vsel %vm865_vm8, %v5201_v48, %v5211_v47  ;;  %v1665_v42 = vpack.c.bf16 %v1657_v55, %v1656_v50  ;;  %4462 = vmatpush3.bf16.msra.mxu1 %v1664_v46  ;;  %v5961_v46 = vld [vmem:[%s6048_s26 + $0x8] sm:$0xff]  ;;  %v5963_v55 = vld [vmem:[%s6048_s26 + $0x10] sm:$0xff] }
 0x29e   : > { %v1667_v59 = vpack.c.bf16 %v1661_v29, %v1660_v63  ;;  %v5962_v36 = vld [vmem:[%s6048_s26 + $0x28] sm:$0xff] }
 0x29f   : > { %1699 = vmatprep.subr.bf16.mxu0 %v1666_v61 }
 0x2a0   : > { %4463 = vmatprep.subr.bf16.mxu1 %v1667_v59  ;;  %1700 = vmatpush1.bf16.msra.mxu0 %v1665_v42 }
 0x2a1   : > { %4464 = vmatpush3.bf16.msra.mxu1 %v1667_v59 }
 0x2a3   : > { %4174 = vmatmul.mubr.msk.bf16.vlgmr.msra.gmra.mrb[8].mxu0 %vm528_vm0, %v6889_v53 }
 0x2a4   : > { %1731 = vmatprep.mubr.bf16.mxu0 %v5990_v19  ;;  %4466 = vmatmul.mubr.msk.bf16.vlgmr.msra.gmra.mrb[4].mxu1 %vm528_vm0, %v5943_v54 }
 0x2aa   : > { %v1806_v43 = vpop.permute.xlu1 %1805  ;;  %v1811_v58 = vpop.permute.xlu0 %1810 }
 0x2ab   : > { %4175 = vmatmul.mubr.msk.bf16.gmra.mrb[12].mxu0 %vm528_vm0, %v5943_v54  ;;  %v5964_v54 = vld [vmem:[%s6048_s26 + $0x48] sm:$0xff] }
 0x2ac   : > { %2138 = vmatprep.mubr.bf16.mxu0 %v5990_v19 }
 0x2ae   : > { %v1816_v3 = vpop.permute.xlu1 %1815  ;;  %v1821_v17 = vpop.permute.xlu0 %1820 }
 0x376   : > { %v1723_v6 = vpop.f32.mrb[8].mxu0 }
 0x377   : > { %v1823_v7 = vadd.f32 %v1806_v43, %v1723_v6  ;;  %v1725_v56 = vpop.f32.mrb[9].mxu0  ;;  %v4467_v11 = vpop.f32.mrb[4].mxu1 }
 0x378   : > { %v1727_v15 = vpop.f32.mrb[10].mxu0  ;;  %v1831_v60 = vadd.f32 %v4467_v11, %v1816_v3  ;;  %v1776_v16 = vpop.f32.mrb[5].mxu1  ;;  %v1824_v52 = vadd.f32 %v1806_v43, %v1725_v56 }
 0x379   : > { %v1835_v53 = vmul.f32 %v1823_v7, %v6458_v33  ;;  %v1826_v40 = vadd.f32 %v1811_v58, %v1727_v15  ;;  %v1729_v32 = vpop.f32.mrb[11].mxu0  ;;  %v4468_v18 = vpop.f32.mrb[6].mxu1  ;;  %v1825_v37 = vadd.f32 %v1806_v43, %v1776_v16 }
 0x37a   : > { %v1843_v28 = vmul.f32 %v1831_v60, %v6460_v38  ;;  %v1834_v45 = vadd.f32 %v4468_v18, %v1821_v17  ;;  %v1779_v0 = vpop.f32.mrb[7].mxu1  ;;  %v1827_v27 = vadd.f32 %v1811_v58, %v1729_v32  ;;  %v1836_v34 = vmul.f32 %v1824_v52, %v6462_v24  ;;  %v4178_v32 = vld [vmem:[%s8509_s2 + $0x40] sm:$0xff]  ;;  %v4180_v18 = vld [vmem:[%s8509_s2 + $0x50] sm:$0xff] }
 0x37b   : > { %v1838_v5 = vmul.f32 %v1826_v40, %v6458_v33  ;;  %v6958_v8 = vadd.f32 %v5956_v41, %v1835_v53  ;;  %v1828_v30 = vadd.f32 %v1811_v58, %v1779_v0  ;;  %v1837_v47 = vmul.f32 %v1825_v37, %v6460_v38  ;;  %v5965_v58 = vld [vmem:[%s6048_s26 + $0x30] sm:$0xff]  ;;  %v5967_v53 = vld [vmem:[%s6048_s26 + $0x38] sm:$0xff] }
 0x37c   : > { %v1846_v25 = vmul.f32 %v1834_v45, %v6460_v38  ;;  %v6965_v9 = vadd.f32 %v5958_v2, %v1843_v28  ;;  %v1839_v10 = vmul.f32 %v1827_v27, %v6462_v24  ;;  %v6991_v35 = vadd.f32 %v5961_v46, %v1836_v34  ;;  %v7050_v40 = vld [vmem:[%s8508_s1 + $0x70] sm:$0xff]   ;;  %v4181_v28 = vld [vmem:[%s8509_s2 + $0x58] sm:$0xff] }
 0x37d   : > { %v6961_v1 = vadd.f32 %v5957_v21, %v1838_v5  ;;  %v1840_v44 = vmul.f32 %v1828_v30, %v6460_v38  ;;  %v7004_v57 = vadd.f32 %v5963_v55, %v1837_v47  ;;  %4481 = vmatprep.mubr.msk.bf16.mxu1 %vm528_vm0, %v7050_v40 }
 0x37e   : > { %v1733_v31 = vpop.f32.mrb[12].mxu0  ;;  %v6968_v13 = vadd.f32 %v5959_v23, %v1846_v25  ;;  %v6985_v39 = vadd.f32 %v5960_v4, %v1839_v10 }
 0x37f   : > { %v1735_v14 = vpop.f32.mrb[13].mxu0  ;;  %v6972_v51 = vpack.i.bf16 %v6961_v1, %v6958_v8  ;;  %v6997_v48 = vadd.f32 %v5962_v36, %v1840_v44  ;;  %v1829_v22 = vadd.f32 %v1816_v3, %v1733_v31 }
 0x380   : > { %v1737_v20 = vpop.f32.mrb[14].mxu0  ;;  %v6977_v62 = vpack.i.bf16 %v6968_v13, %v6965_v9  ;;  %v5242_v50 = vpack.i.bf16 %v6985_v39, %v6991_v35  ;;  %v1830_v59 = vadd.f32 %v1816_v3, %v1735_v14  ;;  %v5966_v3 = vld [vmem:[%s6048_s26 + $0x50] sm:$0xff] }
 0x381   : > { %5213 = vrot.lane.b32.xlu1 %v6972_v51, %s5988_s27  ;;  %v1739_v12 = vpop.f32.mrb[15].mxu0  ;;  %v1832_v49 = vadd.f32 %v1821_v17, %v1737_v20  ;;  %v5257_v63 = vpack.i.bf16 %v6997_v48, %v7004_v57  ;;  %v1841_v29 = vmul.f32 %v1829_v22, %v6458_v33 }
 0x382   : > { %5218 = vrot.lane.b32.xlu0 %v6977_v62, %s5988_s27  ;;  %v1833_v42 = vadd.f32 %v1821_v17, %v1739_v12  ;;  %v1842_v56 = vmul.f32 %v1830_v59, %v6462_v24  ;;  %v4179_v17 = vld [vmem:[%s8509_s2 + $0x48] sm:$0xff] }
 0x383   : > { %v1844_v61 = vmul.f32 %v1832_v49, %v6458_v33  ;;  %v7019_v6 = vadd.f32 %v5965_v58, %v1841_v29 }
 0x384   : > { %v1845_v7 = vmul.f32 %v1833_v42, %v6462_v24  ;;  %v7032_v60 = vadd.f32 %v5967_v53, %v1842_v56 }
 0x385   : > { %5223 = vrot.lane.b32.xlu1 %v6972_v51, %s5989_s28  ;;  %v7015_v43 = vadd.f32 %v5964_v54, %v1844_v61 }
 0x386   : > { %5238 = vrot.lane.b32.xlu0 %v6977_v62, %s5991_s7  ;;  %v7028_v15 = vadd.f32 %v5966_v3, %v1845_v7 }
 0x387   : > { %v5272_v11 = vpack.i.bf16 %v7015_v43, %v7019_v6 }
 0x388   : > { %v5287_v16 = vpack.i.bf16 %v7028_v15, %v7032_v60 }
 0x389   : > { %5228 = vrot.lane.b32.xlu1 %v6977_v62, %s5989_s28 }
 0x38a   : > { %5243 = vrot.lane.b32.xlu0 %v5242_v50, %s5988_s27 }
 0x38d   : > { %5233 = vrot.lane.b32.xlu1 %v6972_v51, %s5991_s7 }
 0x38e   : > { %5258 = vrot.lane.b32.xlu0 %v5257_v63, %s5989_s28 }
 0x391   : > { %5248 = vrot.lane.b32.xlu1 %v5257_v63, %s5988_s27 }
 0x392   : > { %5263 = vrot.lane.b32.xlu0 %v5242_v50, %s5991_s7 }
 0x395   : > { %5253 = vrot.lane.b32.xlu1 %v5242_v50, %s5989_s28 }
 0x396   : > { %5273 = vrot.lane.b32.xlu0 %v5272_v11, %s5988_s27 }
 0x399   : > { %5268 = vrot.lane.b32.xlu1 %v5257_v63, %s5991_s7 }
 0x39a   : > { %5278 = vrot.lane.b32.xlu0 %v5272_v11, %s5989_s28 }
 0x39d   : > { %5288 = vrot.lane.b32.xlu1 %v5287_v16, %s5988_s27 }
 0x39e   : > { %5283 = vrot.lane.b32.xlu0 %v5272_v11, %s5991_s7 }
 0x3a1   : > { %5293 = vrot.lane.b32.xlu1 %v6972_v51, %s5992_s8 }
 0x3a2   : > { %5298 = vrot.lane.b32.xlu0 %v5242_v50, %s5992_s8 }
 0x3a5   : > { %5303 = vrot.lane.b32.xlu1 %v5257_v63, %s5992_s8 }
 0x3a6   : > { %5308 = vrot.lane.b32.xlu0 %v5272_v11, %s5992_s8 }
 0x3a9   : > { %5323 = vrot.lane.b32.xlu1 %v6972_v51, %s5993_s9 }
 0x3aa   : > { %5313 = vrot.lane.b32.xlu0 %v5287_v16, %s5989_s28 }
 0x3ad   : > { %5333 = vrot.lane.b32.xlu1 %v5257_v63, %s5993_s9 }
 0x3ae   : > { %5318 = vrot.lane.b32.xlu0 %v6977_v62, %s5992_s8 }
 0x3b1   : > { %5348 = vrot.lane.b32.xlu1 %v5242_v50, %s5994_s10 }
 0x3b2   : > { %5328 = vrot.lane.b32.xlu0 %v5242_v50, %s5993_s9 }
 0x3b5   : > { %5358 = vrot.lane.b32.xlu1 %v5287_v16, %s5991_s7 }
 0x3b6   : > { %5338 = vrot.lane.b32.xlu0 %v5272_v11, %s5993_s9 }
 0x3b9   : > { %5363 = vrot.lane.b32.xlu1 %v6972_v51, %s5994_s10 }
 0x3ba   : > { %5343 = vrot.lane.b32.xlu0 %v6977_v62, %s5993_s9 }
 0x3bd   : > { %5368 = vrot.lane.b32.xlu1 %v5287_v16, %s5992_s8 }
 0x3be   : > { %5353 = vrot.lane.b32.xlu0 %v5257_v63, %s5994_s10 }
 0x3c1   : > { %5373 = vrot.lane.b32.xlu1 %v6977_v62, %s5994_s10 }
 0x3c2   : > { %5378 = vrot.lane.b32.xlu0 %v5272_v11, %s5994_s10 }
 0x3c5   : > { %5383 = vrot.lane.b32.xlu1 %v5287_v16, %s5993_s9 }
 0x3c6   : > { %5393 = vrot.lane.b32.xlu0 %v5257_v63, %s5995_s11 }
 0x3c9   : > { %5388 = vrot.lane.b32.xlu1 %v5242_v50, %s5995_s11 }
 0x3ca   : > { %5408 = vrot.lane.b32.xlu0 %v5287_v16, %s5994_s10 }
 0x3cd   : > { %5398 = vrot.lane.b32.xlu1 %v6972_v51, %s5995_s11 }
 0x3ce   : > { %5413 = vrot.lane.b32.xlu0 %v5272_v11, %s5995_s11 }
 0x3d1   : > { %5403 = vrot.lane.b32.xlu1 %v6977_v62, %s5995_s11 }
 0x3d2   : > { %5423 = vrot.lane.b32.xlu0 %v5287_v16, %s5995_s11 }
 0x3d5   : > { %5418 = vrot.lane.b32.xlu1 %v5242_v50, %s5996_s12 }
 0x3d6   : > { %5428 = vrot.lane.b32.xlu0 %v5257_v63, %s5996_s12 }
 0x3d9   : > { %5433 = vrot.lane.b32.xlu1 %v6972_v51, %s5996_s12 }
 0x3da   : > { %5443 = vrot.lane.b32.xlu0 %v5287_v16, %s5996_s12 }
 0x3dd   : > { %5438 = vrot.lane.b32.xlu1 %v6977_v62, %s5996_s12 }
 0x3de   : > { %5448 = vrot.lane.b32.xlu0 %v5272_v11, %s5996_s12 }
 0x3e1   : > { %2589 = vperm.xlu1 %4971, %v4178_v32  }
 0x3e2   : > { %2594 = vperm.xlu0 %4970, %v4179_v17  }
 0x3e5   : > { %2599 = vperm.xlu1 %4971, %v4180_v18  }
 0x3e6   : > { %2604 = vperm.xlu0 %4970, %v4181_v28  }
 0x3f3   : > { %v5214_v5 = vpop.permute.xlu1 %5213 }
 0x3f4   : > { %v5219_v45 = vpop.permute.xlu0 %5218  ;;  %v5216_v27 = vunpack.i.h.bf16 %v5214_v5  ;;  %v5215_v31 = vunpack.i.l.bf16 %v5214_v5 }
 0x3f5   : > { %v5221_v29 = vunpack.i.h.bf16 %v5219_v45  ;;  %v5220_v42 = vunpack.i.l.bf16 %v5219_v45 }
 0x3f7   : > { %v7101_v0 = vpop.permute.xlu1 %5223 }
 0x3f8   : > { %v7103_v41 = vpop.permute.xlu0 %5238 }
 0x3fb   : > { %v7105_v21 = vpop.permute.xlu1 %5228 }
 0x3fc   : > { %v5244_v25 = vpop.permute.xlu0 %5243 }
 0x3fd   : > { %v5246_v2 = vunpack.i.h.bf16 %v5244_v25  ;;  %v5245_v52 = vunpack.i.l.bf16 %v5244_v25  ;;  %v2038_v25 = vpack.c.bf16 %v6985_v39, %v6991_v35 }
 0x3ff   : > { %v7107_v23 = vpop.permute.xlu1 %5233  ;;  %v2023_v14 = vsel %vm445_vm1, %v5215_v31, %v5245_v52  ;;  %v2024_v51 = vsel %vm445_vm1, %v5216_v27, %v5246_v2 }
 0x400   : > { %v7113_v20 = vpop.permute.xlu0 %5258  ;;  %v2032_v10 = vpack.c.bf16 %v2024_v51, %v2023_v14  ;;  %v2039_v51 = vpack.c.bf16 %v6997_v48, %v7004_v57 }
 0x402   : > { %2106 = vmatprep.subr.bf16.mxu0 %v2032_v10  ;;  %v2037_v10 = vpack.c.bf16 %v6961_v1, %v6958_v8 }
 0x403   : > { %v5249_v30 = vpop.permute.xlu1 %5248 }
 0x404   : > { %v5251_v62 = vunpack.i.h.bf16 %v5249_v30  ;;  %v5250_v12 = vunpack.i.l.bf16 %v5249_v30  ;;  %v7115_v34 = vpop.permute.xlu0 %5263  ;;  %v2041_v30 = vpack.c.bf16 %v7028_v15, %v7032_v60 }
 0x406   : > { %v2027_v37 = vsel %vm445_vm1, %v5250_v12, %v5215_v31  ;;  %v2028_v4 = vsel %vm445_vm1, %v5251_v62, %v5216_v27  ;;  %v2019_v47 = vsel %vm445_vm1, %v5245_v52, %v5250_v12  ;;  %v2020_v36 = vsel %vm445_vm1, %v5246_v2, %v5251_v62 }
 0x407   : > { %v7121_v44 = vpop.permute.xlu1 %5253  ;;  %v2031_v46 = vpack.c.bf16 %v2028_v4, %v2027_v37  ;;  %v2033_v49 = vpack.c.bf16 %v2020_v36, %v2019_v47  ;;  %v5261_v2 = vunpack.i.h.bf16 %v7113_v20  ;;  %v5260_v52 = vunpack.i.l.bf16 %v7113_v20 }
 0x408   : > { %v5274_v50 = vpop.permute.xlu0 %5273  ;;  %v5256_v27 = vunpack.i.h.bf16 %v7121_v44  ;;  %v5255_v31 = vunpack.i.l.bf16 %v7121_v44  ;;  %v2042_v62 = vpack.c.bf16 %v6968_v13, %v6965_v9  ;;  %v2040_v20 = vpack.c.bf16 %v7015_v43, %v7019_v6 }
 0x409   : > { %2107 = vmatpush1.bf16.msra.mxu0 %v2031_v46  ;;  %4469 = vmatprep.subr.bf16.mxu1 %v2033_v49  ;;  %v5276_v22 = vunpack.i.h.bf16 %v5274_v50  ;;  %v5275_v61 = vunpack.i.l.bf16 %v5274_v50  ;;  %v5241_v12 = vunpack.i.h.bf16 %v7103_v41  ;;  %v5240_v37 = vunpack.i.l.bf16 %v7103_v41 }
 0x40a   : > { %4470 = vmatpush3.bf16.msra.mxu1 %v2033_v49  ;;  %v5226_v4 = vunpack.i.h.bf16 %v7101_v0  ;;  %v5225_v44 = vunpack.i.l.bf16 %v7101_v0  ;;  %v5231_v47 = vunpack.i.h.bf16 %v7105_v21  ;;  %v5230_v36 = vunpack.i.l.bf16 %v7105_v21 }
 0x40b   : > { %v7127_v55 = vpop.permute.xlu1 %5268  ;;  %v2030_v7 = vsel %vm445_vm1, %v5221_v29, %v5276_v22  ;;  %v2029_v56 = vsel %vm445_vm1, %v5220_v42, %v5275_v61  ;;  %v2067_v49 = vsel %vm494_vm2, %v5255_v31, %v5260_v52  ;;  %v2068_v50 = vsel %vm494_vm2, %v5256_v27, %v5261_v2 }
 0x40c   : > { %v7129_v63 = vpop.permute.xlu0 %5278  ;;  %v2034_v28 = vpack.c.bf16 %v2030_v7, %v2029_v56  ;;  %v2075_v0 = vsel %vm494_vm2, %v5260_v52, %v5225_v44  ;;  %v2076_v21 = vsel %vm494_vm2, %v5261_v2, %v5226_v4  ;;  %v2072_v7 = vsel %vm494_vm2, %v5226_v4, %v5256_v27 }
 0x40d   : > { %v2071_v56 = vsel %vm494_vm2, %v5225_v44, %v5255_v31 }
 0x40e   : > { %v2079_v31 = vpack.c.bf16 %v2072_v7, %v2071_v56 }
 0x40f   : > { %v5289_v59 = vpop.permute.xlu1 %5288 }
 0x410   : > { %v5291_v54 = vunpack.i.h.bf16 %v5289_v59  ;;  %v5290_v58 = vunpack.i.l.bf16 %v5289_v59  ;;  %v7135_v11 = vpop.permute.xlu0 %5283  ;;  %v5266_v59 = vunpack.i.h.bf16 %v7115_v34 }
 0x412   : > { %v2025_v3 = vsel %vm445_vm1, %v5275_v61, %v5290_v58  ;;  %v2026_v53 = vsel %vm445_vm1, %v5276_v22, %v5291_v54  ;;  %v2021_v17 = vsel %vm445_vm1, %v5290_v58, %v5220_v42  ;;  %v2022_v18 = vsel %vm445_vm1, %v5291_v54, %v5221_v29 }
 0x413   : > { %v7141_v16 = vpop.permute.xlu1 %5293  ;;  %v2035_v32 = vpack.c.bf16 %v2026_v53, %v2025_v3  ;;  %v2036_v45 = vpack.c.bf16 %v2022_v18, %v2021_v17  ;;  %v5281_v22 = vunpack.i.h.bf16 %v7129_v63  ;;  %v5280_v61 = vunpack.i.l.bf16 %v7129_v63 }
 0x414   : > { %v7147_v5 = vpop.permute.xlu0 %5298  ;;  %v5236_v42 = vunpack.i.h.bf16 %v7107_v23  ;;  %v5265_v54 = vunpack.i.l.bf16 %v7115_v34  ;;  %v5271_v58 = vunpack.i.h.bf16 %v7127_v55  ;;  %v5235_v63 = vunpack.i.l.bf16 %v7107_v23 }
 0x415   : > { %2108 = vmatprep.subr.bf16.mxu0 %v2035_v32  ;;  %4471 = vmatprep.subr.bf16.mxu1 %v2036_v45  ;;  %v2080_v53 = vpack.c.bf16 %v2068_v50, %v2067_v49  ;;  %v5270_v32 = vunpack.i.l.bf16 %v7127_v55  ;;  %v2081_v34 = vpack.c.bf16 %v2076_v21, %v2075_v0  ;;  %v2078_v27 = vsel %vm494_vm2, %v5231_v47, %v5281_v22 }
 0x416   : > { %2109 = vmatpush1.bf16.msra.mxu0 %v2034_v28  ;;  %4472 = vmatpush3.bf16.msra.mxu1 %v2036_v45  ;;  %v5286_v28 = vunpack.i.h.bf16 %v7135_v11  ;;  %v5285_v45 = vunpack.i.l.bf16 %v7135_v11  ;;  %v1897_v55 = vsel %vm312_vm3, %v5271_v58, %v5236_v42  ;;  %v1892_v2 = vsel %vm312_vm3, %v5235_v63, %v5265_v54 }
 0x417   : > { %v7155_v14 = vpop.permute.xlu1 %5303  ;;  %2110 = vmatprep.subr.bf16.mxu0 %v2038_v25  ;;  %4473 = vmatprep.subr.bf16.mxu1 %v2039_v51  ;;  %v2077_v25 = vsel %vm494_vm2, %v5230_v36, %v5280_v61  ;;  %v1893_v52 = vsel %vm312_vm3, %v5236_v42, %v5266_v59  ;;  %v1896_v4 = vsel %vm312_vm3, %v5270_v32, %v5235_v63  ;;  %v5301_v21 = vunpack.i.h.bf16 %v7147_v5 }
 0x418   : > { %v7171_v46 = vpop.permute.xlu0 %5308  ;;  %v2084_v44 = vpack.c.bf16 %v2078_v27, %v2077_v25  ;;  %v1888_v49 = vsel %vm312_vm3, %v5265_v54, %v5270_v32  ;;  %v1889_v50 = vsel %vm312_vm3, %v5266_v59, %v5271_v58  ;;  %v5300_v42 = vunpack.i.l.bf16 %v7147_v5  ;;  %v5945_v5 = vld [vmem:[%s8508_s1 + $0x78] sm:$0xff]   ;;  %v7263_v25 = vld [vmem:[%s8508_s1 + $0x60] sm:$0xff]  }
 0x419   : > { %v5295_v59 = vunpack.i.l.bf16 %v7141_v16  ;;  %v5306_v58 = vunpack.i.h.bf16 %v7155_v14  ;;  %v5305_v63 = vunpack.i.l.bf16 %v7155_v14  ;;  %v1901_v56 = vpack.c.bf16 %v1893_v52, %v1892_v2 }
 0x41a   : > { %2111 = vmatpush1.bf16.msra.mxu0 %v2037_v10  ;;  %4474 = vmatpush3.bf16.msra.mxu1 %v2039_v51  ;;  %v5311_v27 = vunpack.i.h.bf16 %v7171_v46 }
 0x41b   : > { %v7181_v29 = vpop.permute.xlu1 %5323  ;;  %2112 = vmatprep.subr.bf16.mxu0 %v2041_v30  ;;  %4475 = vmatprep.subr.bf16.mxu1 %v2042_v62 }
 0x41c   : > { %v5314_v3 = vpop.permute.xlu0 %5313 }
 0x41d   : > { %v5316_v17 = vunpack.i.h.bf16 %v5314_v3  ;;  %v5315_v18 = vunpack.i.l.bf16 %v5314_v3 }
 0x41e   : > { %2113 = vmatpush1.bf16.msra.mxu0 %v2040_v20  ;;  %4476 = vmatpush3.bf16.msra.mxu1 %v2042_v62 }
 0x41f   : > { %v7199_v23 = vpop.permute.xlu1 %5333  ;;  %2114 = vmatprep.subr.bf16.mxu0 %v2080_v53  ;;  %v2074_v51 = vsel %vm494_vm2, %v5281_v22, %v5316_v17  ;;  %v2073_v10 = vsel %vm494_vm2, %v5280_v61, %v5315_v18  ;;  %4477 = vmatprep.subr.bf16.mxu1 %v2081_v34  ;;  %v2069_v20 = vsel %vm494_vm2, %v5315_v18, %v5230_v36  ;;  %v5296_v22 = vunpack.i.h.bf16 %v7141_v16 }
 0x420   : > { %v7215_v30 = vpop.permute.xlu0 %5318  ;;  %v2070_v62 = vsel %vm494_vm2, %v5316_v17, %v5231_v47  ;;  %v7233_v36 = vsel %vm312_vm3, %v5241_v12, %v5286_v28  ;;  %v7239_v47 = vsel %vm312_vm3, %v5240_v37, %v5285_v45  ;;  %v2082_v54 = vpack.c.bf16 %v2074_v51, %v2073_v10 }
 0x421   : > { %v2083_v0 = vpack.c.bf16 %v2070_v62, %v2069_v20  ;;  %v1902_v53 = vpack.c.bf16 %v1889_v50, %v1888_v49  ;;  %v1900_v16 = vpack.c.bf16 %v1897_v55, %v1896_v4  ;;  %v1903_v32 = vpack.c.bf16 %v7233_v36, %v7239_v47 }
 0x422   : > { %2115 = vmatpush1.bf16.msra.mxu0 %v2079_v31  ;;  %4478 = vmatpush3.bf16.msra.mxu1 %v2081_v34  ;;  %v1934_v18 = vsel %vm355_vm4, %v5295_v59, %v5300_v42  ;;  %v1935_v34 = vsel %vm355_vm4, %v5296_v22, %v5301_v21  ;;  %v5310_v55 = vunpack.i.l.bf16 %v7171_v46  ;;  %v1938_v31 = vsel %vm355_vm4, %v5305_v63, %v5295_v59 }
 0x423   : > { %v7242_v61 = vpop.permute.xlu1 %5348  ;;  %2116 = vmatprep.subr.bf16.mxu0 %v2083_v0  ;;  %4479 = vmatprep.subr.bf16.mxu1 %v2084_v44  ;;  %v1939_v2 = vsel %vm355_vm4, %v5306_v58, %v5296_v22  ;;  %v5321_v51 = vunpack.i.h.bf16 %v7215_v30  ;;  %v5320_v10 = vunpack.i.l.bf16 %v7215_v30  ;;  %v5335_v62 = vunpack.i.l.bf16 %v7199_v23 }
 0x424   : > { %v7249_v7 = vpop.permute.xlu0 %5328  ;;  %v1931_v49 = vsel %vm355_vm4, %v5301_v21, %v5306_v58  ;;  %v5326_v36 = vunpack.i.h.bf16 %v7181_v29  ;;  %v1942_v59 = vpack.c.bf16 %v1939_v2, %v1938_v31 }
 0x425   : > { %v5331_v41 = vunpack.i.h.bf16 %v7249_v7  ;;  %v5330_v50 = vunpack.i.l.bf16 %v7249_v7  ;;  %v1941_v47 = vsel %vm355_vm4, %v5321_v51, %v5311_v27  ;;  %v1940_v22 = vsel %vm355_vm4, %v5320_v10, %v5310_v55 }
 0x426   : > { %2117 = vmatpush1.bf16.msra.mxu0 %v2082_v54  ;;  %4480 = vmatpush3.bf16.msra.mxu1 %v2084_v44  ;;  %v1930_v44 = vsel %vm355_vm4, %v5300_v42, %v5305_v63  ;;  %v5350_v7 = vunpack.i.l.bf16 %v7242_v61 }
 0x427   : > { %v5359_v3 = vpop.permute.xlu1 %5358  ;;  %2224 = vmatprep.subr.bf16.mxu0 %v1901_v56  ;;  %4485 = vmatprep.subr.bf16.mxu1 %v1902_v53  ;;  %v1944_v42 = vpack.c.bf16 %v1931_v49, %v1930_v44 }
 0x428   : > { %v5361_v17 = vunpack.i.h.bf16 %v5359_v3  ;;  %v5360_v14 = vunpack.i.l.bf16 %v5359_v3  ;;  %v7271_v52 = vpop.permute.xlu0 %5338  ;;  %v1945_v3 = vpack.c.bf16 %v1941_v47, %v1940_v22 }
 0x429   : > { %4192 = vmatmul.mubr.msk.bf16.vlgmr.msra.gmra.mrb[16].mxu0 %vm528_vm0, %v7050_v40  ;;  %4482 = vmatmul.mubr.msk.bf16.vlgmr.msra.gmra.mrb[8].mxu1 %vm528_vm0, %v5945_v5 }
 0x42a   : > { %2225 = vmatpush1.bf16.msra.mxu0 %v1900_v16  ;;  %v1894_v46 = vsel %vm312_vm3, %v5285_v45, %v5360_v14  ;;  %v1895_v20 = vsel %vm312_vm3, %v5286_v28, %v5361_v17  ;;  %2148 = vmatprep.mubr.bf16.mxu0 %v5990_v19  ;;  %v1890_v30 = vsel %vm312_vm3, %v5360_v14, %v5240_v37  ;;  %v5336_v28 = vunpack.i.h.bf16 %v7199_v23 }
 0x42b   : > { %v7286_v40 = vpop.permute.xlu1 %5363  ;;  %v1904_v4 = vpack.c.bf16 %v1895_v20, %v1894_v46  ;;  %v1891_v11 = vsel %vm312_vm3, %v5361_v17, %v5241_v12  ;;  %4486 = vmatpush3.bf16.msra.mxu1 %v1902_v53  ;;  %4497 = vmatprep.mubr.msk.bf16.mxu1 %vm528_vm0, %v7263_v25  ;;  %v5325_v37 = vunpack.i.l.bf16 %v7181_v29  ;;  %v1943_v23 = vpack.c.bf16 %v1935_v34, %v1934_v18 }
 0x42c   : > { %v1905_v45 = vpack.c.bf16 %v1891_v11, %v1890_v30  ;;  %v7306_v12 = vpop.permute.xlu0 %5343  ;;  %v1981_v54 = vsel %vm398_vm5, %v5336_v28, %v5326_v36  ;;  %v5351_v29 = vunpack.i.h.bf16 %v7242_v61  ;;  %v1977_v16 = vsel %vm398_vm5, %v5326_v36, %v5331_v41 }
 0x42d   : > { %2226 = vmatprep.subr.bf16.mxu0 %v1904_v4  ;;  %v1980_v0 = vsel %vm398_vm5, %v5335_v62, %v5325_v37  ;;  %v1976_v53 = vsel %vm398_vm5, %v5325_v37, %v5330_v50  ;;  %v5365_v17 = vunpack.i.l.bf16 %v7286_v40  ;;  %v5345_v18 = vunpack.i.l.bf16 %v7306_v12 }
 0x42e   : > { %4487 = vmatprep.subr.bf16.mxu1 %v1905_v45  ;;  %2227 = vmatpush1.bf16.msra.mxu0 %v1903_v32  ;;  %v5366_v32 = vunpack.i.h.bf16 %v7286_v40  ;;  %v5346_v46 = vunpack.i.h.bf16 %v7306_v12  ;;  %v1973_v20 = vsel %vm398_vm5, %v5331_v41, %v5336_v28  ;;  %v5340_v40 = vunpack.i.l.bf16 %v7271_v52 }
 0x42f   : > { %v5369_v21 = vpop.permute.xlu1 %5368  ;;  %2228 = vmatprep.subr.bf16.mxu0 %v1943_v23  ;;  %4488 = vmatpush3.bf16.msra.mxu1 %v1905_v45  ;;  %v5341_v45 = vunpack.i.h.bf16 %v7271_v52 }
 0x430   : > { %v5371_v58 = vunpack.i.h.bf16 %v5369_v21  ;;  %v5370_v63 = vunpack.i.l.bf16 %v5369_v21  ;;  %v5354_v56 = vpop.permute.xlu0 %5353  ;;  %4489 = vmatprep.subr.bf16.mxu1 %v1944_v42  ;;  %v1982_v44 = vsel %vm398_vm5, %v5345_v18, %v5340_v40  ;;  %v2355_v28 = vsel %vm779_vm6, %v5366_v32, %v5351_v29 }
 0x431   : > { %4193 = vmatmul.mubr.msk.bf16.gmra.mrb[20].mxu0 %vm528_vm0, %v5945_v5  ;;  %v5356_v4 = vunpack.i.h.bf16 %v5354_v56  ;;  %v5355_v30 = vunpack.i.l.bf16 %v5354_v56  ;;  %v1983_v41 = vsel %vm398_vm5, %v5346_v46, %v5341_v45 }
 0x432   : > { %2229 = vmatpush1.bf16.msra.mxu0 %v1942_v59  ;;  %v1936_v14 = vsel %vm355_vm4, %v5310_v55, %v5370_v63  ;;  %v1937_v61 = vsel %vm355_vm4, %v5311_v27, %v5371_v58  ;;  %2256 = vmatprep.mubr.bf16.mxu0 %v5990_v19  ;;  %v1932_v5 = vsel %vm355_vm4, %v5370_v63, %v5320_v10 }
 0x433   : > { %v7332_v34 = vpop.permute.xlu1 %5373  ;;  %v1946_v31 = vpack.c.bf16 %v1937_v61, %v1936_v14  ;;  %v1933_v2 = vsel %vm355_vm4, %v5371_v58, %v5321_v51  ;;  %4490 = vmatpush3.bf16.msra.mxu1 %v1944_v42  ;;  %v1972_v27 = vsel %vm398_vm5, %v5330_v50, %v5335_v62  ;;  %v1985_v10 = vpack.c.bf16 %v1977_v16, %v1976_v53 }
 0x434   : > { %v1947_v55 = vpack.c.bf16 %v1933_v2, %v1932_v5  ;;  %v5379_v11 = vpop.permute.xlu0 %5378  ;;  %v1984_v51 = vpack.c.bf16 %v1981_v54, %v1980_v0  ;;  %v2354_v62 = vsel %vm779_vm6, %v5365_v17, %v5350_v7  ;;  %v1986_v37 = vpack.c.bf16 %v1973_v20, %v1972_v27 }
 0x435   : > { %2230 = vmatprep.subr.bf16.mxu0 %v1946_v31  ;;  %v5376_v52 = vunpack.i.h.bf16 %v7332_v34  ;;  %v5375_v23 = vunpack.i.l.bf16 %v7332_v34  ;;  %v2350_v47 = vsel %vm779_vm6, %v5350_v7, %v5355_v30  ;;  %v2351_v22 = vsel %vm779_vm6, %v5351_v29, %v5356_v4 }
 0x436   : > { %4491 = vmatprep.subr.bf16.mxu1 %v1947_v55  ;;  %2231 = vmatpush1.bf16.msra.mxu0 %v1945_v3  ;;  %v2358_v0 = vsel %vm779_vm6, %v5355_v30, %v5365_v17  ;;  %v5381_v21 = vunpack.i.h.bf16 %v5379_v11  ;;  %v2359_v54 = vsel %vm779_vm6, %v5356_v4, %v5366_v32  ;;  %v5380_v58 = vunpack.i.l.bf16 %v5379_v11 }
 0x437   : > { %v5384_v49 = vpop.permute.xlu1 %5383  ;;  %2232 = vmatprep.subr.bf16.mxu0 %v1985_v10  ;;  %4492 = vmatpush3.bf16.msra.mxu1 %v1947_v55  ;;  %v1987_v53 = vpack.c.bf16 %v1983_v41, %v1982_v44  ;;  %v2363_v17 = vpack.c.bf16 %v2351_v22, %v2350_v47  ;;  %v2364_v14 = vpack.c.bf16 %v2359_v54, %v2358_v0  ;;  %v7389_v10 = vld [vmem:[%s8508_s1 + $0x80] sm:$0xff]  }
 0x438   : > { %v5386_v50 = vunpack.i.h.bf16 %v5384_v49  ;;  %v5385_v12 = vunpack.i.l.bf16 %v5384_v49  ;;  %v7355_v36 = vpop.permute.xlu0 %5393  ;;  %4493 = vmatprep.subr.bf16.mxu1 %v1986_v37  ;;  %v2362_v61 = vpack.c.bf16 %v2355_v28, %v2354_v62  ;;  %v2360_v27 = vsel %vm779_vm6, %v5375_v23, %v5380_v58 }
 0x439   : > { %v5396_v2 = vunpack.i.h.bf16 %v7355_v36  ;;  %v2361_v20 = vsel %vm779_vm6, %v5376_v52, %v5381_v21 }
 0x43a   : > { %2233 = vmatpush1.bf16.msra.mxu0 %v1984_v51  ;;  %v1978_v42 = vsel %vm398_vm5, %v5340_v40, %v5385_v12  ;;  %v1979_v59 = vsel %vm398_vm5, %v5341_v45, %v5386_v50  ;;  %v1974_v29 = vsel %vm398_vm5, %v5385_v12, %v5345_v18  ;;  %v1975_v56 = vsel %vm398_vm5, %v5386_v50, %v5346_v46  ;;  %v5947_v46 = vld [vmem:[%s8508_s1 + $0x68] sm:$0xff]  }
 0x43b   : > { %v5389_v63 = vpop.permute.xlu1 %5388  ;;  %v1988_v7 = vpack.c.bf16 %v1979_v59, %v1978_v42  ;;  %4494 = vmatpush3.bf16.msra.mxu1 %v1986_v37  ;;  %v1989_v3 = vpack.c.bf16 %v1975_v56, %v1974_v29  ;;  %v5395_v18 = vunpack.i.l.bf16 %v7355_v36  ;;  %v2367_v62 = vpack.c.bf16 %v2361_v20, %v2360_v27 }
 0x43c   : > { %v5409_v16 = vpop.permute.xlu0 %5408  ;;  %v5391_v32 = vunpack.i.h.bf16 %v5389_v63  ;;  %v5390_v5 = vunpack.i.l.bf16 %v5389_v63 }
 0x43d   : > { %2234 = vmatprep.subr.bf16.mxu0 %v1988_v7  ;;  %v5411_v34 = vunpack.i.h.bf16 %v5409_v16  ;;  %v5410_v31 = vunpack.i.l.bf16 %v5409_v16  ;;  %4495 = vmatprep.subr.bf16.mxu1 %v1989_v3 }
 0x43e   : > { %2235 = vmatpush1.bf16.msra.mxu0 %v1987_v53  ;;  %v2392_v28 = vsel %vm822_vm7, %v5390_v5, %v5395_v18  ;;  %v2393_v49 = vsel %vm822_vm7, %v5391_v32, %v5396_v2 }
 0x43f   : > { %v5399_v55 = vpop.permute.xlu1 %5398  ;;  %2473 = vmatprep.subr.bf16.mxu0 %v2363_v17  ;;  %v2356_v40 = vsel %vm779_vm6, %v5380_v58, %v5410_v31  ;;  %v2357_v4 = vsel %vm779_vm6, %v5381_v21, %v5411_v34  ;;  %4496 = vmatpush3.bf16.msra.mxu1 %v1989_v3  ;;  %v2352_v51 = vsel %vm779_vm6, %v5410_v31, %v5375_v23 }
 0x440   : > { %v5401_v30 = vunpack.i.h.bf16 %v5399_v55  ;;  %v5400_v11 = vunpack.i.l.bf16 %v5399_v55  ;;  %v5414_v45 = vpop.permute.xlu0 %5413  ;;  %4501 = vmatprep.subr.bf16.mxu1 %v2364_v14  ;;  %v2353_v44 = vsel %vm779_vm6, %v5411_v34, %v5376_v52  ;;  %v2365_v50 = vpack.c.bf16 %v2357_v4, %v2356_v40 }
 0x441   : > { %4198 = vmatmul.mubr.msk.bf16.vlgmr.msra.gmra.mrb[16].mxu0 %vm528_vm0, %v7263_v25  ;;  %v2366_v52 = vpack.c.bf16 %v2353_v44, %v2352_v51  ;;  %v5416_v22 = vunpack.i.h.bf16 %v5414_v45  ;;  %v5415_v0 = vunpack.i.l.bf16 %v5414_v45  ;;  %v2405_v42 = vpack.c.bf16 %v2393_v49, %v2392_v28 }
 0x442   : > { %2474 = vmatpush1.bf16.msra.mxu0 %v2362_v61  ;;  %2266 = vmatprep.mubr.bf16.mxu0 %v5990_v19  ;;  %v2396_v37 = vsel %vm822_vm7, %v5400_v11, %v5390_v5  ;;  %v2397_v25 = vsel %vm822_vm7, %v5401_v30, %v5391_v32  ;;  %v2400_v36 = vsel %vm822_vm7, %v5395_v18, %v5400_v11 }
 0x443   : > { %4498 = vmatmul.mubr.msk.bf16.vlgmr.msra.gmra.mrb[8].mxu1 %vm528_vm0, %v5947_v46  ;;  %v5404_v41 = vpop.permute.xlu1 %5403  ;;  %v2401_v47 = vsel %vm822_vm7, %v5396_v2, %v5401_v30  ;;  %2475 = vmatprep.subr.bf16.mxu0 %v2366_v52  ;;  %v2404_v7 = vpack.c.bf16 %v2397_v25, %v2396_v37 }
 0x444   : > { %4502 = vmatpush3.bf16.msra.mxu1 %v2364_v14  ;;  %v5406_v12 = vunpack.i.h.bf16 %v5404_v41  ;;  %v5405_v23 = vunpack.i.l.bf16 %v5404_v41  ;;  %4513 = vmatprep.mubr.msk.bf16.mxu1 %vm528_vm0, %v7389_v10  ;;  %v5424_v21 = vpop.permute.xlu0 %5423  ;;  %v2406_v63 = vpack.c.bf16 %v2401_v47, %v2400_v36 }
 0x445   : > { %4503 = vmatprep.subr.bf16.mxu1 %v2367_v62  ;;  %v5426_v59 = vunpack.i.h.bf16 %v5424_v21  ;;  %v5425_v54 = vunpack.i.l.bf16 %v5424_v21 }
 0x446   : > { %2476 = vmatpush1.bf16.msra.mxu0 %v2365_v50  ;;  %v2402_v29 = vsel %vm822_vm7, %v5405_v23, %v5415_v0  ;;  %v2403_v56 = vsel %vm822_vm7, %v5406_v12, %v5416_v22 }
 0x447   : > { %v5419_v58 = vpop.permute.xlu1 %5418  ;;  %2477 = vmatprep.subr.bf16.mxu0 %v2405_v42  ;;  %v2398_v3 = vsel %vm822_vm7, %v5415_v0, %v5425_v54  ;;  %v2399_v53 = vsel %vm822_vm7, %v5416_v22, %v5426_v59  ;;  %v2394_v61 = vsel %vm822_vm7, %v5425_v54, %v5405_v23  ;;  %v2395_v34 = vsel %vm822_vm7, %v5426_v59, %v5406_v12 }
 0x448   : > { %4504 = vmatpush3.bf16.msra.mxu1 %v2367_v62  ;;  %v5421_v16 = vunpack.i.h.bf16 %v5419_v58  ;;  %v5420_v17 = vunpack.i.l.bf16 %v5419_v58  ;;  %v5429_v14 = vpop.permute.xlu0 %5428  ;;  %v2408_v5 = vpack.c.bf16 %v2395_v34, %v2394_v61  ;;  %v2409_v18 = vpack.c.bf16 %v2403_v56, %v2402_v29 }
 0x449   : > { %4505 = vmatprep.subr.bf16.mxu1 %v2406_v63  ;;  %4199 = vmatmul.mubr.msk.bf16.gmra.mrb[20].mxu0 %vm528_vm0, %v5947_v46  ;;  %v5431_v31 = vunpack.i.h.bf16 %v5429_v14  ;;  %v5430_v32 = vunpack.i.l.bf16 %v5429_v14  ;;  %v2407_v55 = vpack.c.bf16 %v2399_v53, %v2398_v3 }
 0x44a   : > { %2478 = vmatpush1.bf16.msra.mxu0 %v2404_v7  ;;  %2505 = vmatprep.mubr.bf16.mxu0 %v5990_v19 }
 0x44b   : > { %v5434_v2 = vpop.permute.xlu1 %5433  ;;  %2479 = vmatprep.subr.bf16.mxu0 %v2408_v5  ;;  %v2434_v40 = vsel %vm865_vm8, %v5420_v17, %v5430_v32  ;;  %v2435_v4 = vsel %vm865_vm8, %v5421_v16, %v5431_v31 }
 0x44c   : > { %4506 = vmatpush3.bf16.msra.mxu1 %v2406_v63  ;;  %v5436_v27 = vunpack.i.h.bf16 %v5434_v2  ;;  %v5435_v20 = vunpack.i.l.bf16 %v5434_v2  ;;  %v5444_v46 = vpop.permute.xlu0 %5443  ;;  %v2447_v30 = vpack.c.bf16 %v2435_v4, %v2434_v40  ;;  %v5949_v63 = vld [vmem:[%s8508_s1 + $0x88] sm:$0xff]  }
 0x44d   : > { %4507 = vmatprep.subr.bf16.mxu1 %v2409_v18  ;;  %v5446_v51 = vunpack.i.h.bf16 %v5444_v46  ;;  %v5445_v37 = vunpack.i.l.bf16 %v5444_v46 }
 0x44e   : > { %v2438_v11 = vsel %vm865_vm8, %v5435_v20, %v5420_v17  ;;  %v2439_v45 = vsel %vm865_vm8, %v5436_v27, %v5421_v16  ;;  %2480 = vmatpush1.bf16.msra.mxu0 %v2407_v55  ;;  %v2442_v62 = vsel %vm865_vm8, %v5430_v32, %v5435_v20  ;;  %v2443_v28 = vsel %vm865_vm8, %v5431_v31, %v5436_v27 }
 0x44f   : > { %v5439_v44 = vpop.permute.xlu1 %5438  ;;  %2481 = vmatprep.subr.bf16.mxu0 %v2447_v30  ;;  %v2446_v49 = vpack.c.bf16 %v2439_v45, %v2438_v11  ;;  %v2448_v52 = vpack.c.bf16 %v2443_v28, %v2442_v62 }
 0x450   : > { %4508 = vmatpush3.bf16.msra.mxu1 %v2409_v18  ;;  %v5441_v25 = vunpack.i.h.bf16 %v5439_v44  ;;  %v5440_v41 = vunpack.i.l.bf16 %v5439_v44  ;;  %v5449_v50 = vpop.permute.xlu0 %5448 }
 0x451   : > { %v5451_v12 = vunpack.i.h.bf16 %v5449_v50  ;;  %v5450_v23 = vunpack.i.l.bf16 %v5449_v50  ;;  %4509 = vmatprep.subr.bf16.mxu1 %v2448_v52 }
 0x452   : > { %2482 = vmatpush1.bf16.msra.mxu0 %v2446_v49  ;;  %v2436_v36 = vsel %vm865_vm8, %v5445_v37, %v5440_v41  ;;  %v2437_v47 = vsel %vm865_vm8, %v5446_v51, %v5441_v25 }
 0x453   : > { %v2450_v22 = vpack.c.bf16 %v2437_v47, %v2436_v36  ;;  %v2440_v0 = vsel %vm865_vm8, %v5450_v23, %v5445_v37  ;;  %v2441_v21 = vsel %vm865_vm8, %v5451_v12, %v5446_v51  ;;  %v2444_v42 = vsel %vm865_vm8, %v5440_v41, %v5450_v23 }
 0x454   : > { %4510 = vmatpush3.bf16.msra.mxu1 %v2448_v52  ;;  %v2445_v59 = vsel %vm865_vm8, %v5441_v25, %v5451_v12  ;;  %v2449_v58 = vpack.c.bf16 %v2441_v21, %v2440_v0 }
 0x455   : > { %2483 = vmatprep.subr.bf16.mxu0 %v2450_v22  ;;  %v2451_v54 = vpack.c.bf16 %v2445_v59, %v2444_v42 }
 0x456   : > { %2484 = vmatpush1.bf16.msra.mxu0 %v2449_v58 }
 0x457   : > { %4511 = vmatprep.subr.bf16.mxu1 %v2451_v54 }
 0x458   : > { %4512 = vmatpush3.bf16.msra.mxu1 %v2451_v54 }
 0x459   : > { %4208 = vmatmul.mubr.msk.bf16.vlgmr.msra.gmra.mrb[16].mxu0 %vm528_vm0, %v7389_v10 }
 0x45a   : > { %2515 = vmatprep.mubr.bf16.mxu0 %v5990_v19 }
 0x45b   : > { %4514 = vmatmul.mubr.msk.bf16.vlgmr.msra.gmra.mrb[8].mxu1 %vm528_vm0, %v5949_v63 }
 0x460   : > { %v2590_v7 = vpop.permute.xlu1 %2589 }
 0x461   : > { %4209 = vmatmul.mubr.msk.bf16.gmra.mrb[20].mxu0 %vm528_vm0, %v5949_v63  ;;  %v2595_v29 = vpop.permute.xlu0 %2594 }
 0x462   : > { %2922 = vmatprep.mubr.bf16.mxu0 %v5990_v19 }
 0x464   : > { %v2600_v56 = vpop.permute.xlu1 %2599 }
 0x465   : > { %v2605_v3 = vpop.permute.xlu0 %2604 }
 0x52c   : > { %v2507_v53 = vpop.f32.mrb[16].mxu0 }
 0x52d   : > { %v2607_v16 = vadd.f32 %v2590_v7, %v2507_v53  ;;  %v2509_v14 = vpop.f32.mrb[17].mxu0 }
 0x52e   : > { %v4515_v17 = vpop.f32.mrb[8].mxu1  ;;  %v2608_v34 = vadd.f32 %v2590_v7, %v2509_v14  ;;  %v2511_v10 = vpop.f32.mrb[18].mxu0 }
 0x52f   : > { %v2615_v61 = vadd.f32 %v4515_v17, %v2600_v56  ;;  %v2560_v31 = vpop.f32.mrb[9].mxu1  ;;  %v2619_v32 = vmax.f32 %v2607_v16, 0.0  ;;  %v2610_v2 = vadd.f32 %v2595_v29, %v2511_v10  ;;  %v2513_v55 = vpop.f32.mrb[19].mxu0 }
 0x530   : > { %v2609_v5 = vadd.f32 %v2590_v7, %v2560_v31  ;;  %v4516_v18 = vpop.f32.mrb[10].mxu1  ;;  %v2620_v20 = vmax.f32 %v2608_v34, 0.0  ;;  %v2611_v4 = vadd.f32 %v2595_v29, %v2513_v55 }
 0x531   : > { %v2627_v27 = vmax.f32 %v2615_v61, 0.0  ;;  %v2618_v40 = vadd.f32 %v4516_v18, %v2605_v3  ;;  %v2563_v46 = vpop.f32.mrb[11].mxu1  ;;  %v2622_v11 = vmax.f32 %v2610_v2, 0.0  ;;  %v7461_v62 = vmul.f32 %v2619_v32, %v6458_v33 }
 0x532   : > { %v2621_v30 = vmax.f32 %v2609_v5, 0.0  ;;  %v2612_v45 = vadd.f32 %v2595_v29, %v2563_v46  ;;  %v2623_v44 = vmax.f32 %v2611_v4, 0.0  ;;  %v7468_v25 = vmul.f32 %v2620_v20, %v6462_v24  ;;  %v4212_v20 = vld [vmem:[%s8509_s2 + $0x60] sm:$0xff]  ;;  %v4214_v4 = vld [vmem:[%s8509_s2 + $0x70] sm:$0xff]  ;;  %v4215_v46 = vld [vmem:[%s8509_s2 + $0x78] sm:$0xff] }
 0x533   : > { %v2630_v51 = vmax.f32 %v2618_v40, 0.0  ;;  %v2639_v28 = vmul.f32 %v2627_v27, %v6460_v38  ;;  %v7465_v49 = vmul.f32 %v2622_v11, %v6458_v33  ;;  %v7544_v27 = vld [vmem:[%s8508_s1 + $0xa0] sm:$0xff]   ;;  %v4213_v40 = vld [vmem:[%s8509_s2 + $0x68] sm:$0xff] }
 0x534   : > { %v2624_v37 = vmax.f32 %v2612_v45, 0.0  ;;  %v2633_v41 = vmul.f32 %v2621_v30, %v6460_v38  ;;  %v7473_v50 = vmul.f32 %v2623_v44, %v6462_v24  ;;  %v2517_v12 = vpop.f32.mrb[20].mxu0  ;;  %4529 = vmatprep.mubr.msk.bf16.mxu1 %vm528_vm0, %v7544_v27 }
 0x535   : > { %v2642_v52 = vmul.f32 %v2630_v51, %v6460_v38  ;;  %v2613_v36 = vadd.f32 %v2600_v56, %v2517_v12  ;;  %v2519_v47 = vpop.f32.mrb[21].mxu0  ;;  %v7478_v22 = vpack.i.bf16 %v7465_v49, %v7461_v62  ;;  %v2821_v5 = vpack.c.bf16 %v7465_v49, %v7461_v62 }
 0x536   : > { %v2636_v23 = vmul.f32 %v2624_v37, %v6460_v38  ;;  %v2614_v0 = vadd.f32 %v2600_v56, %v2519_v47  ;;  %v2521_v21 = vpop.f32.mrb[22].mxu0  ;;  %v5482_v63 = vpack.i.bf16 %v7473_v50, %v7468_v25  ;;  %v2822_v10 = vpack.c.bf16 %v7473_v50, %v7468_v25 }
 0x537   : > { %v7480_v42 = vpack.i.bf16 %v2642_v52, %v2639_v28  ;;  %v2625_v59 = vmax.f32 %v2613_v36, 0.0  ;;  %v2616_v54 = vadd.f32 %v2605_v3, %v2521_v21  ;;  %5453 = vrot.lane.b32.xlu1 %v7478_v22, %s5988_s27  ;;  %v2523_v58 = vpop.f32.mrb[23].mxu0  ;;  %v7522_v18 = vpack.c.bf16 %v2642_v52, %v2639_v28 }
 0x538   : > { %v2626_v7 = vmax.f32 %v2614_v0, 0.0  ;;  %v2617_v29 = vadd.f32 %v2605_v3, %v2523_v58  ;;  %v5497_v53 = vpack.i.bf16 %v2636_v23, %v2633_v41  ;;  %v7516_v32 = vpack.c.bf16 %v2636_v23, %v2633_v41 }
 0x539   : > { %5458 = vrot.lane.b32.xlu0 %v7480_v42, %s5988_s27  ;;  %v7489_v56 = vmul.f32 %v2625_v59, %v6458_v33  ;;  %v2628_v16 = vmax.f32 %v2616_v54, 0.0 }
 0x53a   : > { %v7492_v17 = vmul.f32 %v2626_v7, %v6462_v24  ;;  %v2629_v14 = vmax.f32 %v2617_v29, 0.0 }
 0x53b   : > { %v7495_v61 = vmul.f32 %v2628_v16, %v6458_v33  ;;  %5463 = vrot.lane.b32.xlu1 %v7478_v22, %s5989_s28 }
 0x53c   : > { %v7500_v34 = vmul.f32 %v2629_v14, %v6462_v24 }
 0x53d   : > { %5478 = vrot.lane.b32.xlu0 %v7480_v42, %s5991_s7  ;;  %v5512_v3 = vpack.i.bf16 %v7495_v61, %v7489_v56  ;;  %v2824_v55 = vpack.c.bf16 %v7495_v61, %v7489_v56 }
 0x53e   : > { %v5527_v31 = vpack.i.bf16 %v7500_v34, %v7492_v17  ;;  %v2825_v2 = vpack.c.bf16 %v7500_v34, %v7492_v17 }
 0x53f   : > { %5468 = vrot.lane.b32.xlu1 %v7480_v42, %s5989_s28 }
 0x541   : > { %5483 = vrot.lane.b32.xlu0 %v5482_v63, %s5988_s27 }
 0x543   : > { %5473 = vrot.lane.b32.xlu1 %v7478_v22, %s5991_s7 }
 0x545   : > { %5498 = vrot.lane.b32.xlu0 %v5497_v53, %s5989_s28 }
 0x547   : > { %5488 = vrot.lane.b32.xlu1 %v5497_v53, %s5988_s27 }
 0x549   : > { %5503 = vrot.lane.b32.xlu0 %v5482_v63, %s5991_s7 }
 0x54b   : > { %5493 = vrot.lane.b32.xlu1 %v5482_v63, %s5989_s28 }
 0x54d   : > { %5513 = vrot.lane.b32.xlu0 %v5512_v3, %s5988_s27 }
 0x54f   : > { %5508 = vrot.lane.b32.xlu1 %v5497_v53, %s5991_s7 }
 0x551   : > { %5518 = vrot.lane.b32.xlu0 %v5512_v3, %s5989_s28 }
 0x553   : > { %5528 = vrot.lane.b32.xlu1 %v5527_v31, %s5988_s27 }
 0x555   : > { %5523 = vrot.lane.b32.xlu0 %v5512_v3, %s5991_s7 }
 0x557   : > { %5533 = vrot.lane.b32.xlu1 %v7478_v22, %s5992_s8 }
 0x559   : > { %5538 = vrot.lane.b32.xlu0 %v5482_v63, %s5992_s8 }
 0x55b   : > { %5543 = vrot.lane.b32.xlu1 %v5497_v53, %s5992_s8 }
 0x55d   : > { %5548 = vrot.lane.b32.xlu0 %v5512_v3, %s5992_s8 }
 0x55f   : > { %5563 = vrot.lane.b32.xlu1 %v7478_v22, %s5993_s9 }
 0x561   : > { %5553 = vrot.lane.b32.xlu0 %v5527_v31, %s5989_s28 }
 0x563   : > { %5573 = vrot.lane.b32.xlu1 %v5497_v53, %s5993_s9 }
 0x565   : > { %5558 = vrot.lane.b32.xlu0 %v7480_v42, %s5992_s8 }
 0x567   : > { %5588 = vrot.lane.b32.xlu1 %v5482_v63, %s5994_s10 }
 0x569   : > { %5568 = vrot.lane.b32.xlu0 %v5482_v63, %s5993_s9 }
 0x56b   : > { %5598 = vrot.lane.b32.xlu1 %v5527_v31, %s5991_s7 }
 0x56d   : > { %5578 = vrot.lane.b32.xlu0 %v5512_v3, %s5993_s9 }
 0x56f   : > { %5603 = vrot.lane.b32.xlu1 %v7478_v22, %s5994_s10 }
 0x571   : > { %5583 = vrot.lane.b32.xlu0 %v7480_v42, %s5993_s9 }
 0x573   : > { %5608 = vrot.lane.b32.xlu1 %v5527_v31, %s5992_s8 }
 0x575   : > { %5593 = vrot.lane.b32.xlu0 %v5497_v53, %s5994_s10 }
 0x577   : > { %5613 = vrot.lane.b32.xlu1 %v7480_v42, %s5994_s10 }
 0x579   : > { %5618 = vrot.lane.b32.xlu0 %v5512_v3, %s5994_s10 }
 0x57b   : > { %5623 = vrot.lane.b32.xlu1 %v5527_v31, %s5993_s9 }
 0x57d   : > { %5633 = vrot.lane.b32.xlu0 %v5497_v53, %s5995_s11 }
 0x57f   : > { %5628 = vrot.lane.b32.xlu1 %v5482_v63, %s5995_s11 }
 0x581   : > { %5648 = vrot.lane.b32.xlu0 %v5527_v31, %s5994_s10 }
 0x583   : > { %5638 = vrot.lane.b32.xlu1 %v7478_v22, %s5995_s11 }
 0x585   : > { %5653 = vrot.lane.b32.xlu0 %v5512_v3, %s5995_s11 }
 0x587   : > { %5643 = vrot.lane.b32.xlu1 %v7480_v42, %s5995_s11 }
 0x589   : > { %5663 = vrot.lane.b32.xlu0 %v5527_v31, %s5995_s11 }
 0x58b   : > { %5658 = vrot.lane.b32.xlu1 %v5482_v63, %s5996_s12 }
 0x58d   : > { %5668 = vrot.lane.b32.xlu0 %v5497_v53, %s5996_s12 }
 0x58f   : > { %5673 = vrot.lane.b32.xlu1 %v7478_v22, %s5996_s12 }
 0x591   : > { %5683 = vrot.lane.b32.xlu0 %v5527_v31, %s5996_s12 }
 0x593   : > { %5678 = vrot.lane.b32.xlu1 %v7480_v42, %s5996_s12 }
 0x595   : > { %5688 = vrot.lane.b32.xlu0 %v5512_v3, %s5996_s12 }
 0x597   : > { %3373 = vperm.xlu1 %4971, %v4212_v20  }
 0x599   : > { %3378 = vperm.xlu0 %4970, %v4213_v40  }
 0x59b   : > { %3383 = vperm.xlu1 %4971, %v4214_v4  }
 0x59d   : > { %3388 = vperm.xlu0 %4970, %v4215_v46  }
 0x5a9   : > { %v5454_v30 = vpop.permute.xlu1 %5453 }
 0x5aa   : > { %v5456_v37 = vunpack.i.h.bf16 %v5454_v30  ;;  %v5455_v41 = vunpack.i.l.bf16 %v5454_v30 }
 0x5ab   : > { %v5459_v11 = vpop.permute.xlu0 %5458 }
 0x5ac   : > { %v5461_v46 = vunpack.i.h.bf16 %v5459_v11  ;;  %v5460_v30 = vunpack.i.l.bf16 %v5459_v11 }
 0x5ad   : > { %v7595_v45 = vpop.permute.xlu1 %5463 }
 0x5af   : > { %v7597_v51 = vpop.permute.xlu0 %5478 }
 0x5b1   : > { %v7599_v44 = vpop.permute.xlu1 %5468 }
 0x5b3   : > { %v5484_v28 = vpop.permute.xlu0 %5483 }
 0x5b4   : > { %v5486_v52 = vunpack.i.h.bf16 %v5484_v28  ;;  %v5485_v12 = vunpack.i.l.bf16 %v5484_v28 }
 0x5b5   : > { %v7601_v23 = vpop.permute.xlu1 %5473 }
 0x5b6   : > { %v2807_v36 = vsel %vm445_vm1, %v5455_v41, %v5485_v12  ;;  %v2808_v47 = vsel %vm445_vm1, %v5456_v37, %v5486_v52  ;;  %v5476_v17 = vunpack.i.h.bf16 %v7601_v23 }
 0x5b7   : > { %v7607_v22 = vpop.permute.xlu0 %5498  ;;  %v2816_v0 = vpack.c.bf16 %v2808_v47, %v2807_v36 }
 0x5b9   : > { %2890 = vmatprep.subr.bf16.mxu0 %v2816_v0  ;;  %v5489_v21 = vpop.permute.xlu1 %5488 }
 0x5ba   : > { %v5491_v42 = vunpack.i.h.bf16 %v5489_v21  ;;  %v5490_v59 = vunpack.i.l.bf16 %v5489_v21 }
 0x5bb   : > { %v7609_v54 = vpop.permute.xlu0 %5503 }
 0x5bc   : > { %v2811_v58 = vsel %vm445_vm1, %v5490_v59, %v5455_v41  ;;  %v2812_v63 = vsel %vm445_vm1, %v5491_v42, %v5456_v37  ;;  %v2803_v7 = vsel %vm445_vm1, %v5485_v12, %v5490_v59  ;;  %v2804_v29 = vsel %vm445_vm1, %v5486_v52, %v5491_v42 }
 0x5bd   : > { %v2815_v53 = vpack.c.bf16 %v2812_v63, %v2811_v58  ;;  %v7619_v16 = vpop.permute.xlu1 %5493  ;;  %v2817_v14 = vpack.c.bf16 %v2804_v29, %v2803_v7  ;;  %v5501_v29 = vunpack.i.h.bf16 %v7607_v22  ;;  %v5506_v62 = vunpack.i.h.bf16 %v7609_v54 }
 0x5bf   : > { %v5514_v3 = vpop.permute.xlu0 %5513  ;;  %2891 = vmatpush1.bf16.msra.mxu0 %v2815_v53  ;;  %4517 = vmatprep.subr.bf16.mxu1 %v2817_v14  ;;  %v5500_v53 = vunpack.i.l.bf16 %v7607_v22 }
 0x5c0   : > { %4518 = vmatpush3.bf16.msra.mxu1 %v2817_v14  ;;  %v5516_v40 = vunpack.i.h.bf16 %v5514_v3  ;;  %v5515_v4 = vunpack.i.l.bf16 %v5514_v3  ;;  %v5496_v14 = vunpack.i.h.bf16 %v7619_v16  ;;  %v5495_v3 = vunpack.i.l.bf16 %v7619_v16 }
 0x5c1   : > { %v7621_v31 = vpop.permute.xlu1 %5508  ;;  %v5480_v16 = vunpack.i.l.bf16 %v7597_v51 }
 0x5c2   : > { %v2814_v12 = vsel %vm445_vm1, %v5461_v46, %v5516_v40  ;;  %v2813_v36 = vsel %vm445_vm1, %v5460_v30, %v5515_v4  ;;  %v2851_v25 = vsel %vm494_vm2, %v5495_v3, %v5500_v53  ;;  %v2852_v50 = vsel %vm494_vm2, %v5496_v14, %v5501_v29 }
 0x5c3   : > { %v7623_v20 = vpop.permute.xlu0 %5518  ;;  %v2818_v63 = vpack.c.bf16 %v2814_v12, %v2813_v36  ;;  %v5470_v12 = vunpack.i.l.bf16 %v7599_v44  ;;  %v5475_v36 = vunpack.i.l.bf16 %v7601_v23  ;;  %v5510_v34 = vunpack.i.l.bf16 %v7621_v31 }
 0x5c5   : > { %v5529_v28 = vpop.permute.xlu1 %5528 }
 0x5c6   : > { %v5531_v41 = vunpack.i.h.bf16 %v5529_v28  ;;  %v5530_v52 = vunpack.i.l.bf16 %v5529_v28 }
 0x5c7   : > { %v7625_v37 = vpop.permute.xlu0 %5523 }
 0x5c8   : > { %v2809_v47 = vsel %vm445_vm1, %v5515_v4, %v5530_v52  ;;  %v2810_v0 = vsel %vm445_vm1, %v5516_v40, %v5531_v41  ;;  %v2805_v11 = vsel %vm445_vm1, %v5530_v52, %v5460_v30  ;;  %v2806_v21 = vsel %vm445_vm1, %v5531_v41, %v5461_v46 }
 0x5c9   : > { %v7639_v42 = vpop.permute.xlu1 %5533  ;;  %v2819_v59 = vpack.c.bf16 %v2810_v0, %v2809_v47  ;;  %v2820_v58 = vpack.c.bf16 %v2806_v21, %v2805_v11  ;;  %v5466_v40 = vunpack.i.h.bf16 %v7595_v45  ;;  %v5465_v4 = vunpack.i.l.bf16 %v7595_v45 }
 0x5ca   : > { %v5481_v30 = vunpack.i.h.bf16 %v7597_v51  ;;  %v5521_v41 = vunpack.i.h.bf16 %v7623_v20  ;;  %v5520_v52 = vunpack.i.l.bf16 %v7623_v20  ;;  %v5505_v20 = vunpack.i.l.bf16 %v7609_v54 }
 0x5cb   : > { %v7641_v7 = vpop.permute.xlu0 %5538  ;;  %2892 = vmatprep.subr.bf16.mxu0 %v2819_v59  ;;  %4519 = vmatprep.subr.bf16.mxu1 %v2820_v58  ;;  %v2859_v28 = vsel %vm494_vm2, %v5500_v53, %v5465_v4  ;;  %v2860_v45 = vsel %vm494_vm2, %v5501_v29, %v5466_v40  ;;  %v2856_v49 = vsel %vm494_vm2, %v5466_v40, %v5496_v14 }
 0x5cc   : > { %2893 = vmatpush1.bf16.msra.mxu0 %v2818_v63  ;;  %4520 = vmatpush3.bf16.msra.mxu1 %v2820_v58  ;;  %v2855_v0 = vsel %vm494_vm2, %v5465_v4, %v5495_v3  ;;  %v2864_v59 = vpack.c.bf16 %v2852_v50, %v2851_v25  ;;  %v5526_v58 = vunpack.i.h.bf16 %v7625_v37  ;;  %v5525_v63 = vunpack.i.l.bf16 %v7625_v37 }
 0x5cd   : > { %v7649_v46 = vpop.permute.xlu1 %5543  ;;  %2894 = vmatprep.subr.bf16.mxu0 %v2822_v10  ;;  %4521 = vmatprep.subr.bf16.mxu1 %v7516_v32  ;;  %v5471_v10 = vunpack.i.h.bf16 %v7599_v44  ;;  %v2865_v44 = vpack.c.bf16 %v2860_v45, %v2859_v28  ;;  %v2676_v61 = vsel %vm312_vm3, %v5475_v36, %v5505_v20  ;;  %v2677_v37 = vsel %vm312_vm3, %v5476_v17, %v5506_v62 }
 0x5ce   : > { %v2680_v4 = vsel %vm312_vm3, %v5510_v34, %v5475_v36  ;;  %v2672_v28 = vsel %vm312_vm3, %v5505_v20, %v5510_v34  ;;  %v5540_v25 = vunpack.i.l.bf16 %v7641_v7  ;;  %v5535_v50 = vunpack.i.l.bf16 %v7639_v42 }
 0x5cf   : > { %v7655_v22 = vpop.permute.xlu0 %5548  ;;  %v2862_v54 = vsel %vm494_vm2, %v5471_v10, %v5521_v41  ;;  %v5536_v36 = vunpack.i.h.bf16 %v7639_v42  ;;  %v5545_v20 = vunpack.i.l.bf16 %v7649_v46 }
 0x5d0   : > { %2895 = vmatpush1.bf16.msra.mxu0 %v2821_v5  ;;  %4522 = vmatpush3.bf16.msra.mxu1 %v7516_v32  ;;  %v5511_v32 = vunpack.i.h.bf16 %v7621_v31  ;;  %v2718_v42 = vsel %vm355_vm4, %v5535_v50, %v5540_v25  ;;  %v5550_v51 = vunpack.i.l.bf16 %v7655_v22 }
 0x5d1   : > { %v7677_v47 = vpop.permute.xlu1 %5563  ;;  %2896 = vmatprep.subr.bf16.mxu0 %v2825_v2  ;;  %4523 = vmatprep.subr.bf16.mxu1 %v7522_v18  ;;  %v2861_v2 = vsel %vm494_vm2, %v5470_v12, %v5520_v52 }
 0x5d2   : > { %v2868_v40 = vpack.c.bf16 %v2862_v54, %v2861_v2  ;;  %v2673_v45 = vsel %vm312_vm3, %v5506_v62, %v5511_v32 }
 0x5d3   : > { %v5554_v5 = vpop.permute.xlu0 %5553 }
 0x5d4   : > { %v5556_v11 = vunpack.i.h.bf16 %v5554_v5  ;;  %v5555_v21 = vunpack.i.l.bf16 %v5554_v5  ;;  %2897 = vmatpush1.bf16.msra.mxu0 %v2824_v55  ;;  %4524 = vmatpush3.bf16.msra.mxu1 %v7522_v18  ;;  %v2863_v18 = vpack.c.bf16 %v2856_v49, %v2855_v0  ;;  %v2681_v55 = vsel %vm312_vm3, %v5511_v32, %v5476_v17  ;;  %v7746_v0 = vld [vmem:[%s8508_s1 + $0xa8] sm:$0xff]  }
 0x5d5   : > { %v7701_v29 = vpop.permute.xlu1 %5573  ;;  %2898 = vmatprep.subr.bf16.mxu0 %v2864_v59  ;;  %4525 = vmatprep.subr.bf16.mxu1 %v2865_v44  ;;  %v5546_v32 = vunpack.i.h.bf16 %v7649_v46  ;;  %v2685_v5 = vpack.c.bf16 %v2677_v37, %v2676_v61  ;;  %v7753_v46 = vld [vmem:[%s8508_s1 + $0x90] sm:$0xff]   ;;  %v2722_v59 = vsel %vm355_vm4, %v5545_v20, %v5535_v50 }
 0x5d6   : > { %v2853_v56 = vsel %vm494_vm2, %v5555_v21, %v5470_v12  ;;  %v2854_v31 = vsel %vm494_vm2, %v5556_v11, %v5471_v10  ;;  %v2858_v53 = vsel %vm494_vm2, %v5521_v41, %v5556_v11  ;;  %v2857_v14 = vsel %vm494_vm2, %v5520_v52, %v5555_v21 }
 0x5d7   : > { %v7709_v23 = vpop.permute.xlu0 %5558  ;;  %v2867_v3 = vpack.c.bf16 %v2854_v31, %v2853_v56  ;;  %v2683_v41 = vsel %vm312_vm3, %v5481_v30, %v5526_v58  ;;  %v2682_v52 = vsel %vm312_vm3, %v5480_v16, %v5525_v63  ;;  %v5541_v12 = vunpack.i.h.bf16 %v7641_v7 }
 0x5d8   : > { %2899 = vmatpush1.bf16.msra.mxu0 %v2863_v18  ;;  %4526 = vmatpush3.bf16.msra.mxu1 %v2865_v44  ;;  %v2866_v62 = vpack.c.bf16 %v2858_v53, %v2857_v14  ;;  %v2686_v44 = vpack.c.bf16 %v2673_v45, %v2672_v28  ;;  %v2684_v11 = vpack.c.bf16 %v2681_v55, %v2680_v4  ;;  %v5576_v61 = vunpack.i.h.bf16 %v7701_v29 }
 0x5d9   : > { %v7735_v10 = vpop.permute.xlu1 %5588  ;;  %2900 = vmatprep.subr.bf16.mxu0 %v2867_v3  ;;  %4527 = vmatprep.subr.bf16.mxu1 %v2868_v40  ;;  %v2687_v7 = vpack.c.bf16 %v2683_v41, %v2682_v52  ;;  %v2719_v54 = vsel %vm355_vm4, %v5536_v36, %v5541_v12  ;;  %v2723_v56 = vsel %vm355_vm4, %v5546_v32, %v5536_v36  ;;  %v5575_v31 = vunpack.i.l.bf16 %v7701_v29 }
 0x5da   : > { %v2714_v18 = vsel %vm355_vm4, %v5540_v25, %v5545_v20  ;;  %v2715_v55 = vsel %vm355_vm4, %v5541_v12, %v5546_v32  ;;  %v5561_v14 = vunpack.i.h.bf16 %v7709_v23  ;;  %v5560_v3 = vunpack.i.l.bf16 %v7709_v23 }
 0x5db   : > { %v7740_v49 = vpop.permute.xlu0 %5568  ;;  %v5551_v45 = vunpack.i.h.bf16 %v7655_v22  ;;  %v2727_v41 = vpack.c.bf16 %v2719_v54, %v2718_v42  ;;  %v2726_v52 = vpack.c.bf16 %v2723_v56, %v2722_v59  ;;  %v2728_v50 = vpack.c.bf16 %v2715_v55, %v2714_v18 }
 0x5dc   : > { %2901 = vmatpush1.bf16.msra.mxu0 %v2866_v62  ;;  %4528 = vmatpush3.bf16.msra.mxu1 %v2868_v40  ;;  %v5570_v4 = vunpack.i.l.bf16 %v7740_v49  ;;  %v2724_v36 = vsel %vm355_vm4, %v5560_v3, %v5550_v51 }
 0x5dd   : > { %v5599_v21 = vpop.permute.xlu1 %5598  ;;  %3008 = vmatprep.subr.bf16.mxu0 %v2685_v5  ;;  %4533 = vmatprep.subr.bf16.mxu1 %v2686_v44  ;;  %v2725_v12 = vsel %vm355_vm4, %v5561_v14, %v5551_v45 }
 0x5de   : > { %v5601_v34 = vunpack.i.h.bf16 %v5599_v21  ;;  %v5600_v2 = vunpack.i.l.bf16 %v5599_v21  ;;  %v2729_v55 = vpack.c.bf16 %v2725_v12, %v2724_v36 }
 0x5df   : > { %v7757_v17 = vpop.permute.xlu0 %5578  ;;  %4226 = vmatmul.mubr.msk.bf16.vlgmr.msra.gmra.mrb[24].mxu0 %vm528_vm0, %v7544_v27  ;;  %4530 = vmatmul.mubr.msk.bf16.vlgmr.msra.gmra.mrb[12].mxu1 %vm528_vm0, %v7746_v0 }
 0x5e0   : > { %3009 = vmatpush1.bf16.msra.mxu0 %v2684_v11  ;;  %4534 = vmatpush3.bf16.msra.mxu1 %v2686_v44  ;;  %v2678_v37 = vsel %vm312_vm3, %v5525_v63, %v5600_v2  ;;  %v2679_v53 = vsel %vm312_vm3, %v5526_v58, %v5601_v34  ;;  %v2674_v27 = vsel %vm312_vm3, %v5600_v2, %v5480_v16  ;;  %v5565_v58 = vunpack.i.l.bf16 %v7677_v47 }
 0x5e1   : > { %v7783_v40 = vpop.permute.xlu1 %5603  ;;  %v2688_v29 = vpack.c.bf16 %v2679_v53, %v2678_v37  ;;  %v2675_v63 = vsel %vm312_vm3, %v5601_v34, %v5481_v30  ;;  %2932 = vmatprep.mubr.bf16.mxu0 %v5990_v19  ;;  %4545 = vmatprep.mubr.msk.bf16.mxu1 %vm528_vm0, %v7753_v46  ;;  %v5571_v16 = vunpack.i.h.bf16 %v7740_v49  ;;  %v5566_v30 = vunpack.i.h.bf16 %v7677_v47 }
 0x5e2   : > { %v2689_v28 = vpack.c.bf16 %v2675_v63, %v2674_v27  ;;  %v7802_v25 = vsel %vm398_vm5, %v5575_v31, %v5565_v58  ;;  %v2760_v32 = vsel %vm398_vm5, %v5565_v58, %v5570_v4  ;;  %v5591_v53 = vunpack.i.h.bf16 %v7735_v10 }
 0x5e3   : > { %v7795_v23 = vpop.permute.xlu0 %5583  ;;  %3010 = vmatprep.subr.bf16.mxu0 %v2688_v29  ;;  %v2765_v22 = vsel %vm398_vm5, %v5576_v61, %v5566_v30  ;;  %v2761_v5 = vsel %vm398_vm5, %v5566_v30, %v5571_v16  ;;  %v2757_v21 = vsel %vm398_vm5, %v5571_v16, %v5576_v61  ;;  %v5590_v27 = vunpack.i.l.bf16 %v7735_v10 }
 0x5e4   : > { %4535 = vmatprep.subr.bf16.mxu1 %v2689_v28  ;;  %3011 = vmatpush1.bf16.msra.mxu0 %v2687_v7  ;;  %v5586_v44 = vunpack.i.h.bf16 %v7795_v23  ;;  %v5585_v11 = vunpack.i.l.bf16 %v7795_v23  ;;  %v2756_v7 = vsel %vm398_vm5, %v5570_v4, %v5575_v31  ;;  %v5580_v31 = vunpack.i.l.bf16 %v7757_v17 }
 0x5e5   : > { %4536 = vmatpush3.bf16.msra.mxu1 %v2689_v28  ;;  %v5609_v47 = vpop.permute.xlu1 %5608  ;;  %3012 = vmatprep.subr.bf16.mxu0 %v2727_v41  ;;  %v2768_v29 = vpack.c.bf16 %v2765_v22, %v7802_v25  ;;  %v5606_v58 = vunpack.i.h.bf16 %v7783_v40  ;;  %v2770_v16 = vpack.c.bf16 %v2757_v21, %v2756_v7  ;;  %v5605_v23 = vunpack.i.l.bf16 %v7783_v40 }
 0x5e6   : > { %v5611_v62 = vunpack.i.h.bf16 %v5609_v47  ;;  %v5610_v49 = vunpack.i.l.bf16 %v5609_v47  ;;  %4537 = vmatprep.subr.bf16.mxu1 %v2728_v50  ;;  %v2766_v63 = vsel %vm398_vm5, %v5585_v11, %v5580_v31 }
 0x5e7   : > { %v5594_v20 = vpop.permute.xlu0 %5593  ;;  %4227 = vmatmul.mubr.msk.bf16.gmra.mrb[28].mxu0 %vm528_vm0, %v7746_v0  ;;  %v3138_v7 = vsel %vm779_vm6, %v5605_v23, %v5590_v27  ;;  %v3139_v21 = vsel %vm779_vm6, %v5606_v58, %v5591_v53 }
 0x5e8   : > { %3013 = vmatpush1.bf16.msra.mxu0 %v2726_v52  ;;  %v2720_v42 = vsel %vm355_vm4, %v5550_v51, %v5610_v49  ;;  %v2721_v59 = vsel %vm355_vm4, %v5551_v45, %v5611_v62  ;;  %v2716_v34 = vsel %vm355_vm4, %v5610_v49, %v5560_v3  ;;  %v2717_v2 = vsel %vm355_vm4, %v5611_v62, %v5561_v14 }
 0x5e9   : > { %v5596_v54 = vunpack.i.h.bf16 %v5594_v20  ;;  %v5595_v56 = vunpack.i.l.bf16 %v5594_v20  ;;  %4538 = vmatpush3.bf16.msra.mxu1 %v2728_v50  ;;  %v7830_v61 = vpop.permute.xlu1 %5613  ;;  %v2730_v18 = vpack.c.bf16 %v2721_v59, %v2720_v42  ;;  %v2731_v0 = vpack.c.bf16 %v2717_v2, %v2716_v34  ;;  %3040 = vmatprep.mubr.bf16.mxu0 %v5990_v19 }
 0x5ea   : > { %v5581_v14 = vunpack.i.h.bf16 %v7757_v17  ;;  %v2769_v3 = vpack.c.bf16 %v2761_v5, %v2760_v32  ;;  %v5616_v45 = vunpack.i.h.bf16 %v7830_v61  ;;  %v5615_v51 = vunpack.i.l.bf16 %v7830_v61 }
 0x5eb   : > { %v7833_v37 = vpop.permute.xlu0 %5618  ;;  %3014 = vmatprep.subr.bf16.mxu0 %v2730_v18  ;;  %4539 = vmatprep.subr.bf16.mxu1 %v2731_v0  ;;  %v3134_v17 = vsel %vm779_vm6, %v5590_v27, %v5595_v56  ;;  %v3135_v28 = vsel %vm779_vm6, %v5591_v53, %v5596_v54  ;;  %v3142_v50 = vsel %vm779_vm6, %v5595_v56, %v5605_v23  ;;  %v7875_v56 = vld [vmem:[%s8508_s1 + $0x98] sm:$0xff]   ;;  %v7896_v23 = vld [vmem:[%s8508_s1 + $0xb0] sm:$0xff]  }
 0x5ec   : > { %3015 = vmatpush1.bf16.msra.mxu0 %v2729_v55  ;;  %v2767_v4 = vsel %vm398_vm5, %v5586_v44, %v5581_v14  ;;  %v5621_v40 = vunpack.i.h.bf16 %v7833_v37  ;;  %v5620_v25 = vunpack.i.l.bf16 %v7833_v37  ;;  %v3143_v12 = vsel %vm779_vm6, %v5596_v54, %v5606_v58 }
 0x5ed   : > { %4540 = vmatpush3.bf16.msra.mxu1 %v2731_v0  ;;  %v5624_v10 = vpop.permute.xlu1 %5623  ;;  %3016 = vmatprep.subr.bf16.mxu0 %v2769_v3  ;;  %v2771_v5 = vpack.c.bf16 %v2767_v4, %v2766_v63  ;;  %v3148_v2 = vpack.c.bf16 %v3143_v12, %v3142_v50  ;;  %v3146_v0 = vpack.c.bf16 %v3139_v21, %v3138_v7 }
 0x5ee   : > { %v5626_v41 = vunpack.i.h.bf16 %v5624_v10  ;;  %v5625_v52 = vunpack.i.l.bf16 %v5624_v10  ;;  %4541 = vmatprep.subr.bf16.mxu1 %v2770_v16  ;;  %v3144_v61 = vsel %vm779_vm6, %v5615_v51, %v5620_v25  ;;  %v3145_v18 = vsel %vm779_vm6, %v5616_v45, %v5621_v40 }
 0x5ef   : > { %v7852_v30 = vpop.permute.xlu0 %5633  ;;  %v3151_v4 = vpack.c.bf16 %v3145_v18, %v3144_v61 }
 0x5f0   : > { %3017 = vmatpush1.bf16.msra.mxu0 %v2768_v29  ;;  %v2762_v36 = vsel %vm398_vm5, %v5580_v31, %v5625_v52  ;;  %v2763_v22 = vsel %vm398_vm5, %v5581_v14, %v5626_v41  ;;  %v2758_v47 = vsel %vm398_vm5, %v5625_v52, %v5585_v11  ;;  %v2759_v20 = vsel %vm398_vm5, %v5626_v41, %v5586_v44 }
 0x5f1   : > { %4542 = vmatpush3.bf16.msra.mxu1 %v2770_v16  ;;  %v5629_v62 = vpop.permute.xlu1 %5628  ;;  %v2772_v49 = vpack.c.bf16 %v2763_v22, %v2762_v36  ;;  %v2773_v32 = vpack.c.bf16 %v2759_v20, %v2758_v47  ;;  %v3147_v11 = vpack.c.bf16 %v3135_v28, %v3134_v17  ;;  %v5636_v55 = vunpack.i.h.bf16 %v7852_v30 }
 0x5f2   : > { %v5631_v54 = vunpack.i.h.bf16 %v5629_v62  ;;  %v5630_v44 = vunpack.i.l.bf16 %v5629_v62  ;;  %v5635_v53 = vunpack.i.l.bf16 %v7852_v30 }
 0x5f3   : > { %v5649_v42 = vpop.permute.xlu0 %5648  ;;  %3018 = vmatprep.subr.bf16.mxu0 %v2772_v49  ;;  %4543 = vmatprep.subr.bf16.mxu1 %v2773_v32 }
 0x5f4   : > { %v5651_v59 = vunpack.i.h.bf16 %v5649_v42  ;;  %v5650_v34 = vunpack.i.l.bf16 %v5649_v42  ;;  %3019 = vmatpush1.bf16.msra.mxu0 %v2771_v5  ;;  %v3176_v17 = vsel %vm822_vm7, %v5630_v44, %v5635_v53 }
 0x5f5   : > { %4544 = vmatpush3.bf16.msra.mxu1 %v2773_v32  ;;  %v5639_v31 = vpop.permute.xlu1 %5638  ;;  %3257 = vmatprep.subr.bf16.mxu0 %v3147_v11 }
 0x5f6   : > { %v3136_v37 = vsel %vm779_vm6, %v5650_v34, %v5615_v51  ;;  %v5641_v14 = vunpack.i.h.bf16 %v5639_v31  ;;  %v5640_v3 = vunpack.i.l.bf16 %v5639_v31  ;;  %4549 = vmatprep.subr.bf16.mxu1 %v3148_v2  ;;  %v3137_v29 = vsel %vm779_vm6, %v5651_v59, %v5616_v45 }
 0x5f7   : > { %v5654_v27 = vpop.permute.xlu0 %5653  ;;  %v3140_v63 = vsel %vm779_vm6, %v5620_v25, %v5650_v34  ;;  %v3141_v58 = vsel %vm779_vm6, %v5621_v40, %v5651_v59  ;;  %4232 = vmatmul.mubr.msk.bf16.vlgmr.msra.gmra.mrb[24].mxu0 %vm528_vm0, %v7753_v46  ;;  %v3150_v16 = vpack.c.bf16 %v3137_v29, %v3136_v37  ;;  %v3177_v46 = vsel %vm822_vm7, %v5631_v54, %v5636_v55 }
 0x5f8   : > { %v3180_v10 = vsel %vm822_vm7, %v5640_v3, %v5630_v44  ;;  %4546 = vmatmul.mubr.msk.bf16.vlgmr.msra.gmra.mrb[12].mxu1 %vm528_vm0, %v7875_v56  ;;  %3258 = vmatpush1.bf16.msra.mxu0 %v3146_v0  ;;  %v3181_v28 = vsel %vm822_vm7, %v5641_v14, %v5631_v54  ;;  %v3184_v51 = vsel %vm822_vm7, %v5635_v53, %v5640_v3  ;;  %v5656_v52 = vunpack.i.h.bf16 %v5654_v27 }
 0x5f9   : > { %4550 = vmatpush3.bf16.msra.mxu1 %v3148_v2  ;;  %v5644_v45 = vpop.permute.xlu1 %5643  ;;  %3259 = vmatprep.subr.bf16.mxu0 %v3150_v16  ;;  %v3185_v30 = vsel %vm822_vm7, %v5636_v55, %v5641_v14  ;;  %v3149_v41 = vpack.c.bf16 %v3141_v58, %v3140_v63  ;;  %v5655_v12 = vunpack.i.l.bf16 %v5654_v27  ;;  %v3189_v47 = vpack.c.bf16 %v3177_v46, %v3176_v17 }
 0x5fa   : > { %v5646_v25 = vunpack.i.h.bf16 %v5644_v45  ;;  %v5645_v50 = vunpack.i.l.bf16 %v5644_v45  ;;  %4551 = vmatprep.subr.bf16.mxu1 %v3151_v4  ;;  %3050 = vmatprep.mubr.bf16.mxu0 %v5990_v19  ;;  %v3188_v20 = vpack.c.bf16 %v3181_v28, %v3180_v10  ;;  %v3190_v62 = vpack.c.bf16 %v3185_v30, %v3184_v51 }
 0x5fb   : > { %v5664_v40 = vpop.permute.xlu0 %5663  ;;  %4561 = vmatprep.mubr.msk.bf16.mxu1 %vm528_vm0, %v7896_v23 }
 0x5fc   : > { %v5666_v36 = vunpack.i.h.bf16 %v5664_v40  ;;  %v5665_v22 = vunpack.i.l.bf16 %v5664_v40  ;;  %3260 = vmatpush1.bf16.msra.mxu0 %v3149_v41  ;;  %v3186_v5 = vsel %vm822_vm7, %v5645_v50, %v5655_v12  ;;  %v3187_v7 = vsel %vm822_vm7, %v5646_v25, %v5656_v52 }
 0x5fd   : > { %4552 = vmatpush3.bf16.msra.mxu1 %v3151_v4  ;;  %v5659_v49 = vpop.permute.xlu1 %5658  ;;  %3261 = vmatprep.subr.bf16.mxu0 %v3189_v47  ;;  %v3193_v18 = vpack.c.bf16 %v3187_v7, %v3186_v5 }
 0x5fe   : > { %v3178_v32 = vsel %vm822_vm7, %v5665_v22, %v5645_v50  ;;  %v3182_v21 = vsel %vm822_vm7, %v5655_v12, %v5665_v22  ;;  %v5661_v59 = vunpack.i.h.bf16 %v5659_v49  ;;  %v5660_v34 = vunpack.i.l.bf16 %v5659_v49  ;;  %4553 = vmatprep.subr.bf16.mxu1 %v3190_v62 }
 0x5ff   : > { %v5669_v42 = vpop.permute.xlu0 %5668  ;;  %v3179_v11 = vsel %vm822_vm7, %v5666_v36, %v5646_v25  ;;  %v3183_v2 = vsel %vm822_vm7, %v5656_v52, %v5666_v36  ;;  %4233 = vmatmul.mubr.msk.bf16.gmra.mrb[28].mxu0 %vm528_vm0, %v7875_v56 }
 0x600   : > { %v5671_v54 = vunpack.i.h.bf16 %v5669_v42  ;;  %v5670_v44 = vunpack.i.l.bf16 %v5669_v42  ;;  %v3192_v61 = vpack.c.bf16 %v3179_v11, %v3178_v32  ;;  %3262 = vmatpush1.bf16.msra.mxu0 %v3188_v20  ;;  %3289 = vmatprep.mubr.bf16.mxu0 %v5990_v19  ;;  %v3191_v37 = vpack.c.bf16 %v3183_v2, %v3182_v21 }
 0x601   : > { %4554 = vmatpush3.bf16.msra.mxu1 %v3190_v62  ;;  %v5674_v0 = vpop.permute.xlu1 %5673  ;;  %v5955_v62 = vld [vmem:[%s8508_s1 + $0xb8] sm:$0xff]  }
 0x602   : > { %3263 = vmatprep.subr.bf16.mxu0 %v3192_v61  ;;  %v3218_v55 = vsel %vm865_vm8, %v5660_v34, %v5670_v44  ;;  %v3219_v31 = vsel %vm865_vm8, %v5661_v59, %v5671_v54  ;;  %v5676_v27 = vunpack.i.h.bf16 %v5674_v0  ;;  %v5675_v14 = vunpack.i.l.bf16 %v5674_v0  ;;  %4555 = vmatprep.subr.bf16.mxu1 %v3193_v18 }
 0x603   : > { %v5684_v53 = vpop.permute.xlu0 %5683  ;;  %v3231_v3 = vpack.c.bf16 %v3219_v31, %v3218_v55 }
 0x604   : > { %v3222_v56 = vsel %vm865_vm8, %v5675_v14, %v5660_v34  ;;  %v3223_v29 = vsel %vm865_vm8, %v5676_v27, %v5661_v59  ;;  %3264 = vmatpush1.bf16.msra.mxu0 %v3191_v37  ;;  %v3226_v63 = vsel %vm865_vm8, %v5670_v44, %v5675_v14  ;;  %v3227_v58 = vsel %vm865_vm8, %v5671_v54, %v5676_v27 }
 0x605   : > { %v3230_v16 = vpack.c.bf16 %v3223_v29, %v3222_v56  ;;  %4556 = vmatpush3.bf16.msra.mxu1 %v3193_v18  ;;  %v5679_v4 = vpop.permute.xlu1 %5678  ;;  %3265 = vmatprep.subr.bf16.mxu0 %v3231_v3  ;;  %v3232_v10 = vpack.c.bf16 %v3227_v58, %v3226_v63  ;;  %v5686_v17 = vunpack.i.h.bf16 %v5684_v53  ;;  %v5685_v46 = vunpack.i.l.bf16 %v5684_v53 }
 0x606   : > { %v5681_v45 = vunpack.i.h.bf16 %v5679_v4  ;;  %v5680_v51 = vunpack.i.l.bf16 %v5679_v4  ;;  %v5968_v4 = vld [vmem:[%s6048_s26] sm:$0xff] }
 0x607   : > { %v5689_v28 = vpop.permute.xlu0 %5688  ;;  %4557 = vmatprep.subr.bf16.mxu1 %v3232_v10 }
 0x608   : > { %v5691_v30 = vunpack.i.h.bf16 %v5689_v28  ;;  %v5690_v41 = vunpack.i.l.bf16 %v5689_v28  ;;  %3266 = vmatpush1.bf16.msra.mxu0 %v3230_v16  ;;  %v3220_v52 = vsel %vm865_vm8, %v5685_v46, %v5680_v51  ;;  %v3221_v40 = vsel %vm865_vm8, %v5686_v17, %v5681_v45  ;;  %v5969_v28 = vld [vmem:[%s6048_s26 + $0x8] sm:$0xff] }
 0x609   : > { %4558 = vmatpush3.bf16.msra.mxu1 %v3232_v10  ;;  %v3234_v12 = vpack.c.bf16 %v3221_v40, %v3220_v52  ;;  %v5970_v52 = vld [vmem:[%s6048_s26 + $0x40] sm:$0xff] }
 0x60a   : > { %v3224_v25 = vsel %vm865_vm8, %v5690_v41, %v5685_v46  ;;  %v3225_v50 = vsel %vm865_vm8, %v5691_v30, %v5686_v17  ;;  %v3228_v36 = vsel %vm865_vm8, %v5680_v51, %v5690_v41  ;;  %v3229_v47 = vsel %vm865_vm8, %v5681_v45, %v5691_v30 }
 0x60b   : > { %v3233_v22 = vpack.c.bf16 %v3225_v50, %v3224_v25  ;;  %3267 = vmatprep.subr.bf16.mxu0 %v3234_v12  ;;  %v3235_v20 = vpack.c.bf16 %v3229_v47, %v3228_v36  ;;  %v5972_v36 = vld [vmem:[%s6048_s26 + $0x10] sm:$0xff] }
 0x60d   : > { %3268 = vmatpush1.bf16.msra.mxu0 %v3233_v22  ;;  %4559 = vmatprep.subr.bf16.mxu1 %v3235_v20 }
 0x60e   : > { %4560 = vmatpush3.bf16.msra.mxu1 %v3235_v20 }
 0x610   : > { %4242 = vmatmul.mubr.msk.bf16.vlgmr.msra.gmra.mrb[24].mxu0 %vm528_vm0, %v7896_v23 }
 0x611   : > { %3299 = vmatprep.mubr.bf16.mxu0 %v5990_v19  ;;  %4562 = vmatmul.mubr.msk.bf16.vlgmr.msra.gmra.mrb[12].mxu1 %vm528_vm0, %v5955_v62 }
 0x616   : > { %v3374_v49 = vpop.permute.xlu1 %3373 }
 0x618   : > { %4243 = vmatmul.mubr.msk.bf16.gmra.mrb[28].mxu0 %vm528_vm0, %v5955_v62  ;;  %v3379_v32 = vpop.permute.xlu0 %3378 }
 0x619   : > { %3694 = vmatprep.mubr.bf16.mxu0 %v5990_v19 }
 0x61a   : > { %v3384_v7 = vpop.permute.xlu1 %3383 }
 0x61c   : > { %v3389_v18 = vpop.permute.xlu0 %3388 }
 0x6e3   : > { %v3291_v5 = vpop.f32.mrb[24].mxu0 }
 0x6e4   : > { %v3391_v21 = vadd.f32 %v3374_v49, %v3291_v5  ;;  %v3293_v42 = vpop.f32.mrb[25].mxu0  ;;  %v4563_v59 = vpop.f32.mrb[12].mxu1 }
 0x6e5   : > { %v3392_v34 = vadd.f32 %v3374_v49, %v3293_v42  ;;  %v3295_v11 = vpop.f32.mrb[26].mxu0  ;;  %v3399_v23 = vadd.f32 %v4563_v59, %v3384_v7  ;;  %v3344_v54 = vpop.f32.mrb[13].mxu1  ;;  %v5975_v59 = vld [vmem:[%s6048_s26 + $0x28] sm:$0xff] }
 0x6e6   : > { %v3403_v2 = vmul.f32 %v3391_v21, %v6458_v33  ;;  %v3394_v44 = vadd.f32 %v3379_v32, %v3295_v11  ;;  %v3297_v61 = vpop.f32.mrb[27].mxu0  ;;  %v3393_v55 = vadd.f32 %v3374_v49, %v3344_v54  ;;  %v4564_v31 = vpop.f32.mrb[14].mxu1  ;;  %v5974_v49 = vld [vmem:[%s6048_s26 + $0x58] sm:$0xff] }
 0x6e7   : > { %v3404_v0 = vmul.f32 %v3392_v34, %v6462_v24  ;;  %v3395_v37 = vadd.f32 %v3379_v32, %v3297_v61  ;;  %v3411_v27 = vmul.f32 %v3399_v23, %v6460_v38  ;;  %v3402_v3 = vadd.f32 %v4564_v31, %v3389_v18  ;;  %v3347_v56 = vpop.f32.mrb[15].mxu1  ;;  %v5977_v31 = vld [vmem:[%s6048_s26 + $0x38] sm:$0xff] }
 0x6e8   : > { %v3415_v53 = vadd.f32 %v3403_v2, %v6958_v8  ;;  %v3406_v14 = vmul.f32 %v3394_v44, %v6458_v33  ;;  %v3405_v63 = vmul.f32 %v3393_v55, %v6460_v38  ;;  %v3396_v16 = vadd.f32 %v3379_v32, %v3347_v56 }
 0x6e9   : > { %v3416_v29 = vadd.f32 %v3404_v0, %v6991_v35  ;;  %v3407_v58 = vmul.f32 %v3395_v37, %v6462_v24  ;;  %v3423_v8 = vadd.f32 %v3411_v27, %v6965_v9  ;;  %v3414_v46 = vmul.f32 %v3402_v3, %v6460_v38  ;;  %v5971_v9 = vld [vmem:[%s6048_s26 + $0x18] sm:$0xff] }
 0x6ea   : > { %v7972_v10 = vadd.f32 %v5968_v4, %v3415_v53  ;;  %v3418_v17 = vadd.f32 %v3406_v14, %v6961_v1  ;;  %v3417_v35 = vadd.f32 %v3405_v63, %v7004_v57  ;;  %v3408_v30 = vmul.f32 %v3396_v16, %v6460_v38  ;;  %v5973_v57 = vld [vmem:[%s6048_s26 + $0x20] sm:$0xff]  ;;  %v5978_v53 = vld [vmem:[%s6048_s26 + $0x48] sm:$0xff]  ;;  %v5979_v14 = vld [vmem:[%s6048_s26 + $0x50] sm:$0xff] }
 0x6eb   : > { %v7978_v45 = vadd.f32 %v5969_v28, %v3416_v29  ;;  %v3419_v51 = vadd.f32 %v3407_v58, %v6985_v39  ;;  %v3301_v41 = vpop.f32.mrb[28].mxu0  ;;  %v7984_v40 = vadd.f32 %v5970_v52, %v3423_v8  ;;  %v3426_v1 = vadd.f32 %v3414_v46, %v6968_v13 }
 0x6ec   : > { %v7987_v25 = vadd.f32 %v5971_v9, %v3418_v17  ;;  %v3397_v50 = vadd.f32 %v3384_v7, %v3301_v41  ;;  %v3303_v12 = vpop.f32.mrb[29].mxu0  ;;  %v7991_v22 = vadd.f32 %v5972_v36, %v3417_v35  ;;  %v3420_v47 = vadd.f32 %v3408_v30, %v6997_v48  ;;  %v3439_v17 = vld [vmem:[%s8511_s4] sm:$0xff] }
 0x6ed   : > { %v7994_v39 = vadd.f32 %v5973_v57, %v3419_v51  ;;  %v3398_v20 = vadd.f32 %v3384_v7, %v3303_v12  ;;  %v3305_v62 = vpop.f32.mrb[30].mxu0  ;;  %v7998_v32 = vadd.f32 %v5974_v49, %v3426_v1  ;;  %v5997_v58 = vmov 0.0  }
 0x6ee   : > { %v3409_v5 = vmul.f32 %v3397_v50, %v6458_v33  ;;  %v3400_v13 = vadd.f32 %v3389_v18, %v3305_v62  ;;  %v3307_v21 = vpop.f32.mrb[31].mxu0  ;;  %v8003_v42 = vpack.i.bf16 %v7987_v25, %v7972_v10  ;;  %v8006_v34 = vadd.f32 %v5975_v59, %v3420_v47  ;;  %4565 = vmatprep.subr.bf16.mxu1 %v5997_v58 }
 0x6ef   : > { %v3410_v48 = vmul.f32 %v3398_v20, %v6462_v24  ;;  %v3401_v7 = vadd.f32 %v3389_v18, %v3307_v21  ;;  %v8013_v23 = vpack.i.bf16 %v7998_v32, %v7984_v40  ;;  %v8021_v61 = vpack.i.bf16 %v7994_v39, %v7978_v45  ;;  %v5976_v18 = vld [vmem:[%s6048_s26 + $0x30] sm:$0xff]  ;;  %4577 = vmatprep.mubr.msk.bf16.mxu1 %vm5998_vm9, %v5997_v58 }
 0x6f0   : > { %v3421_v11 = vadd.f32 %v3409_v5, %v7019_v6  ;;  %v3412_v2 = vmul.f32 %v3400_v13, %v6458_v33  ;;  %5693 = vrot.lane.b32.xlu1 %v8003_v42, %s5988_s27  ;;  %v5737_v55 = vpack.i.bf16 %v8006_v34, %v7991_v22  ;;  %v3611_v29 = vpack.c.bf16 %v8006_v34, %v7991_v22 }
 0x6f1   : > { %v3422_v54 = vadd.f32 %v3410_v48, %v7032_v60  ;;  %v3413_v44 = vmul.f32 %v3401_v7, %v6462_v24  ;;  %5698 = vrot.lane.b32.xlu0 %v8013_v23, %s5988_s27  ;;  %v3609_v63 = vpack.c.bf16 %v7987_v25, %v7972_v10  ;;  %v3614_v4 = vpack.c.bf16 %v7998_v32, %v7984_v40 }
 0x6f2   : > { %v8024_v6 = vadd.f32 %v5976_v18, %v3421_v11  ;;  %v3424_v0 = vadd.f32 %v3412_v2, %v7015_v43 }
 0x6f3   : > { %v8032_v37 = vadd.f32 %v5977_v31, %v3422_v54  ;;  %v3425_v60 = vadd.f32 %v3413_v44, %v7028_v15  ;;  %v3610_v15 = vpack.c.bf16 %v7994_v39, %v7978_v45 }
 0x6f4   : > { %v8036_v27 = vadd.f32 %v5978_v53, %v3424_v0  ;;  %5703 = vrot.lane.b32.xlu1 %v8003_v42, %s5989_s28 }
 0x6f5   : > { %v8041_v3 = vadd.f32 %v5979_v14, %v3425_v60  ;;  %5718 = vrot.lane.b32.xlu0 %v8013_v23, %s5991_s7 }
 0x6f6   : > { %v5752_v43 = vpack.i.bf16 %v8036_v27, %v8024_v6  ;;  %v3612_v8 = vpack.c.bf16 %v8036_v27, %v8024_v6 }
 0x6f7   : > { %v5767_v56 = vpack.i.bf16 %v8041_v3, %v8032_v37  ;;  %v3613_v16 = vpack.c.bf16 %v8041_v3, %v8032_v37 }
 0x6f8   : > { %5708 = vrot.lane.b32.xlu1 %v8013_v23, %s5989_s28 }
 0x6f9   : > { %5723 = vrot.lane.b32.xlu0 %v8021_v61, %s5988_s27 }
 0x6fc   : > { %5713 = vrot.lane.b32.xlu1 %v8003_v42, %s5991_s7 }
 0x6fd   : > { %5738 = vrot.lane.b32.xlu0 %v5737_v55, %s5989_s28 }
 0x700   : > { %5728 = vrot.lane.b32.xlu1 %v5737_v55, %s5988_s27 }
 0x701   : > { %5743 = vrot.lane.b32.xlu0 %v8021_v61, %s5991_s7 }
 0x704   : > { %5733 = vrot.lane.b32.xlu1 %v8021_v61, %s5989_s28 }
 0x705   : > { %5753 = vrot.lane.b32.xlu0 %v5752_v43, %s5988_s27 }
 0x708   : > { %5748 = vrot.lane.b32.xlu1 %v5737_v55, %s5991_s7 }
 0x709   : > { %5758 = vrot.lane.b32.xlu0 %v5752_v43, %s5989_s28 }
 0x70c   : > { %5768 = vrot.lane.b32.xlu1 %v5767_v56, %s5988_s27 }
 0x70d   : > { %5763 = vrot.lane.b32.xlu0 %v5752_v43, %s5991_s7 }
 0x710   : > { %5773 = vrot.lane.b32.xlu1 %v8003_v42, %s5992_s8 }
 0x711   : > { %5778 = vrot.lane.b32.xlu0 %v8021_v61, %s5992_s8 }
 0x714   : > { %5783 = vrot.lane.b32.xlu1 %v5737_v55, %s5992_s8 }
 0x715   : > { %5788 = vrot.lane.b32.xlu0 %v5752_v43, %s5992_s8 }
 0x718   : > { %5803 = vrot.lane.b32.xlu1 %v8003_v42, %s5993_s9 }
 0x719   : > { %5793 = vrot.lane.b32.xlu0 %v5767_v56, %s5989_s28 }
 0x71c   : > { %5813 = vrot.lane.b32.xlu1 %v5737_v55, %s5993_s9 }
 0x71d   : > { %5798 = vrot.lane.b32.xlu0 %v8013_v23, %s5992_s8 }
 0x720   : > { %5828 = vrot.lane.b32.xlu1 %v8021_v61, %s5994_s10 }
 0x721   : > { %5808 = vrot.lane.b32.xlu0 %v8021_v61, %s5993_s9 }
 0x724   : > { %5838 = vrot.lane.b32.xlu1 %v5767_v56, %s5991_s7 }
 0x725   : > { %5818 = vrot.lane.b32.xlu0 %v5752_v43, %s5993_s9 }
 0x728   : > { %5843 = vrot.lane.b32.xlu1 %v8003_v42, %s5994_s10 }
 0x729   : > { %5823 = vrot.lane.b32.xlu0 %v8013_v23, %s5993_s9 }
 0x72c   : > { %5848 = vrot.lane.b32.xlu1 %v5767_v56, %s5992_s8 }
 0x72d   : > { %5833 = vrot.lane.b32.xlu0 %v5737_v55, %s5994_s10 }
 0x730   : > { %5853 = vrot.lane.b32.xlu1 %v8013_v23, %s5994_s10 }
 0x731   : > { %5858 = vrot.lane.b32.xlu0 %v5752_v43, %s5994_s10 }
 0x734   : > { %5863 = vrot.lane.b32.xlu1 %v5767_v56, %s5993_s9 }
 0x735   : > { %5873 = vrot.lane.b32.xlu0 %v5737_v55, %s5995_s11 }
 0x738   : > { %5868 = vrot.lane.b32.xlu1 %v8021_v61, %s5995_s11 }
 0x739   : > { %5888 = vrot.lane.b32.xlu0 %v5767_v56, %s5994_s10 }
 0x73c   : > { %5878 = vrot.lane.b32.xlu1 %v8003_v42, %s5995_s11 }
 0x73d   : > { %5893 = vrot.lane.b32.xlu0 %v5752_v43, %s5995_s11 }
 0x740   : > { %5883 = vrot.lane.b32.xlu1 %v8013_v23, %s5995_s11 }
 0x741   : > { %5903 = vrot.lane.b32.xlu0 %v5767_v56, %s5995_s11 }
 0x744   : > { %5898 = vrot.lane.b32.xlu1 %v8021_v61, %s5996_s12 }
 0x745   : > { %5908 = vrot.lane.b32.xlu0 %v5737_v55, %s5996_s12 }
 0x748   : > { %5913 = vrot.lane.b32.xlu1 %v8003_v42, %s5996_s12 }
 0x749   : > { %5923 = vrot.lane.b32.xlu0 %v5767_v56, %s5996_s12 }
 0x74c   : > { %5918 = vrot.lane.b32.xlu1 %v8013_v23, %s5996_s12 }
 0x74d   : > { %5928 = vrot.lane.b32.xlu0 %v5752_v43, %s5996_s12  ;;  %s4710_s12 = smul.u32 24, %s8515_s22 }
 0x74f   : > { %s251_s17 = scalar_lea.vmem %s8513_s6, %s4710_s12 }
 0x750   : > { %4044 = vperm.xlu1 %4971, %v3439_v17  }
 0x762   : > { %v5694_v46 = vpop.permute.xlu1 %5693 }
 0x763   : > { %v5699_v28 = vpop.permute.xlu0 %5698  ;;  %v5696_v52 = vunpack.i.h.bf16 %v5694_v46  ;;  %v5695_v9 = vunpack.i.l.bf16 %v5694_v46 }
 0x764   : > { %v5701_v55 = vunpack.i.h.bf16 %v5699_v28  ;;  %v5700_v53 = vunpack.i.l.bf16 %v5699_v28 }
 0x766   : > { %v8131_v35 = vpop.permute.xlu1 %5703 }
 0x767   : > { %v8133_v51 = vpop.permute.xlu0 %5718 }
 0x76a   : > { %v8135_v30 = vpop.permute.xlu1 %5708 }
 0x76b   : > { %v5724_v41 = vpop.permute.xlu0 %5723  ;;  %v5710_v45 = vunpack.i.l.bf16 %v8135_v30 }
 0x76c   : > { %v5726_v1 = vunpack.i.h.bf16 %v5724_v41  ;;  %v5725_v50 = vunpack.i.l.bf16 %v5724_v41 }
 0x76e   : > { %v8137_v12 = vpop.permute.xlu1 %5713  ;;  %v3595_v36 = vsel %vm445_vm1, %v5695_v9, %v5725_v50  ;;  %v3596_v57 = vsel %vm445_vm1, %v5696_v52, %v5726_v1 }
 0x76f   : > { %v8143_v47 = vpop.permute.xlu0 %5738  ;;  %v3604_v20 = vpack.c.bf16 %v3596_v57, %v3595_v36  ;;  %v5715_v10 = vunpack.i.l.bf16 %v8137_v12 }
 0x771   : > { %3662 = vmatprep.subr.bf16.mxu0 %v3604_v20 }
 0x772   : > { %v5729_v62 = vpop.permute.xlu1 %5728 }
 0x773   : > { %v5731_v49 = vunpack.i.h.bf16 %v5729_v62  ;;  %v5730_v5 = vunpack.i.l.bf16 %v5729_v62  ;;  %v8145_v13 = vpop.permute.xlu0 %5743 }
 0x774   : > { %v5745_v39 = vunpack.i.l.bf16 %v8145_v13  ;;  %v5746_v25 = vunpack.i.h.bf16 %v8145_v13 }
 0x775   : > { %v3591_v21 = vsel %vm445_vm1, %v5725_v50, %v5730_v5  ;;  %v3592_v42 = vsel %vm445_vm1, %v5726_v1, %v5731_v49  ;;  %v3599_v59 = vsel %vm445_vm1, %v5730_v5, %v5695_v9  ;;  %v3600_v48 = vsel %vm445_vm1, %v5731_v49, %v5696_v52 }
 0x776   : > { %v3603_v7 = vpack.c.bf16 %v3600_v48, %v3599_v59  ;;  %v3605_v11 = vpack.c.bf16 %v3592_v42, %v3591_v21  ;;  %v8155_v2 = vpop.permute.xlu1 %5733  ;;  %v5741_v49 = vunpack.i.h.bf16 %v8143_v47  ;;  %v5740_v5 = vunpack.i.l.bf16 %v8143_v47 }
 0x777   : > { %v5754_v23 = vpop.permute.xlu0 %5753  ;;  %v5736_v20 = vunpack.i.h.bf16 %v8155_v2  ;;  %v5735_v62 = vunpack.i.l.bf16 %v8155_v2  ;;  %v5706_v42 = vunpack.i.h.bf16 %v8131_v35  ;;  %v5721_v59 = vunpack.i.h.bf16 %v8133_v51 }
 0x778   : > { %3663 = vmatpush1.bf16.msra.mxu0 %v3603_v7  ;;  %4566 = vmatpush3.bf16.msra.mxu1 %v3605_v11  ;;  %v5756_v61 = vunpack.i.h.bf16 %v5754_v23  ;;  %v5755_v18 = vunpack.i.l.bf16 %v5754_v23  ;;  %v5720_v48 = vunpack.i.l.bf16 %v8133_v51  ;;  %v5705_v7 = vunpack.i.l.bf16 %v8131_v35 }
 0x779   : > { %4567 = vmatprep.subr.bf16.mxu1 %v5997_v58  ;;  %v5711_v47 = vunpack.i.h.bf16 %v8135_v30  ;;  %v3639_v22 = vsel %vm494_vm2, %v5735_v62, %v5740_v5  ;;  %v3640_v34 = vsel %vm494_vm2, %v5736_v20, %v5741_v49  ;;  %v3468_v40 = vsel %vm312_vm3, %v5715_v10, %v5745_v39 }
 0x77a   : > { %v8158_v54 = vpop.permute.xlu1 %5748  ;;  %v3602_v43 = vsel %vm445_vm1, %v5701_v55, %v5756_v61  ;;  %v3601_v17 = vsel %vm445_vm1, %v5700_v53, %v5755_v18  ;;  %v3652_v3 = vpack.c.bf16 %v3640_v34, %v3639_v22 }
 0x77b   : > { %v8160_v44 = vpop.permute.xlu0 %5758  ;;  %v3606_v36 = vpack.c.bf16 %v3602_v43, %v3601_v17 }
 0x77c   : > { %v5761_v35 = vunpack.i.h.bf16 %v8160_v44  ;;  %v5760_v30 = vunpack.i.l.bf16 %v8160_v44  ;;  %v3643_v44 = vsel %vm494_vm2, %v5705_v7, %v5735_v62 }
 0x77e   : > { %v5769_v0 = vpop.permute.xlu1 %5768  ;;  %v3650_v32 = vsel %vm494_vm2, %v5711_v47, %v5761_v35 }
 0x77f   : > { %v5771_v31 = vunpack.i.h.bf16 %v5769_v0  ;;  %v5770_v60 = vunpack.i.l.bf16 %v5769_v0  ;;  %v8162_v14 = vpop.permute.xlu0 %5763  ;;  %v5750_v0 = vunpack.i.l.bf16 %v8158_v54 }
 0x780   : > { %v5766_v27 = vunpack.i.h.bf16 %v8162_v14 }
 0x781   : > { %v3594_v56 = vsel %vm445_vm1, %v5771_v31, %v5701_v55  ;;  %v3593_v46 = vsel %vm445_vm1, %v5770_v60, %v5700_v53  ;;  %v3597_v52 = vsel %vm445_vm1, %v5755_v18, %v5770_v60  ;;  %v3598_v28 = vsel %vm445_vm1, %v5756_v61, %v5771_v31 }
 0x782   : > { %v8172_v41 = vpop.permute.xlu1 %5773  ;;  %v3608_v9 = vpack.c.bf16 %v3594_v56, %v3593_v46  ;;  %v3607_v50 = vpack.c.bf16 %v3598_v28, %v3597_v52  ;;  %v3644_v61 = vsel %vm494_vm2, %v5706_v42, %v5736_v20  ;;  %v5751_v18 = vunpack.i.h.bf16 %v8158_v54 }
 0x783   : > { %v8178_v1 = vpop.permute.xlu0 %5778  ;;  %v3651_v6 = vpack.c.bf16 %v3644_v61, %v3643_v44  ;;  %v3472_v52 = vsel %vm312_vm3, %v5750_v0, %v5715_v10  ;;  %v3475_v20 = vsel %vm312_vm3, %v5721_v59, %v5766_v27  ;;  %v5776_v22 = vunpack.i.h.bf16 %v8172_v41 }
 0x784   : > { %4568 = vmatpush3.bf16.msra.mxu1 %v3608_v9  ;;  %3664 = vmatprep.subr.bf16.mxu0 %v3607_v50  ;;  %v3465_v46 = vsel %vm312_vm3, %v5746_v25, %v5751_v18  ;;  %v5780_v9 = vunpack.i.l.bf16 %v8178_v1  ;;  %v5775_v50 = vunpack.i.l.bf16 %v8172_v41 }
 0x785   : > { %4569 = vmatprep.subr.bf16.mxu1 %v5997_v58  ;;  %3665 = vmatpush1.bf16.msra.mxu0 %v3606_v36 }
 0x786   : > { %v8180_v57 = vpop.permute.xlu1 %5783  ;;  %3666 = vmatprep.subr.bf16.mxu0 %v3610_v15  ;;  %v3648_v15 = vsel %vm494_vm2, %v5741_v49, %v5706_v42  ;;  %v3510_v10 = vsel %vm355_vm4, %v5775_v50, %v5780_v9 }
 0x787   : > { %v8187_v21 = vpop.permute.xlu0 %5788 }
 0x788   : > { %4570 = vmatpush3.bf16.msra.mxu1 %v3611_v29  ;;  %v3647_v29 = vsel %vm494_vm2, %v5740_v5, %v5705_v7  ;;  %v4246_v5 = vld [vmem:[%s8510_s3 + $0x4] sm:$0xf] }
 0x789   : > { %4571 = vmatprep.subr.bf16.mxu1 %v5997_v58  ;;  %3667 = vmatpush1.bf16.msra.mxu0 %v3609_v63  ;;  %v3653_v13 = vpack.c.bf16 %v3648_v15, %v3647_v29 }
 0x78a   : > { %v8200_v11 = vpop.permute.xlu1 %5803  ;;  %3668 = vmatprep.subr.bf16.mxu0 %v3613_v16  ;;  %v5716_v16 = vunpack.i.h.bf16 %v8137_v12 }
 0x78b   : > { %v5794_v2 = vpop.permute.xlu0 %5793 }
 0x78c   : > { %v5796_v63 = vunpack.i.h.bf16 %v5794_v2  ;;  %v5795_v23 = vunpack.i.l.bf16 %v5794_v2  ;;  %4572 = vmatpush3.bf16.msra.mxu1 %v3614_v4  ;;  %v3649_v4 = vsel %vm494_vm2, %v5710_v45, %v5760_v30  ;;  %v3469_v31 = vsel %vm312_vm3, %v5716_v16, %v5746_v25 }
 0x78d   : > { %4573 = vmatprep.subr.bf16.mxu1 %v5997_v58  ;;  %3669 = vmatpush1.bf16.msra.mxu0 %v3612_v8  ;;  %v5765_v8 = vunpack.i.l.bf16 %v8162_v14  ;;  %v3473_v60 = vsel %vm312_vm3, %v5751_v18, %v5716_v16  ;;  %v3464_v14 = vsel %vm312_vm3, %v5745_v39, %v5750_v0  ;;  %v3656_v28 = vpack.c.bf16 %v3650_v32, %v3649_v4 }
 0x78e   : > { %v8231_v37 = vpop.permute.xlu1 %5813  ;;  %3670 = vmatprep.subr.bf16.mxu0 %v3652_v3  ;;  %v3641_v12 = vsel %vm494_vm2, %v5795_v23, %v5710_v45  ;;  %v3642_v54 = vsel %vm494_vm2, %v5796_v63, %v5711_v47  ;;  %v3646_v53 = vsel %vm494_vm2, %v5761_v35, %v5796_v63  ;;  %v3645_v43 = vsel %vm494_vm2, %v5760_v30, %v5795_v23 }
 0x78f   : > { %v8245_v55 = vpop.permute.xlu0 %5798  ;;  %v3655_v17 = vpack.c.bf16 %v3642_v54, %v3641_v12  ;;  %v3474_v62 = vsel %vm312_vm3, %v5720_v48, %v5765_v8  ;;  %v3654_v49 = vpack.c.bf16 %v3646_v53, %v3645_v43  ;;  %v3476_v42 = vpack.c.bf16 %v3473_v60, %v3472_v52 }
 0x790   : > { %4574 = vmatpush3.bf16.msra.mxu1 %v3653_v13  ;;  %v3478_v7 = vpack.c.bf16 %v3465_v46, %v3464_v14  ;;  %v3477_v45 = vpack.c.bf16 %v3469_v31, %v3468_v40  ;;  %v5781_v39 = vunpack.i.h.bf16 %v8178_v1  ;;  %v3479_v29 = vpack.c.bf16 %v3475_v20, %v3474_v62 }
 0x791   : > { %4575 = vmatprep.subr.bf16.mxu1 %v5997_v58  ;;  %3671 = vmatpush1.bf16.msra.mxu0 %v3651_v6  ;;  %v5786_v35 = vunpack.i.h.bf16 %v8180_v57  ;;  %v5785_v30 = vunpack.i.l.bf16 %v8180_v57  ;;  %v5816_v1 = vunpack.i.h.bf16 %v8231_v37  ;;  %v5815_v41 = vunpack.i.l.bf16 %v8231_v37 }
 0x792   : > { %v8261_v56 = vpop.permute.xlu1 %5828  ;;  %3672 = vmatprep.subr.bf16.mxu0 %v3655_v17  ;;  %v3511_v18 = vsel %vm355_vm4, %v5776_v22, %v5781_v39  ;;  %v5801_v0 = vunpack.i.h.bf16 %v8245_v55  ;;  %v5800_v40 = vunpack.i.l.bf16 %v8245_v55  ;;  %v5791_v12 = vunpack.i.h.bf16 %v8187_v21 }
 0x793   : > { %v8272_v36 = vpop.permute.xlu0 %5808  ;;  %v3507_v37 = vsel %vm355_vm4, %v5781_v39, %v5786_v35  ;;  %v3506_v3 = vsel %vm355_vm4, %v5780_v9, %v5785_v30  ;;  %v3514_v16 = vsel %vm355_vm4, %v5785_v30, %v5775_v50  ;;  %v3515_v13 = vsel %vm355_vm4, %v5786_v35, %v5776_v22 }
 0x794   : > { %4576 = vmatpush3.bf16.msra.mxu1 %v3656_v28  ;;  %v5790_v54 = vunpack.i.l.bf16 %v8187_v21  ;;  %v5810_v6 = vunpack.i.l.bf16 %v8272_v36  ;;  %v3520_v55 = vpack.c.bf16 %v3507_v37, %v3506_v3  ;;  %v5811_v31 = vunpack.i.h.bf16 %v8272_v36 }
 0x795   : > { %4581 = vmatprep.subr.bf16.mxu1 %v5997_v58  ;;  %3673 = vmatpush1.bf16.msra.mxu0 %v3654_v49  ;;  %v3518_v43 = vpack.c.bf16 %v3515_v13, %v3514_v16  ;;  %v3517_v21 = vsel %vm355_vm4, %v5801_v0, %v5791_v12 }
 0x796   : > { %v5839_v47 = vpop.permute.xlu1 %5838  ;;  %3746 = vmatprep.subr.bf16.mxu0 %v3477_v45  ;;  %v3516_v46 = vsel %vm355_vm4, %v5800_v40, %v5790_v54  ;;  %v3548_v9 = vsel %vm398_vm5, %v5810_v6, %v5815_v41  ;;  %v3549_v49 = vsel %vm398_vm5, %v5811_v31, %v5816_v1 }
 0x797   : > { %v5841_v34 = vunpack.i.h.bf16 %v5839_v47  ;;  %v5840_v15 = vunpack.i.l.bf16 %v5839_v47  ;;  %v8290_v2 = vpop.permute.xlu0 %5818  ;;  %4578 = vmatmul.mubr.msk.bf16.vlgmr.msra.gmra.mrb[16].mxu1 %vm528_vm0, %v4246_v5  ;;  %v5831_v47 = vunpack.i.h.bf16 %v8261_v56 }
 0x798   : > { %4582 = vmatpush3.bf16.msra.mxu1 %v3478_v7  ;;  %4593 = vmatprep.mubr.msk.bf16.mxu1 %vm5998_vm9, %v5997_v58  ;;  %v5820_v35 = vunpack.i.l.bf16 %v8290_v2 }
 0x799   : > { %v3467_v25 = vsel %vm312_vm3, %v5841_v34, %v5721_v59  ;;  %v3466_v57 = vsel %vm312_vm3, %v5840_v15, %v5720_v48  ;;  %4247 = vmatmul.mubr.msk.bf16.vlgmr.msra.gmra.mrb[32].mxu0 %vm528_vm0, %v4246_v5  ;;  %4583 = vmatprep.subr.bf16.mxu1 %v5997_v58  ;;  %v3470_v61 = vsel %vm312_vm3, %v5765_v8, %v5840_v15  ;;  %v5806_v59 = vunpack.i.h.bf16 %v8200_v11 }
 0x79a   : > { %v3481_v63 = vpack.c.bf16 %v3467_v25, %v3466_v57  ;;  %v8308_v23 = vpop.permute.xlu1 %5843  ;;  %v3471_v51 = vsel %vm312_vm3, %v5766_v27, %v5841_v34  ;;  %v5805_v48 = vunpack.i.l.bf16 %v8200_v11  ;;  %3747 = vmatpush1.bf16.msra.mxu0 %v3476_v42  ;;  %3778 = vmatprep.mubr.bf16.mxu0 %v5990_v19  ;;  %v3519_v8 = vpack.c.bf16 %v3511_v18, %v3510_v10 }
 0x79b   : > { %v3480_v44 = vpack.c.bf16 %v3471_v51, %v3470_v61  ;;  %v8328_v11 = vpop.permute.xlu0 %5823  ;;  %v8338_v4 = vsel %vm398_vm5, %v5816_v1, %v5806_v59  ;;  %v3553_v7 = vsel %vm398_vm5, %v5806_v59, %v5811_v31  ;;  %v3521_v15 = vpack.c.bf16 %v3517_v21, %v3516_v46 }
 0x79c   : > { %v8334_v32 = vsel %vm398_vm5, %v5815_v41, %v5805_v48  ;;  %4584 = vmatpush3.bf16.msra.mxu1 %v3481_v63  ;;  %v5825_v5 = vunpack.i.l.bf16 %v8328_v11  ;;  %v3552_v42 = vsel %vm398_vm5, %v5805_v48, %v5810_v6  ;;  %v5826_v45 = vunpack.i.h.bf16 %v8328_v11 }
 0x79d   : > { %3748 = vmatprep.subr.bf16.mxu0 %v3480_v44  ;;  %4585 = vmatprep.subr.bf16.mxu1 %v5997_v58  ;;  %v3560_v17 = vpack.c.bf16 %v8338_v4, %v8334_v32  ;;  %v3562_v10 = vpack.c.bf16 %v3549_v49, %v3548_v9  ;;  %v5821_v1 = vunpack.i.h.bf16 %v8290_v2  ;;  %v5846_v41 = vunpack.i.h.bf16 %v8308_v23 }
 0x79e   : > { %v5849_v27 = vpop.permute.xlu1 %5848  ;;  %3749 = vmatpush1.bf16.msra.mxu0 %v3479_v29  ;;  %v5830_v29 = vunpack.i.l.bf16 %v8261_v56  ;;  %v3561_v57 = vpack.c.bf16 %v3553_v7, %v3552_v42  ;;  %v3558_v63 = vsel %vm398_vm5, %v5825_v5, %v5820_v35  ;;  %v5845_v56 = vunpack.i.l.bf16 %v8308_v23 }
 0x79f   : > { %v5851_v60 = vunpack.i.h.bf16 %v5849_v27  ;;  %v5850_v53 = vunpack.i.l.bf16 %v5849_v27  ;;  %v8347_v14 = vpop.permute.xlu0 %5833  ;;  %3750 = vmatprep.subr.bf16.mxu0 %v3519_v8  ;;  %v3559_v59 = vsel %vm398_vm5, %v5826_v45, %v5821_v1 }
 0x7a0   : > { %4586 = vmatpush3.bf16.msra.mxu1 %v3520_v55  ;;  %v5835_v39 = vunpack.i.l.bf16 %v8347_v14  ;;  %v5836_v30 = vunpack.i.h.bf16 %v8347_v14  ;;  %v3563_v55 = vpack.c.bf16 %v3559_v59, %v3558_v63 }
 0x7a1   : > { %v3509_v52 = vsel %vm355_vm4, %v5851_v60, %v5801_v0  ;;  %v3508_v28 = vsel %vm355_vm4, %v5850_v53, %v5800_v40  ;;  %4587 = vmatprep.subr.bf16.mxu1 %v5997_v58  ;;  %v3512_v20 = vsel %vm355_vm4, %v5790_v54, %v5850_v53  ;;  %v3513_v62 = vsel %vm355_vm4, %v5791_v12, %v5851_v60 }
 0x7a2   : > { %v3523_v50 = vpack.c.bf16 %v3509_v52, %v3508_v28  ;;  %v8359_v36 = vpop.permute.xlu1 %5853  ;;  %3751 = vmatpush1.bf16.msra.mxu0 %v3518_v43  ;;  %v3522_v34 = vpack.c.bf16 %v3513_v62, %v3512_v20  ;;  %v3851_v18 = vsel %vm779_vm6, %v5830_v29, %v5835_v39  ;;  %v3852_v16 = vsel %vm779_vm6, %v5831_v47, %v5836_v30  ;;  %v3566_v43 = vld [vmem:[%s8510_s3] sm:$0xf] }
 0x7a3   : > { %v8376_v22 = vpop.permute.xlu0 %5858  ;;  %v5856_v2 = vunpack.i.h.bf16 %v8359_v36  ;;  %v5855_v48 = vunpack.i.l.bf16 %v8359_v36  ;;  %v3855_v12 = vsel %vm779_vm6, %v5845_v56, %v5830_v29  ;;  %v3856_v54 = vsel %vm779_vm6, %v5846_v41, %v5831_v47 }
 0x7a4   : > { %4588 = vmatpush3.bf16.msra.mxu1 %v3523_v50  ;;  %3752 = vmatprep.subr.bf16.mxu0 %v3522_v34  ;;  %v5861_v37 = vunpack.i.h.bf16 %v8376_v22  ;;  %v5860_v13 = vunpack.i.l.bf16 %v8376_v22  ;;  %v3859_v6 = vsel %vm779_vm6, %v5835_v39, %v5845_v56  ;;  %v3860_v27 = vsel %vm779_vm6, %v5836_v30, %v5846_v41 }
 0x7a5   : > { %4589 = vmatprep.subr.bf16.mxu1 %v5997_v58  ;;  %v3864_v53 = vpack.c.bf16 %v3852_v16, %v3851_v18  ;;  %v3863_v28 = vpack.c.bf16 %v3856_v54, %v3855_v12  ;;  %v3865_v9 = vpack.c.bf16 %v3860_v27, %v3859_v6 }
 0x7a6   : > { %v5864_v25 = vpop.permute.xlu1 %5863  ;;  %3753 = vmatpush1.bf16.msra.mxu0 %v3521_v15  ;;  %v3861_v14 = vsel %vm779_vm6, %v5855_v48, %v5860_v13 }
 0x7a7   : > { %v5866_v61 = vunpack.i.h.bf16 %v5864_v25  ;;  %v5865_v51 = vunpack.i.l.bf16 %v5864_v25  ;;  %v5874_v44 = vpop.permute.xlu0 %5873  ;;  %3754 = vmatprep.subr.bf16.mxu0 %v3561_v57 }
 0x7a8   : > { %4590 = vmatpush3.bf16.msra.mxu1 %v3562_v10  ;;  %v5876_v20 = vunpack.i.h.bf16 %v5874_v44  ;;  %v5875_v62 = vunpack.i.l.bf16 %v5874_v44 }
 0x7a9   : > { %v3551_v23 = vsel %vm398_vm5, %v5866_v61, %v5826_v45  ;;  %v3550_v3 = vsel %vm398_vm5, %v5865_v51, %v5825_v5  ;;  %4591 = vmatprep.subr.bf16.mxu1 %v5997_v58  ;;  %v3554_v40 = vsel %vm398_vm5, %v5820_v35, %v5865_v51  ;;  %v3555_v32 = vsel %vm398_vm5, %v5821_v1, %v5866_v61 }
 0x7aa   : > { %v3565_v11 = vpack.c.bf16 %v3551_v23, %v3550_v3  ;;  %v8401_v0 = vpop.permute.xlu1 %5868  ;;  %3755 = vmatpush1.bf16.msra.mxu0 %v3560_v17  ;;  %v3564_v4 = vpack.c.bf16 %v3555_v32, %v3554_v40  ;;  %v3862_v17 = vsel %vm779_vm6, %v5856_v2, %v5861_v37 }
 0x7ab   : > { %v5889_v8 = vpop.permute.xlu0 %5888  ;;  %v5871_v21 = vunpack.i.h.bf16 %v8401_v0  ;;  %v5870_v46 = vunpack.i.l.bf16 %v8401_v0  ;;  %v3868_v7 = vpack.c.bf16 %v3862_v17, %v3861_v14 }
 0x7ac   : > { %v5891_v31 = vunpack.i.h.bf16 %v5889_v8  ;;  %v5890_v60 = vunpack.i.l.bf16 %v5889_v8  ;;  %3756 = vmatprep.subr.bf16.mxu0 %v3564_v4  ;;  %4592 = vmatpush3.bf16.msra.mxu1 %v3565_v11 }
 0x7ad   : > { %4597 = vmatprep.subr.bf16.mxu1 %v5997_v58  ;;  %v3893_v34 = vsel %vm822_vm7, %v5870_v46, %v5875_v62  ;;  %v3894_v15 = vsel %vm822_vm7, %v5871_v21, %v5876_v20 }
 0x7ae   : > { %v5879_v52 = vpop.permute.xlu1 %5878  ;;  %3757 = vmatpush1.bf16.msra.mxu0 %v3563_v55  ;;  %v3853_v5 = vsel %vm779_vm6, %v5890_v60, %v5855_v48  ;;  %v3854_v42 = vsel %vm779_vm6, %v5891_v31, %v5856_v2  ;;  %v3857_v47 = vsel %vm779_vm6, %v5860_v13, %v5890_v60  ;;  %v3858_v45 = vsel %vm779_vm6, %v5861_v37, %v5891_v31 }
 0x7af   : > { %v5881_v50 = vunpack.i.h.bf16 %v5879_v52  ;;  %v5880_v36 = vunpack.i.l.bf16 %v5879_v52  ;;  %v5894_v49 = vpop.permute.xlu0 %5893  ;;  %3958 = vmatprep.subr.bf16.mxu0 %v3864_v53  ;;  %4594 = vmatmul.mubr.msk.bf16.vlgmr.msra.gmra.mrb[20].mxu1 %vm528_vm0, %v3566_v43  ;;  %v3867_v22 = vpack.c.bf16 %v3854_v42, %v3853_v5  ;;  %v3866_v1 = vpack.c.bf16 %v3858_v45, %v3857_v47 }
 0x7b0   : > { %4598 = vmatpush3.bf16.msra.mxu1 %v3865_v9  ;;  %4609 = vmatprep.mubr.msk.bf16.mxu1 %vm5998_vm9, %v5997_v58  ;;  %v5896_v25 = vunpack.i.h.bf16 %v5894_v49  ;;  %v5895_v57 = vunpack.i.l.bf16 %v5894_v49  ;;  %v3906_v48 = vpack.c.bf16 %v3894_v15, %v3893_v34 }
 0x7b1   : > { %4249 = vmatmul.mubr.msk.bf16.vlgmr.msra.gmra.mrb[36].mxu0 %vm528_vm0, %v3566_v43  ;;  %4599 = vmatprep.subr.bf16.mxu1 %v5997_v58  ;;  %v3902_v29 = vsel %vm822_vm7, %v5876_v20, %v5881_v50  ;;  %v3901_v35 = vsel %vm822_vm7, %v5875_v62, %v5880_v36  ;;  %v3897_v61 = vsel %vm822_vm7, %v5880_v36, %v5870_v46 }
 0x7b2   : > { %v5884_v39 = vpop.permute.xlu1 %5883  ;;  %3959 = vmatpush1.bf16.msra.mxu0 %v3863_v28  ;;  %3990 = vmatprep.mubr.bf16.mxu0 %v5990_v19  ;;  %v3898_v51 = vsel %vm822_vm7, %v5881_v50, %v5871_v21  ;;  %v3907_v59 = vpack.c.bf16 %v3902_v29, %v3901_v35 }
 0x7b3   : > { %v5886_v30 = vunpack.i.h.bf16 %v5884_v39  ;;  %v5885_v10 = vunpack.i.l.bf16 %v5884_v39  ;;  %v5904_v41 = vpop.permute.xlu0 %5903  ;;  %3960 = vmatprep.subr.bf16.mxu0 %v3867_v22  ;;  %v3905_v13 = vpack.c.bf16 %v3898_v51, %v3897_v61 }
 0x7b4   : > { %v5906_v63 = vunpack.i.h.bf16 %v5904_v41  ;;  %v5905_v56 = vunpack.i.l.bf16 %v5904_v41  ;;  %4600 = vmatpush3.bf16.msra.mxu1 %v3868_v7 }
 0x7b5   : > { %4601 = vmatprep.subr.bf16.mxu1 %v5997_v58  ;;  %v3904_v19 = vsel %vm822_vm7, %v5886_v30, %v5896_v25  ;;  %v3903_v44 = vsel %vm822_vm7, %v5885_v10, %v5895_v57 }
 0x7b6   : > { %v5899_v2 = vpop.permute.xlu1 %5898  ;;  %3961 = vmatpush1.bf16.msra.mxu0 %v3866_v1  ;;  %v3895_v3 = vsel %vm822_vm7, %v5905_v56, %v5885_v10  ;;  %v3896_v16 = vsel %vm822_vm7, %v5906_v63, %v5886_v30  ;;  %v3899_v40 = vsel %vm822_vm7, %v5895_v57, %v5905_v56  ;;  %v3900_v32 = vsel %vm822_vm7, %v5896_v25, %v5906_v63 }
 0x7b7   : > { %v5901_v18 = vunpack.i.h.bf16 %v5899_v2  ;;  %v5900_v37 = vunpack.i.l.bf16 %v5899_v2  ;;  %v5909_v23 = vpop.permute.xlu0 %5908  ;;  %3962 = vmatprep.subr.bf16.mxu0 %v3906_v48  ;;  %v3910_v4 = vpack.c.bf16 %v3904_v19, %v3903_v44  ;;  %v3909_v54 = vpack.c.bf16 %v3896_v16, %v3895_v3 }
 0x7b8   : > { %v5911_v11 = vunpack.i.h.bf16 %v5909_v23  ;;  %v5910_v0 = vunpack.i.l.bf16 %v5909_v23  ;;  %4602 = vmatpush3.bf16.msra.mxu1 %v3907_v59  ;;  %v3908_v60 = vpack.c.bf16 %v3900_v32, %v3899_v40 }
 0x7b9   : > { %4603 = vmatprep.subr.bf16.mxu1 %v5997_v58 }
 0x7ba   : > { %v5914_v12 = vpop.permute.xlu1 %5913  ;;  %3963 = vmatpush1.bf16.msra.mxu0 %v3905_v13  ;;  %v3935_v8 = vsel %vm865_vm8, %v5900_v37, %v5910_v0  ;;  %v3936_v55 = vsel %vm865_vm8, %v5901_v18, %v5911_v11 }
 0x7bb   : > { %v5916_v6 = vunpack.i.h.bf16 %v5914_v12  ;;  %v5915_v27 = vunpack.i.l.bf16 %v5914_v12  ;;  %v5924_v31 = vpop.permute.xlu0 %5923  ;;  %3964 = vmatprep.subr.bf16.mxu0 %v3909_v54  ;;  %v3948_v17 = vpack.c.bf16 %v3936_v55, %v3935_v8 }
 0x7bc   : > { %4604 = vmatpush3.bf16.msra.mxu1 %v3910_v4  ;;  %v5926_v14 = vunpack.i.h.bf16 %v5924_v31  ;;  %v5925_v21 = vunpack.i.l.bf16 %v5924_v31 }
 0x7bd   : > { %v3944_v53 = vsel %vm865_vm8, %v5911_v11, %v5916_v6  ;;  %v3939_v43 = vsel %vm865_vm8, %v5915_v27, %v5900_v37  ;;  %v3940_v46 = vsel %vm865_vm8, %v5916_v6, %v5901_v18  ;;  %v3943_v52 = vsel %vm865_vm8, %v5910_v0, %v5915_v27  ;;  %4605 = vmatprep.subr.bf16.mxu1 %v5997_v58 }
 0x7be   : > { %v5919_v28 = vpop.permute.xlu1 %5918  ;;  %v3947_v9 = vpack.c.bf16 %v3940_v46, %v3939_v43  ;;  %v3949_v50 = vpack.c.bf16 %v3944_v53, %v3943_v52  ;;  %3965 = vmatpush1.bf16.msra.mxu0 %v3908_v60 }
 0x7bf   : > { %v5921_v36 = vunpack.i.h.bf16 %v5919_v28  ;;  %v5920_v20 = vunpack.i.l.bf16 %v5919_v28  ;;  %v5929_v62 = vpop.permute.xlu0 %5928  ;;  %3966 = vmatprep.subr.bf16.mxu0 %v3948_v17 }
 0x7c0   : > { %v5931_v49 = vunpack.i.h.bf16 %v5929_v62  ;;  %v5930_v5 = vunpack.i.l.bf16 %v5929_v62  ;;  %4606 = vmatpush3.bf16.msra.mxu1 %v3949_v50 }
 0x7c1   : > { %v3937_v42 = vsel %vm865_vm8, %v5925_v21, %v5920_v20  ;;  %v3938_v7 = vsel %vm865_vm8, %v5926_v14, %v5921_v36  ;;  %4607 = vmatprep.subr.bf16.mxu1 %v5997_v58  ;;  %v4251_v58 = vld [vmem:[%s8510_s3 + $0x8] sm:$0xf] }
 0x7c2   : > { %v3951_v47 = vpack.c.bf16 %v3938_v7, %v3937_v42  ;;  %v3941_v45 = vsel %vm865_vm8, %v5930_v5, %v5925_v21  ;;  %v3942_v39 = vsel %vm865_vm8, %v5931_v49, %v5926_v14  ;;  %v3946_v22 = vsel %vm865_vm8, %v5921_v36, %v5931_v49  ;;  %3967 = vmatpush1.bf16.msra.mxu0 %v3947_v9 }
 0x7c3   : > { %v3945_v34 = vsel %vm865_vm8, %v5920_v20, %v5930_v5  ;;  %v3950_v15 = vpack.c.bf16 %v3942_v39, %v3941_v45 }
 0x7c4   : > { %v3952_v29 = vpack.c.bf16 %v3946_v22, %v3945_v34  ;;  %3968 = vmatprep.subr.bf16.mxu0 %v3951_v47 }
 0x7c6   : > { %4608 = vmatpush3.bf16.msra.mxu1 %v3952_v29  ;;  %3969 = vmatpush1.bf16.msra.mxu0 %v3950_v15 }
 0x7c9   : > { %4610 = vmatmul.mubr.msk.bf16.vlgmr.msra.gmra.mrb[24].mxu1 %vm528_vm0, %v4251_v58  ;;  %4252 = vmatmul.mubr.msk.bf16.vlgmr.msra.gmra.mrb[40].mxu0 %vm528_vm0, %v4251_v58 }
 0x7cf   : > { %v4045_v23 = vpop.permute.xlu1 %4044 }
 0x86a   : > { %v3737_v35 = vpop.f32.mrb[16].mxu1 }
 0x86b   : > { %v4579_v30 = vpop.f32.mrb[17].mxu1 }
 0x86c   : > { %v3696_v10 = vpop.f32.mrb[32].mxu0  ;;  %v3740_v1 = vpop.f32.mrb[18].mxu1 }
 0x86d   : > { %v3698_v26 = vpop.f32.mrb[33].mxu0  ;;  %v4580_v41 = vpop.f32.mrb[19].mxu1 }
 0x86e   : > { %v3700_v25 = vpop.f32.mrb[34].mxu0 }
 0x86f   : > { %v3701_v57 = vpop.f32.mrb[35].mxu0 }
 0x882   : > { %v3821_v63 = vpop.f32.mrb[20].mxu1 }
 0x883   : > { %v3822_v56 = vadd.f32 %v3821_v63, %v3737_v35  ;;  %v4595_v61 = vpop.f32.mrb[21].mxu1 }
 0x884   : > { %v3780_v51 = vpop.f32.mrb[36].mxu0  ;;  %v3824_v59 = vpop.f32.mrb[22].mxu1 }
 0x885   : > { %v3781_v2 = vadd.f32 %v3780_v51, %v3696_v10  ;;  %v3782_v48 = vpop.f32.mrb[37].mxu0  ;;  %v4596_v19 = vpop.f32.mrb[23].mxu1 }
 0x886   : > { %v3783_v44 = vadd.f32 %v3782_v48, %v3698_v26  ;;  %v3784_v18 = vpop.f32.mrb[38].mxu0 }
 0x887   : > { %v3785_v37 = vpop.f32.mrb[39].mxu0 }
 0x89c   : > { %v4033_v3 = vpop.f32.mrb[24].mxu1  ;;  %v3992_v13 = vpop.f32.mrb[40].mxu0 }
 0x89d   : > { %v4041_v16 = vadd.f32 %v4033_v3, %v3822_v56  ;;  %v4611_v11 = vpop.f32.mrb[25].mxu1  ;;  %v4039_v0 = vadd.f32 %v3992_v13, %v3781_v2  ;;  %v3994_v40 = vpop.f32.mrb[41].mxu0 }
 0x89e   : > { %v4036_v32 = vpop.f32.mrb[26].mxu1  ;;  %v4040_v12 = vadd.f32 %v3994_v40, %v3783_v44  ;;  %v3996_v54 = vpop.f32.mrb[42].mxu0 }
 0x89f   : > { %v4049_v4 = vadd.f32 %v4045_v23, %v4041_v16  ;;  %v4612_v6 = vpop.f32.mrb[27].mxu1  ;;  %v4047_v27 = vadd.f32 %v4045_v23, %v4039_v0  ;;  %v3997_v8 = vpop.f32.mrb[43].mxu0 }
 0x8a0   : > { %v4048_v31 = vadd.f32 %v4045_v23, %v4040_v12 }
 0x8a1   : > { %v4052_v55 = vmul.f32 %v4049_v4, %v6460_v38  ;;  %v4050_v60 = vmul.f32 %v4047_v27, %v6458_v33 }
 0x8a2   : > { %v4051_v53 = vmul.f32 %v4048_v31, %v6462_v24 }
 0x8a3   : > { %4055 = vst [vmem:[%s251_s17 + $0x10] sm:$0xff] %v4052_v55  ;;  %4053 = vst [vmem:[%s251_s17] sm:$0xff] %v4050_v60 }
 0x8a4   : > { %4054 = vst [vmem:[%s251_s17 + $0x8] sm:$0xff] %v4051_v53 }
 0x8a5 PF: > { %s16_s21 = sadd.s32 1, %s5986_s21  }
 0x8a6   : > { %p13_p4 = scmp.ge.s32.totalorder %s16_s21, 4  }
 0x8a8   :  { %15 = sbr.rel (!%p13_p4) target bundleno = 1 (0x1), region = 90 }

</bundles_post_ra>
